<compile_context>
chip_gen: v7x
topology: tpu7x:2x2x1
jax: 0.10.0
libtpu: 0.0.40
codegen_flags: <defaults>
</compile_context>

<pallas_src>
import functools

import jax
import jax.numpy as jnp
from jax.experimental import pallas as pl
from jax.experimental.pallas import tpu as pltpu

_BN_EPS = 1e-5
_LANES = 128
_BF16_SUBLANES = 16   # bf16 native sublane tile; keeps the (Ho, Wo_pad) merge aligned


def _round_up(x, m):
    return ((x + m - 1) // m) * m


# --------------------------------------------------------------------------
# Shared conv body: im2col tile assembled in VMEM + one MXU matmul per image.
# --------------------------------------------------------------------------
def _conv_image(x_ref, w_ref, patch_ref, *, k, stride, Ho, Wo_pad):
    # x_ref:     (H, W_pad, C)        bf16  -- one whole image
    # w_ref:     (k*k*C, Op)          bf16
    # patch_ref: (Ho, Wo_pad, k*k*C)  bf16  -- VMEM scratch (fully overwritten)
    # returns    (Ho*Wo_pad, Op)      f32 conv output (cols wo >= Wo are padding)
    C = x_ref.shape[-1]
    for i in range(k):
        for j in range(k):
            t = i * k + j
            if stride == 1:
                win = x_ref[pl.ds(i, Ho), pl.ds(j, Wo_pad), :]
            else:
                win = x_ref[pl.ds(i, Ho, stride=stride),
                            pl.ds(j, Wo_pad, stride=stride), :]
            patch_ref[:, :, t * C:(t + 1) * C] = win
    # Wo_pad is a multiple of 16, so this merge is sublane-tile aligned (free).
    patches = patch_ref[...].reshape(Ho * Wo_pad, k * k * C)
    return jnp.dot(patches, w_ref[...], preferred_element_type=jnp.float32)


# --------------------------------------------------------------------------
# Kernel 1: stats-only pass.  Only (2, Op) per image ever reaches HBM.
# --------------------------------------------------------------------------
def _conv_stats_kernel(x_ref, w_ref, mask_ref, stats_ref, patch_ref, *,
                       k, stride, Ho, Wo_pad):
    acc = _conv_image(x_ref, w_ref, patch_ref, k=k, stride=stride,
                      Ho=Ho, Wo_pad=Wo_pad)              # (M, Op) f32
    acc = acc * mask_ref[...]                            # zero wo >= Wo columns
    stats_ref[0:1, :] = jnp.sum(acc, axis=0, keepdims=True)
    stats_ref[1:2, :] = jnp.sum(acc * acc, axis=0, keepdims=True)


# --------------------------------------------------------------------------
# Kernel 2: recompute conv (cheap) fused with BN scale/shift + ReLU, emitting
# the unpadded NHWC tile directly (no padded intermediate, no trailing slice).
# --------------------------------------------------------------------------
def _conv_bn_relu_kernel(x_ref, w_ref, scale_ref, shift_ref, o_ref, patch_ref, *,
                         k, stride, Ho, Wo, Wo_pad, O):
    acc = _conv_image(x_ref, w_ref, patch_ref, k=k, stride=stride,
                      Ho=Ho, Wo_pad=Wo_pad)              # (M, Op) f32
    y = jnp.maximum(acc * scale_ref[...] + shift_ref[...], 0.0)
    y = y[:, :O]                                         # drop padded channels
    y = y.reshape(Ho, Wo_pad, O)[:, :Wo, :]              # aligned split, drop pad cols
    o_ref[...] = y


# --------------------------------------------------------------------------
# Wrapper: layout plumbing + tiny stats finalization in plain JAX
# --------------------------------------------------------------------------
@functools.partial(jax.jit, static_argnames=("kernel_size", "stride"))
def conv2d_bn_relu(x_nchw, weight_oikk, gamma, beta, *, kernel_size, stride):
    """Forward pass matching the PyTorch module: conv(no bias) -> BN(train) -> ReLU."""
    N, C, H, W = x_nchw.shape
    O = weight_oikk.shape[0]
    k, s = kernel_size, stride
    Ho = (H - k) // s + 1
    Wo = (W - k) // s + 1
    Op = _round_up(O, _LANES)          # lane-dense padded output channels (MXU N dim)
    Wo_pad = _round_up(Wo, _BF16_SUBLANES)
    W_pad = (Wo_pad - 1) * s + k       # so the extra output columns read in-bounds
    M = Ho * Wo_pad
    KKC = k * k * C

    # NCHW -> NHWC only at the torch I/O boundary; zero-pad W; bf16 for the MXU.
    x_nhwc = jnp.transpose(x_nchw, (0, 2, 3, 1)).astype(jnp.bfloat16)
    x_pad = jnp.pad(x_nhwc, ((0, 0), (0, 0), (0, W_pad - W), (0, 0)))

    # torch (O, C, kh, kw) -> (kh, kw, C, O) -> (k*k*C, O), O padded to Op, bf16.
    w = jnp.transpose(weight_oikk, (2, 3, 1, 0)).reshape(KKC, O)
    w = jnp.pad(w, ((0, 0), (0, Op - O))).astype(jnp.bfloat16)

    # Row-validity mask for the stats pass (1 for wo < Wo, 0 for padded columns).
    wo_idx = jnp.arange(M, dtype=jnp.int32) % Wo_pad
    mask = (wo_idx < Wo).astype(jnp.float32).reshape(M, 1)

    # ---- Pass 1: per-image conv + fused BN batch-statistics (stats only) ----
    stats = pl.pallas_call(
        functools.partial(_conv_stats_kernel, k=k, stride=s, Ho=Ho, Wo_pad=Wo_pad),
        out_shape=jax.ShapeDtypeStruct((N, 2, Op), jnp.float32),
        grid_spec=pltpu.PrefetchScalarGridSpec(
            num_scalar_prefetch=0,
            grid=(N,),
            in_specs=[
                pl.BlockSpec((None, H, W_pad, C), lambda n: (n, 0, 0, 0)),
                pl.BlockSpec((KKC, Op), lambda n: (0, 0)),
                pl.BlockSpec((M, 1), lambda n: (0, 0)),
            ],
            out_specs=pl.BlockSpec((None, 2, Op), lambda n: (n, 0, 0)),
            scratch_shapes=[pltpu.VMEM((Ho, Wo_pad, KKC), jnp.bfloat16)],
        ),
        compiler_params=pltpu.CompilerParams(
            dimension_semantics=("parallel",)),
    )(x_pad, w, mask)

    # Finalize BN batch statistics (tiny) -> per-channel scale/shift.
    count = jnp.float32(N * Ho * Wo)
    sums = jnp.sum(stats, axis=0)                               # (2, Op)
    mean = sums[0] / count
    var = jnp.maximum(sums[1] / count - mean * mean, 0.0)       # biased var (torch BN)
    gamma_p = jnp.pad(gamma.astype(jnp.float32), (0, Op - O))
    beta_p = jnp.pad(beta.astype(jnp.float32), (0, Op - O))
    g_inv = gamma_p * jax.lax.rsqrt(var + _BN_EPS)
    scale = g_inv.reshape(1, Op)
    shift = (beta_p - mean * g_inv).reshape(1, Op)

    # ---- Pass 2: recompute conv fused with BN + ReLU; emit unpadded NHWC ----
    y_nhwc = pl.pallas_call(
        functools.partial(_conv_bn_relu_kernel, k=k, stride=s,
                          Ho=Ho, Wo=Wo, Wo_pad=Wo_pad, O=O),
        out_shape=jax.ShapeDtypeStruct((N, Ho, Wo, O), jnp.float32),
        grid_spec=pltpu.PrefetchScalarGridSpec(
            num_scalar_prefetch=0,
            grid=(N,),
            in_specs=[
                pl.BlockSpec((None, H, W_pad, C), lambda n: (n, 0, 0, 0)),
                pl.BlockSpec((KKC, Op), lambda n: (0, 0)),
                pl.BlockSpec((1, Op), lambda n: (0, 0)),
                pl.BlockSpec((1, Op), lambda n: (0, 0)),
            ],
            out_specs=pl.BlockSpec((None, Ho, Wo, O), lambda n: (n, 0, 0, 0)),
            scratch_shapes=[pltpu.VMEM((Ho, Wo_pad, KKC), jnp.bfloat16)],
        ),
        compiler_params=pltpu.CompilerParams(
            dimension_semantics=("parallel",)),
    )(x_pad, w, scale, shift)

    return jnp.transpose(y_nhwc, (0, 3, 1, 2))   # NHWC -> NCHW (tiny, unpadded)


# --------------------------------------------------------------------------
# Pure-JAX reference (bf16-rounded conv inputs to mirror the MXU path)
# --------------------------------------------------------------------------
def _reference_forward(x, w, gamma, beta, k, s):
    xb = x.astype(jnp.bfloat16).astype(jnp.float32)
    wb = w.astype(jnp.bfloat16).astype(jnp.float32)
    y = jax.lax.conv_general_dilated(
        xb, wb, window_strides=(s, s), padding="VALID",
        dimension_numbers=("NCHW", "OIHW", "NCHW"))
    mean = jnp.mean(y, axis=(0, 2, 3), keepdims=True)
    var = jnp.var(y, axis=(0, 2, 3), keepdims=True)
    yn = (y - mean) * jax.lax.rsqrt(var + _BN_EPS)
    yn = yn * gamma.reshape(1, -1, 1, 1) + beta.reshape(1, -1, 1, 1)
    return jnp.maximum(yn, 0.0)


# --------------------------------------------------------------------------
# Deterministic parameter setup + run
# --------------------------------------------------------------------------
if __name__ == "__main__":
    # Module config: Conv2d(in_channels=4, out_channels=8, kernel_size=3, stride=1)
    in_channels, out_channels, kernel_size, stride = 4, 8, 3, 1
    N, H, W = 2, 16, 16

    key = jax.random.PRNGKey(0)
    kx, kw = jax.random.split(key)
    x = jax.random.normal(kx, (N, in_channels, H, W), dtype=jnp.float32)

    # xavier-uniform init for the conv weight (bias=False since bn=True)
    fan_in = in_channels * kernel_size * kernel_size
    fan_out = out_channels * kernel_size * kernel_size
    bound = (6.0 / (fan_in + fan_out)) ** 0.5
    weight = jax.random.uniform(
        kw, (out_channels, in_channels, kernel_size, kernel_size),
        minval=-bound, maxval=bound, dtype=jnp.float32)

    # BatchNorm2d affine params (init_bn: weight=1, bias=0)
    gamma = jnp.ones((out_channels,), dtype=jnp.float32)
    beta = jnp.zeros((out_channels,), dtype=jnp.float32)

    out = conv2d_bn_relu(x, weight, gamma, beta,
                         kernel_size=kernel_size, stride=stride)
    out = jax.block_until_ready(out)

    Ho = (H - kernel_size) // stride + 1
    assert out.shape == (N, out_channels, Ho, Ho), out.shape
    assert bool(jnp.all(out >= 0.0))  # ReLU post-condition

    ref = _reference_forward(x, weight, gamma, beta, kernel_size, stride)
    assert bool(jnp.allclose(out, ref, rtol=1e-2, atol=1e-2)), float(
        jnp.max(jnp.abs(out - ref)))

    print("KERNEL_OK")
</pallas_src>

<mosaic_0001>
module attributes {stable_mosaic.version = 11 : i64} {
  func.func @_conv_stats_kernel(%arg0: i32, %arg1: memref<1x16x18x4xbf16, #tpu.memory_space<vmem>>, %arg2: memref<36x128xbf16, #tpu.memory_space<vmem>>, %arg3: memref<224x1xf32, #tpu.memory_space<vmem>>, %arg4: memref<1x2x128xf32, #tpu.memory_space<vmem>>, %arg5: memref<14x16x36xbf16, #tpu.memory_space<vmem>>) attributes {dimension_semantics = [#tpu.dimension_semantics<parallel>], iteration_bounds = array<i64: 2>, scalar_prefetch = 0 : i64, scratch_operands = 1 : i64, tpu.core_type = #tpu.core_type<tc>, window_params = [{transform_indices = @transform_0, window_bounds = array<i64: 1, 16, 18, 4>}, {pipeline_mode = #tpu.pipeline_mode<synchronous>, transform_indices = @transform_1, window_bounds = array<i64: 36, 128>}, {pipeline_mode = #tpu.pipeline_mode<synchronous>, transform_indices = @transform_2, window_bounds = array<i64: 224, 1>}, {transform_indices = @transform_3, window_bounds = array<i64: 1, 2, 128>}]} {
    %c0 = arith.constant 0 : index
    %c0_0 = arith.constant 0 : index
    %c0_1 = arith.constant 0 : index
    %c0_2 = arith.constant 0 : index
    %0 = vector.load %arg1[%c0, %c0_0, %c0_1, %c0_2] : memref<1x16x18x4xbf16, #tpu.memory_space<vmem>>, vector<1x14x16x4xbf16>
    %1 = vector.shape_cast %0 : vector<1x14x16x4xbf16> to vector<14x16x4xbf16>
    %c0_3 = arith.constant 0 : index
    %c0_4 = arith.constant 0 : index
    %c0_5 = arith.constant 0 : index
    %2 = vector.load %arg5[%c0_3, %c0_4, %c0_5] : memref<14x16x36xbf16, #tpu.memory_space<vmem>>, vector<14x16x4xbf16>
    tpu.vector_store %arg5[%c0_3, %c0_4, %c0_5], %1 {strides = array<i32>} : memref<14x16x36xbf16, #tpu.memory_space<vmem>>, vector<14x16x4xbf16>,
    %c0_6 = arith.constant 0 : index
    %c0_7 = arith.constant 0 : index
    %c1 = arith.constant 1 : index
    %c0_8 = arith.constant 0 : index
    %3 = vector.load %arg1[%c0_6, %c0_7, %c1, %c0_8] : memref<1x16x18x4xbf16, #tpu.memory_space<vmem>>, vector<1x14x16x4xbf16>
    %4 = vector.shape_cast %3 : vector<1x14x16x4xbf16> to vector<14x16x4xbf16>
    %c0_9 = arith.constant 0 : index
    %c0_10 = arith.constant 0 : index
    %c4 = arith.constant 4 : index
    %5 = vector.load %arg5[%c0_9, %c0_10, %c4] : memref<14x16x36xbf16, #tpu.memory_space<vmem>>, vector<14x16x4xbf16>
    tpu.vector_store %arg5[%c0_9, %c0_10, %c4], %4 {strides = array<i32>} : memref<14x16x36xbf16, #tpu.memory_space<vmem>>, vector<14x16x4xbf16>,
    %c0_11 = arith.constant 0 : index
    %c0_12 = arith.constant 0 : index
    %c2 = arith.constant 2 : index
    %c0_13 = arith.constant 0 : index
    %6 = vector.load %arg1[%c0_11, %c0_12, %c2, %c0_13] : memref<1x16x18x4xbf16, #tpu.memory_space<vmem>>, vector<1x14x16x4xbf16>
    %7 = vector.shape_cast %6 : vector<1x14x16x4xbf16> to vector<14x16x4xbf16>
    %c0_14 = arith.constant 0 : index
    %c0_15 = arith.constant 0 : index
    %c8 = arith.constant 8 : index
    %8 = vector.load %arg5[%c0_14, %c0_15, %c8] : memref<14x16x36xbf16, #tpu.memory_space<vmem>>, vector<14x16x4xbf16>
    tpu.vector_store %arg5[%c0_14, %c0_15, %c8], %7 {strides = array<i32>} : memref<14x16x36xbf16, #tpu.memory_space<vmem>>, vector<14x16x4xbf16>,
    %c0_16 = arith.constant 0 : index
    %c1_17 = arith.constant 1 : index
    %c0_18 = arith.constant 0 : index
    %c0_19 = arith.constant 0 : index
    %9 = vector.load %arg1[%c0_16, %c1_17, %c0_18, %c0_19] : memref<1x16x18x4xbf16, #tpu.memory_space<vmem>>, vector<1x14x16x4xbf16>
    %10 = vector.shape_cast %9 : vector<1x14x16x4xbf16> to vector<14x16x4xbf16>
    %c0_20 = arith.constant 0 : index
    %c0_21 = arith.constant 0 : index
    %c12 = arith.constant 12 : index
    %11 = vector.load %arg5[%c0_20, %c0_21, %c12] : memref<14x16x36xbf16, #tpu.memory_space<vmem>>, vector<14x16x4xbf16>
    tpu.vector_store %arg5[%c0_20, %c0_21, %c12], %10 {strides = array<i32>} : memref<14x16x36xbf16, #tpu.memory_space<vmem>>, vector<14x16x4xbf16>,
    %c0_22 = arith.constant 0 : index
    %c1_23 = arith.constant 1 : index
    %c1_24 = arith.constant 1 : index
    %c0_25 = arith.constant 0 : index
    %12 = vector.load %arg1[%c0_22, %c1_23, %c1_24, %c0_25] : memref<1x16x18x4xbf16, #tpu.memory_space<vmem>>, vector<1x14x16x4xbf16>
    %13 = vector.shape_cast %12 : vector<1x14x16x4xbf16> to vector<14x16x4xbf16>
    %c0_26 = arith.constant 0 : index
    %c0_27 = arith.constant 0 : index
    %c16 = arith.constant 16 : index
    %14 = vector.load %arg5[%c0_26, %c0_27, %c16] : memref<14x16x36xbf16, #tpu.memory_space<vmem>>, vector<14x16x4xbf16>
    tpu.vector_store %arg5[%c0_26, %c0_27, %c16], %13 {strides = array<i32>} : memref<14x16x36xbf16, #tpu.memory_space<vmem>>, vector<14x16x4xbf16>,
    %c0_28 = arith.constant 0 : index
    %c1_29 = arith.constant 1 : index
    %c2_30 = arith.constant 2 : index
    %c0_31 = arith.constant 0 : index
    %15 = vector.load %arg1[%c0_28, %c1_29, %c2_30, %c0_31] : memref<1x16x18x4xbf16, #tpu.memory_space<vmem>>, vector<1x14x16x4xbf16>
    %16 = vector.shape_cast %15 : vector<1x14x16x4xbf16> to vector<14x16x4xbf16>
    %c0_32 = arith.constant 0 : index
    %c0_33 = arith.constant 0 : index
    %c20 = arith.constant 20 : index
    %17 = vector.load %arg5[%c0_32, %c0_33, %c20] : memref<14x16x36xbf16, #tpu.memory_space<vmem>>, vector<14x16x4xbf16>
    tpu.vector_store %arg5[%c0_32, %c0_33, %c20], %16 {strides = array<i32>} : memref<14x16x36xbf16, #tpu.memory_space<vmem>>, vector<14x16x4xbf16>,
    %c0_34 = arith.constant 0 : index
    %c2_35 = arith.constant 2 : index
    %c0_36 = arith.constant 0 : index
    %c0_37 = arith.constant 0 : index
    %18 = vector.load %arg1[%c0_34, %c2_35, %c0_36, %c0_37] : memref<1x16x18x4xbf16, #tpu.memory_space<vmem>>, vector<1x14x16x4xbf16>
    %19 = vector.shape_cast %18 : vector<1x14x16x4xbf16> to vector<14x16x4xbf16>
    %c0_38 = arith.constant 0 : index
    %c0_39 = arith.constant 0 : index
    %c24 = arith.constant 24 : index
    %20 = vector.load %arg5[%c0_38, %c0_39, %c24] : memref<14x16x36xbf16, #tpu.memory_space<vmem>>, vector<14x16x4xbf16>
    tpu.vector_store %arg5[%c0_38, %c0_39, %c24], %19 {strides = array<i32>} : memref<14x16x36xbf16, #tpu.memory_space<vmem>>, vector<14x16x4xbf16>,
    %c0_40 = arith.constant 0 : index
    %c2_41 = arith.constant 2 : index
    %c1_42 = arith.constant 1 : index
    %c0_43 = arith.constant 0 : index
    %21 = vector.load %arg1[%c0_40, %c2_41, %c1_42, %c0_43] : memref<1x16x18x4xbf16, #tpu.memory_space<vmem>>, vector<1x14x16x4xbf16>
    %22 = vector.shape_cast %21 : vector<1x14x16x4xbf16> to vector<14x16x4xbf16>
    %c0_44 = arith.constant 0 : index
    %c0_45 = arith.constant 0 : index
    %c28 = arith.constant 28 : index
    %23 = vector.load %arg5[%c0_44, %c0_45, %c28] : memref<14x16x36xbf16, #tpu.memory_space<vmem>>, vector<14x16x4xbf16>
    tpu.vector_store %arg5[%c0_44, %c0_45, %c28], %22 {strides = array<i32>} : memref<14x16x36xbf16, #tpu.memory_space<vmem>>, vector<14x16x4xbf16>,
    %c0_46 = arith.constant 0 : index
    %c2_47 = arith.constant 2 : index
    %c2_48 = arith.constant 2 : index
    %c0_49 = arith.constant 0 : index
    %24 = vector.load %arg1[%c0_46, %c2_47, %c2_48, %c0_49] : memref<1x16x18x4xbf16, #tpu.memory_space<vmem>>, vector<1x14x16x4xbf16>
    %25 = vector.shape_cast %24 : vector<1x14x16x4xbf16> to vector<14x16x4xbf16>
    %c0_50 = arith.constant 0 : index
    %c0_51 = arith.constant 0 : index
    %c32 = arith.constant 32 : index
    %26 = vector.load %arg5[%c0_50, %c0_51, %c32] : memref<14x16x36xbf16, #tpu.memory_space<vmem>>, vector<14x16x4xbf16>
    tpu.vector_store %arg5[%c0_50, %c0_51, %c32], %25 {strides = array<i32>} : memref<14x16x36xbf16, #tpu.memory_space<vmem>>, vector<14x16x4xbf16>,
    %c0_52 = arith.constant 0 : index
    %c0_53 = arith.constant 0 : index
    %c0_54 = arith.constant 0 : index
    %27 = vector.load %arg5[%c0_52, %c0_53, %c0_54] : memref<14x16x36xbf16, #tpu.memory_space<vmem>>, vector<14x16x36xbf16>
    %28 = vector.shape_cast %27 : vector<14x16x36xbf16> to vector<224x36xbf16>
    %c0_55 = arith.constant 0 : index
    %c0_56 = arith.constant 0 : index
    %29 = vector.load %arg2[%c0_55, %c0_56] : memref<36x128xbf16, #tpu.memory_space<vmem>>, vector<36x128xbf16>
    %cst = arith.constant dense<0.000000e+00> : vector<224x128xf32>
    %30 = tpu.matmul %28, %29, %cst {dimension_numbers = #tpu.dot_dimension_numbers<[1], [0], [0], [1], [0, 0, 1, 1], [], []>} : vector<224x36xbf16>, vector<36x128xbf16>, vector<224x128xf32> -> vector<224x128xf32>
    %c0_57 = arith.constant 0 : index
    %c0_58 = arith.constant 0 : index
    %31 = vector.load %arg3[%c0_57, %c0_58] : memref<224x1xf32, #tpu.memory_space<vmem>>, vector<224x1xf32>
    %32 = vector.broadcast %31 : vector<224x1xf32> to vector<224x128xf32>
    %33 = arith.mulf %30, %32 : vector<224x128xf32>
    %cst_59 = arith.constant dense<0.000000e+00> : vector<128xf32>
    %34 = vector.multi_reduction <add>, %33, %cst_59 [0] : vector<224x128xf32> to vector<128xf32>
    %35 = vector.shape_cast %34 : vector<128xf32> to vector<1x128xf32>
    %c0_60 = arith.constant 0 : index
    %c0_61 = arith.constant 0 : index
    %c0_62 = arith.constant 0 : index
    %36 = vector.load %arg4[%c0_60, %c0_61, %c0_62] : memref<1x2x128xf32, #tpu.memory_space<vmem>>, vector<1x1x128xf32>
    %37 = vector.shape_cast %36 : vector<1x1x128xf32> to vector<1x128xf32>
    %38 = vector.shape_cast %35 : vector<1x128xf32> to vector<1x1x128xf32>
    tpu.vector_store %arg4[%c0_60, %c0_61, %c0_62], %38 {strides = array<i32>} : memref<1x2x128xf32, #tpu.memory_space<vmem>>, vector<1x1x128xf32>,
    %39 = arith.mulf %33, %33 : vector<224x128xf32>
    %cst_63 = arith.constant dense<0.000000e+00> : vector<128xf32>
    %40 = vector.multi_reduction <add>, %39, %cst_63 [0] : vector<224x128xf32> to vector<128xf32>
    %41 = vector.shape_cast %40 : vector<128xf32> to vector<1x128xf32>
    %c0_64 = arith.constant 0 : index
    %c1_65 = arith.constant 1 : index
    %c0_66 = arith.constant 0 : index
    %42 = vector.load %arg4[%c0_64, %c1_65, %c0_66] : memref<1x2x128xf32, #tpu.memory_space<vmem>>, vector<1x1x128xf32>
    %43 = vector.shape_cast %42 : vector<1x1x128xf32> to vector<1x128xf32>
    %44 = vector.shape_cast %41 : vector<1x128xf32> to vector<1x1x128xf32>
    tpu.vector_store %arg4[%c0_64, %c1_65, %c0_66], %44 {strides = array<i32>} : memref<1x2x128xf32, #tpu.memory_space<vmem>>, vector<1x1x128xf32>,
    return
  }
  func.func @transform_0(%arg0: i32) -> (i32, i32, i32, i32) {
    %c0_i32 = arith.constant 0 : i32
    %c0_i32_0 = arith.constant 0 : i32
    %c0_i32_1 = arith.constant 0 : i32
    %c0_i32_2 = arith.constant 0 : i32
    return %arg0, %c0_i32, %c0_i32_0, %c0_i32_1 : i32, i32, i32, i32
  }
  func.func @transform_1(%arg0: i32) -> (i32, i32) {
    %c0_i32 = arith.constant 0 : i32
    %c0_i32_0 = arith.constant 0 : i32
    %c0_i32_1 = arith.constant 0 : i32
    return %c0_i32, %c0_i32_0 : i32, i32
  }
  func.func @transform_2(%arg0: i32) -> (i32, i32) {
    %c0_i32 = arith.constant 0 : i32
    %c0_i32_0 = arith.constant 0 : i32
    %c0_i32_1 = arith.constant 0 : i32
    return %c0_i32, %c0_i32_0 : i32, i32
  }
  func.func @transform_3(%arg0: i32) -> (i32, i32, i32) {
    %c0_i32 = arith.constant 0 : i32
    %c0_i32_0 = arith.constant 0 : i32
    %c0_i32_1 = arith.constant 0 : i32
    return %arg0, %c0_i32, %c0_i32_0 : i32, i32, i32
  }
}

module attributes {stable_mosaic.version = 11 : i64} {
  func.func @_conv_bn_relu_kernel(%arg0: i32, %arg1: memref<1x16x18x4xbf16, #tpu.memory_space<vmem>>, %arg2: memref<36x128xbf16, #tpu.memory_space<vmem>>, %arg3: memref<1x128xf32, #tpu.memory_space<vmem>>, %arg4: memref<1x128xf32, #tpu.memory_space<vmem>>, %arg5: memref<1x14x14x8xf32, #tpu.memory_space<vmem>>, %arg6: memref<14x16x36xbf16, #tpu.memory_space<vmem>>) attributes {dimension_semantics = [#tpu.dimension_semantics<parallel>], iteration_bounds = array<i64: 2>, scalar_prefetch = 0 : i64, scratch_operands = 1 : i64, tpu.core_type = #tpu.core_type<tc>, window_params = [{transform_indices = @transform_0, window_bounds = array<i64: 1, 16, 18, 4>}, {pipeline_mode = #tpu.pipeline_mode<synchronous>, transform_indices = @transform_1, window_bounds = array<i64: 36, 128>}, {pipeline_mode = #tpu.pipeline_mode<synchronous>, transform_indices = @transform_2, window_bounds = array<i64: 1, 128>}, {pipeline_mode = #tpu.pipeline_mode<synchronous>, transform_indices = @transform_3, window_bounds = array<i64: 1, 128>}, {transform_indices = @transform_4, window_bounds = array<i64: 1, 14, 14, 8>}]} {
    %c0 = arith.constant 0 : index
    %c0_0 = arith.constant 0 : index
    %c0_1 = arith.constant 0 : index
    %c0_2 = arith.constant 0 : index
    %0 = vector.load %arg1[%c0, %c0_0, %c0_1, %c0_2] : memref<1x16x18x4xbf16, #tpu.memory_space<vmem>>, vector<1x14x16x4xbf16>
    %1 = vector.shape_cast %0 : vector<1x14x16x4xbf16> to vector<14x16x4xbf16>
    %c0_3 = arith.constant 0 : index
    %c0_4 = arith.constant 0 : index
    %c0_5 = arith.constant 0 : index
    %2 = vector.load %arg6[%c0_3, %c0_4, %c0_5] : memref<14x16x36xbf16, #tpu.memory_space<vmem>>, vector<14x16x4xbf16>
    tpu.vector_store %arg6[%c0_3, %c0_4, %c0_5], %1 {strides = array<i32>} : memref<14x16x36xbf16, #tpu.memory_space<vmem>>, vector<14x16x4xbf16>,
    %c0_6 = arith.constant 0 : index
    %c0_7 = arith.constant 0 : index
    %c1 = arith.constant 1 : index
    %c0_8 = arith.constant 0 : index
    %3 = vector.load %arg1[%c0_6, %c0_7, %c1, %c0_8] : memref<1x16x18x4xbf16, #tpu.memory_space<vmem>>, vector<1x14x16x4xbf16>
    %4 = vector.shape_cast %3 : vector<1x14x16x4xbf16> to vector<14x16x4xbf16>
    %c0_9 = arith.constant 0 : index
    %c0_10 = arith.constant 0 : index
    %c4 = arith.constant 4 : index
    %5 = vector.load %arg6[%c0_9, %c0_10, %c4] : memref<14x16x36xbf16, #tpu.memory_space<vmem>>, vector<14x16x4xbf16>
    tpu.vector_store %arg6[%c0_9, %c0_10, %c4], %4 {strides = array<i32>} : memref<14x16x36xbf16, #tpu.memory_space<vmem>>, vector<14x16x4xbf16>,
    %c0_11 = arith.constant 0 : index
    %c0_12 = arith.constant 0 : index
    %c2 = arith.constant 2 : index
    %c0_13 = arith.constant 0 : index
    %6 = vector.load %arg1[%c0_11, %c0_12, %c2, %c0_13] : memref<1x16x18x4xbf16, #tpu.memory_space<vmem>>, vector<1x14x16x4xbf16>
    %7 = vector.shape_cast %6 : vector<1x14x16x4xbf16> to vector<14x16x4xbf16>
    %c0_14 = arith.constant 0 : index
    %c0_15 = arith.constant 0 : index
    %c8 = arith.constant 8 : index
    %8 = vector.load %arg6[%c0_14, %c0_15, %c8] : memref<14x16x36xbf16, #tpu.memory_space<vmem>>, vector<14x16x4xbf16>
    tpu.vector_store %arg6[%c0_14, %c0_15, %c8], %7 {strides = array<i32>} : memref<14x16x36xbf16, #tpu.memory_space<vmem>>, vector<14x16x4xbf16>,
    %c0_16 = arith.constant 0 : index
    %c1_17 = arith.constant 1 : index
    %c0_18 = arith.constant 0 : index
    %c0_19 = arith.constant 0 : index
    %9 = vector.load %arg1[%c0_16, %c1_17, %c0_18, %c0_19] : memref<1x16x18x4xbf16, #tpu.memory_space<vmem>>, vector<1x14x16x4xbf16>
    %10 = vector.shape_cast %9 : vector<1x14x16x4xbf16> to vector<14x16x4xbf16>
    %c0_20 = arith.constant 0 : index
    %c0_21 = arith.constant 0 : index
    %c12 = arith.constant 12 : index
    %11 = vector.load %arg6[%c0_20, %c0_21, %c12] : memref<14x16x36xbf16, #tpu.memory_space<vmem>>, vector<14x16x4xbf16>
    tpu.vector_store %arg6[%c0_20, %c0_21, %c12], %10 {strides = array<i32>} : memref<14x16x36xbf16, #tpu.memory_space<vmem>>, vector<14x16x4xbf16>,
    %c0_22 = arith.constant 0 : index
    %c1_23 = arith.constant 1 : index
    %c1_24 = arith.constant 1 : index
    %c0_25 = arith.constant 0 : index
    %12 = vector.load %arg1[%c0_22, %c1_23, %c1_24, %c0_25] : memref<1x16x18x4xbf16, #tpu.memory_space<vmem>>, vector<1x14x16x4xbf16>
    %13 = vector.shape_cast %12 : vector<1x14x16x4xbf16> to vector<14x16x4xbf16>
    %c0_26 = arith.constant 0 : index
    %c0_27 = arith.constant 0 : index
    %c16 = arith.constant 16 : index
    %14 = vector.load %arg6[%c0_26, %c0_27, %c16] : memref<14x16x36xbf16, #tpu.memory_space<vmem>>, vector<14x16x4xbf16>
    tpu.vector_store %arg6[%c0_26, %c0_27, %c16], %13 {strides = array<i32>} : memref<14x16x36xbf16, #tpu.memory_space<vmem>>, vector<14x16x4xbf16>,
    %c0_28 = arith.constant 0 : index
    %c1_29 = arith.constant 1 : index
    %c2_30 = arith.constant 2 : index
    %c0_31 = arith.constant 0 : index
    %15 = vector.load %arg1[%c0_28, %c1_29, %c2_30, %c0_31] : memref<1x16x18x4xbf16, #tpu.memory_space<vmem>>, vector<1x14x16x4xbf16>
    %16 = vector.shape_cast %15 : vector<1x14x16x4xbf16> to vector<14x16x4xbf16>
    %c0_32 = arith.constant 0 : index
    %c0_33 = arith.constant 0 : index
    %c20 = arith.constant 20 : index
    %17 = vector.load %arg6[%c0_32, %c0_33, %c20] : memref<14x16x36xbf16, #tpu.memory_space<vmem>>, vector<14x16x4xbf16>
    tpu.vector_store %arg6[%c0_32, %c0_33, %c20], %16 {strides = array<i32>} : memref<14x16x36xbf16, #tpu.memory_space<vmem>>, vector<14x16x4xbf16>,
    %c0_34 = arith.constant 0 : index
    %c2_35 = arith.constant 2 : index
    %c0_36 = arith.constant 0 : index
    %c0_37 = arith.constant 0 : index
    %18 = vector.load %arg1[%c0_34, %c2_35, %c0_36, %c0_37] : memref<1x16x18x4xbf16, #tpu.memory_space<vmem>>, vector<1x14x16x4xbf16>
    %19 = vector.shape_cast %18 : vector<1x14x16x4xbf16> to vector<14x16x4xbf16>
    %c0_38 = arith.constant 0 : index
    %c0_39 = arith.constant 0 : index
    %c24 = arith.constant 24 : index
    %20 = vector.load %arg6[%c0_38, %c0_39, %c24] : memref<14x16x36xbf16, #tpu.memory_space<vmem>>, vector<14x16x4xbf16>
    tpu.vector_store %arg6[%c0_38, %c0_39, %c24], %19 {strides = array<i32>} : memref<14x16x36xbf16, #tpu.memory_space<vmem>>, vector<14x16x4xbf16>,
    %c0_40 = arith.constant 0 : index
    %c2_41 = arith.constant 2 : index
    %c1_42 = arith.constant 1 : index
    %c0_43 = arith.constant 0 : index
    %21 = vector.load %arg1[%c0_40, %c2_41, %c1_42, %c0_43] : memref<1x16x18x4xbf16, #tpu.memory_space<vmem>>, vector<1x14x16x4xbf16>
    %22 = vector.shape_cast %21 : vector<1x14x16x4xbf16> to vector<14x16x4xbf16>
    %c0_44 = arith.constant 0 : index
    %c0_45 = arith.constant 0 : index
    %c28 = arith.constant 28 : index
    %23 = vector.load %arg6[%c0_44, %c0_45, %c28] : memref<14x16x36xbf16, #tpu.memory_space<vmem>>, vector<14x16x4xbf16>
    tpu.vector_store %arg6[%c0_44, %c0_45, %c28], %22 {strides = array<i32>} : memref<14x16x36xbf16, #tpu.memory_space<vmem>>, vector<14x16x4xbf16>,
    %c0_46 = arith.constant 0 : index
    %c2_47 = arith.constant 2 : index
    %c2_48 = arith.constant 2 : index
    %c0_49 = arith.constant 0 : index
    %24 = vector.load %arg1[%c0_46, %c2_47, %c2_48, %c0_49] : memref<1x16x18x4xbf16, #tpu.memory_space<vmem>>, vector<1x14x16x4xbf16>
    %25 = vector.shape_cast %24 : vector<1x14x16x4xbf16> to vector<14x16x4xbf16>
    %c0_50 = arith.constant 0 : index
    %c0_51 = arith.constant 0 : index
    %c32 = arith.constant 32 : index
    %26 = vector.load %arg6[%c0_50, %c0_51, %c32] : memref<14x16x36xbf16, #tpu.memory_space<vmem>>, vector<14x16x4xbf16>
    tpu.vector_store %arg6[%c0_50, %c0_51, %c32], %25 {strides = array<i32>} : memref<14x16x36xbf16, #tpu.memory_space<vmem>>, vector<14x16x4xbf16>,
    %c0_52 = arith.constant 0 : index
    %c0_53 = arith.constant 0 : index
    %c0_54 = arith.constant 0 : index
    %27 = vector.load %arg6[%c0_52, %c0_53, %c0_54] : memref<14x16x36xbf16, #tpu.memory_space<vmem>>, vector<14x16x36xbf16>
    %28 = vector.shape_cast %27 : vector<14x16x36xbf16> to vector<224x36xbf16>
    %c0_55 = arith.constant 0 : index
    %c0_56 = arith.constant 0 : index
    %29 = vector.load %arg2[%c0_55, %c0_56] : memref<36x128xbf16, #tpu.memory_space<vmem>>, vector<36x128xbf16>
    %cst = arith.constant dense<0.000000e+00> : vector<224x128xf32>
    %30 = tpu.matmul %28, %29, %cst {dimension_numbers = #tpu.dot_dimension_numbers<[1], [0], [0], [1], [0, 0, 1, 1], [], []>} : vector<224x36xbf16>, vector<36x128xbf16>, vector<224x128xf32> -> vector<224x128xf32>
    %c0_57 = arith.constant 0 : index
    %c0_58 = arith.constant 0 : index
    %31 = vector.load %arg3[%c0_57, %c0_58] : memref<1x128xf32, #tpu.memory_space<vmem>>, vector<1x128xf32>
    %32 = vector.broadcast %31 : vector<1x128xf32> to vector<224x128xf32>
    %33 = arith.mulf %30, %32 : vector<224x128xf32>
    %c0_59 = arith.constant 0 : index
    %c0_60 = arith.constant 0 : index
    %34 = vector.load %arg4[%c0_59, %c0_60] : memref<1x128xf32, #tpu.memory_space<vmem>>, vector<1x128xf32>
    %35 = vector.broadcast %34 : vector<1x128xf32> to vector<224x128xf32>
    %36 = arith.addf %33, %35 : vector<224x128xf32>
    %cst_61 = arith.constant 0.000000e+00 : f32
    %37 = vector.broadcast %cst_61 : f32 to vector<224x128xf32>
    %38 = arith.maximumf %36, %37 : vector<224x128xf32>
    %39 = vector.extract_strided_slice %38 {offsets = [0, 0], sizes = [224, 8], strides = [1, 1]} : vector<224x128xf32> to vector<224x8xf32>
    %40 = vector.shape_cast %39 : vector<224x8xf32> to vector<14x16x8xf32>
    %41 = vector.extract_strided_slice %40 {offsets = [0, 0, 0], sizes = [14, 14, 8], strides = [1, 1, 1]} : vector<14x16x8xf32> to vector<14x14x8xf32>
    %c0_62 = arith.constant 0 : index
    %c0_63 = arith.constant 0 : index
    %c0_64 = arith.constant 0 : index
    %c0_65 = arith.constant 0 : index
    %42 = vector.load %arg5[%c0_62, %c0_63, %c0_64, %c0_65] : memref<1x14x14x8xf32, #tpu.memory_space<vmem>>, vector<1x14x14x8xf32>
    %43 = vector.shape_cast %42 : vector<1x14x14x8xf32> to vector<14x14x8xf32>
    %44 = vector.shape_cast %41 : vector<14x14x8xf32> to vector<1x14x14x8xf32>
    tpu.vector_store %arg5[%c0_62, %c0_63, %c0_64, %c0_65], %44 {strides = array<i32>} : memref<1x14x14x8xf32, #tpu.memory_space<vmem>>, vector<1x14x14x8xf32>,
    return
  }
  func.func @transform_0(%arg0: i32) -> (i32, i32, i32, i32) {
    %c0_i32 = arith.constant 0 : i32
    %c0_i32_0 = arith.constant 0 : i32
    %c0_i32_1 = arith.constant 0 : i32
    %c0_i32_2 = arith.constant 0 : i32
    return %arg0, %c0_i32, %c0_i32_0, %c0_i32_1 : i32, i32, i32, i32
  }
  func.func @transform_1(%arg0: i32) -> (i32, i32) {
    %c0_i32 = arith.constant 0 : i32
    %c0_i32_0 = arith.constant 0 : i32
    %c0_i32_1 = arith.constant 0 : i32
    return %c0_i32, %c0_i32_0 : i32, i32
  }
  func.func @transform_2(%arg0: i32) -> (i32, i32) {
    %c0_i32 = arith.constant 0 : i32
    %c0_i32_0 = arith.constant 0 : i32
    %c0_i32_1 = arith.constant 0 : i32
    return %c0_i32, %c0_i32_0 : i32, i32
  }
  func.func @transform_3(%arg0: i32) -> (i32, i32) {
    %c0_i32 = arith.constant 0 : i32
    %c0_i32_0 = arith.constant 0 : i32
    %c0_i32_1 = arith.constant 0 : i32
    return %c0_i32, %c0_i32_0 : i32, i32
  }
  func.func @transform_4(%arg0: i32) -> (i32, i32, i32, i32) {
    %c0_i32 = arith.constant 0 : i32
    %c0_i32_0 = arith.constant 0 : i32
    %c0_i32_1 = arith.constant 0 : i32
    %c0_i32_2 = arith.constant 0 : i32
    return %arg0, %c0_i32, %c0_i32_0, %c0_i32_1 : i32, i32, i32, i32
  }
}

</mosaic_0001>

<bundles_post_ra>
// kernel: conv2d_bn_relu.2
= control target key start
LH: loop header
LB: loop body
LE: loop exit
PB: predicated region body
PF: predicated region fallthrough
CT: control target
= control target key end

     0   :  { %s3867_s12 = smov 0   ;;  %s4541_s0 = inlined_call_operand.vmem [shape: bf16[2,16,18,4], index: 0, kind: input, shape index: {}]   ;;  %s4542_s1 = inlined_call_operand.vmem [shape: bf16[36,128], index: 1, kind: input, shape index: {}]   ;;  %s4543_s2 = inlined_call_operand.vmem [shape: f32[224,1], index: 2, kind: input, shape index: {}]   ;;  %s4544_s3 = inlined_call_operand.vmem [shape: f32[2,2,128], index: 3, kind: output, shape index: {}]  }
   0x1 LB: > { %s3078_s13 = sadd.s32 4294967295, %s3836_s12   ;;  %p3082_p0 = scmp.ge.s32.totalorder %s3836_s12, 1  ;;  %s3836_s12 = sphi %s3867_s12, %s13_s12  }
   0x2   : > { %p137_p1 = scmp.lt.s32.totalorder %s3836_s12, 3 }
   0x4   : > { %p138_p2 = pnand %p3082_p0, %p137_p1 }
   0x5   : > { %p160_p3 = scmp.lt.s32.totalorder (!%p138_p2), %s3078_s13, 1  ;;  %vm831_vm0 = vcmask (!%p138_p2), 1046528   ;;  %s3838_s18 = smov (!%p138_p2), 12   ;;  %vm451_vm1 = vsmask.f32 (!%p138_p2), 7424  ;;  %vm282_vm2 = vcmask (!%p138_p2), 31744  }
   0x6   : > { %141 = sbr.rel (%p138_p2) target bundleno = 602 (0x25a), region = 32  ;;  %s3839_s19 = smov (!%p138_p2), 20   ;;  %vm662_vm3 = vcmask (!%p138_p2), 64544   ;;  %vm916_vm4 = vcmask (!%p138_p2), 97344   ;;  %vm1072_vm5 = vcmask (!%p138_p2), 130144   ;;  %vm1451_vm6 = vcmask (!%p138_p2), 162944  }
   0x7   : > { %s3840_s20 = smov (!%p138_p2), 8   ;;  %s3841_s21 = smov (!%p138_p2), 4   ;;  %vm1704_vm7 = vcmask (!%p138_p2), 195744   ;;  %vm1860_vm8 = vcmask (!%p138_p2), 228544   ;;  %vm2239_vm9 = vcmask (!%p138_p2), 261344   ;;  %vm2492_vm10 = vcmask (!%p138_p2), 294144  }
   0x8   : > { %s3842_s22 = smov (!%p138_p2), 16   ;;  %s3843_s23 = smov (!%p138_p2), 24   ;;  %vm2584_vm11 = vcmask (!%p138_p2), 1041408   ;;  %vm2541_vm12 = vcmask (!%p138_p2), 293888  }
   0x9   : > { %s3844_s24 = smov (!%p138_p2), 28   ;;  %s3845_s25 = smov (!%p138_p2), 32  }
   0xd   : > { %s4546_s13 = smov (!%p160_p3, %s3078_s13), 1 }
   0xe   : > { %s3597_s14 = smul.u32 192, %s4546_s13  ;;  %s3084_s11 = sshll.u32 %s4546_s13, 1 }
   0xf   : > { %s168_s16 = scalar_lea.vmem %s4544_s3, %s3084_s11 }
  0x10   : > { %s3881_s17 = scalar_lea.vmem %s4541_s0, %s3597_s14 }
  0x11   : > { %v3617_v0 = vld [vmem:[%s3881_s17 + $0x18] sm:$0xff]   ;;  %v3618_v1 = vld [vmem:[%s3881_s17 + $0xc] sm:$0xff]   ;;  %v3620_v3 = vld [vmem:[%s3881_s17 + $0x14] ss:$0 sps:$4 sm:$0x11]  }
  0x12   : > { %1032 = vrot.lane.b32.xlu1 %v3617_v0, %s3838_s18  ;;  %1030 = vrot.lane.b32.xlu0 %v3618_v1, %s3838_s18  ;;  %v3619_v2 = vld [vmem:[%s3881_s17 + $0xc] sm:$0xfe]   ;;  %v3625_v4 = vld [vmem:[%s3881_s17] sm:$0xff]   ;;  %v1621_v6 = vrot.slane %v3620_v3, 1 }
  0x13   : > { %v1620_v5 = vrot.slane %v3619_v2, 1  ;;  %v3621_v7 = vld [vmem:[%s3881_s17] sm:$0xfe]   ;;  %v3622_v8 = vld [vmem:[%s3881_s17 + $0x8] ss:$0 sps:$4 sm:$0x11]  }
  0x14   : > { %v453_v9 = vshrl.u32 %v3625_v4, 16  ;;  %v832_v11 = vrot.slane %v3621_v7, 1  ;;  %v3623_v12 = vld [vmem:[%s3881_s17 + $0xc] sm:$0xfe]   ;;  %v455_v13 = vshll.u32 %v3625_v4, 16  ;;  %v833_v14 = vrot.slane %v3622_v8, 1 }
  0x15   : > { %v1622_v10 = vsel %vm831_vm0, %v1620_v5, %v1621_v6  ;;  %v3624_v15 = vld [vmem:[%s3881_s17 + $0x14] ss:$0 sps:$4 sm:$0x11]   ;;  %v835_v16 = vrot.slane %v3623_v12, 1  ;;  %v3627_v21 = vld [vmem:[%s3881_s17 + $0x18] sm:$0xfe]  }
  0x16   : > { %1662 = vrot.lane.b32.xlu0 %v1622_v10, %s3839_s19  ;;  %v457_v17 = vrot.slane %v455_v13, 1  ;;  %v834_v18 = vsel %vm831_vm0, %v832_v11, %v833_v14  ;;  %v836_v19 = vrot.slane %v3624_v15, 1  ;;  %v3626_v20 = vld [vmem:[%s3881_s17 + $0x8] ss:$0 sps:$4 sm:$0x11]   ;;  %v1623_v26 = vrot.slane %v3627_v21, 1 }
  0x17   : > { %874 = vrot.lane.b32.xlu1 %v834_v18, %s3840_s20  ;;  %v460_v24 = vshll.u32 %v3626_v20, 16  ;;  %v3628_v25 = vld [vmem:[%s3881_s17 + $0x20] ss:$0 sps:$4 sm:$0x11]   ;;  %v3629_v27 = vld [vmem:[%s3881_s17 + $0xc] sm:$0xff]   ;;  %v3631_v31 = vld [vmem:[%s3881_s17 + $0x18] sm:$0xff]  }
  0x18   : > { %v837_v22 = vsel %vm831_vm0, %v835_v16, %v836_v19  ;;  %v458_v23 = vor.u32 %v457_v17, %v453_v9  ;;  %v1624_v29 = vrot.slane %v3628_v25, 1  ;;  %v3630_v30 = vld [vmem:[%s3881_s17 + $0x14] ss:$0 sps:$4 sm:$0x11]   ;;  %v465_v32 = vshrl.u32 %v3629_v27, 16  ;;  %v3633_v41 = vld [vmem:[%s3881_s17 + $0xc] sm:$0xff]  }
  0x19   : > { %v462_v28 = vrot.slane %v460_v24, 1  ;;  %v467_v33 = vshll.u32 %v3629_v27, 16  ;;  %v472_v36 = vshll.u32 %v3630_v30, 16  ;;  %v3632_v37 = vld [vmem:[%s3881_s17 + $0x20] ss:$0 sps:$4 sm:$0x11]  }
  0x1a   : > { %v1625_v35 = vsel %vm831_vm0, %v1623_v26, %v1624_v29  ;;  %v1254_v39 = vshrl.u32 %v3631_v31, 16  ;;  %v1256_v40 = vshll.u32 %v3631_v31, 16  ;;  %v1261_v43 = vshll.u32 %v3632_v37, 16  ;;  %v3634_v46 = vld [vmem:[%s3881_s17 + $0x14] ss:$0 sps:$4 sm:$0x11]  }
  0x1b   : > { %876 = vrot.lane.b32.xlu1 %v837_v22, %s3840_s20  ;;  %v463_v34 = vsel %vm451_vm1, %v458_v23, %v462_v28  ;;  %v469_v38 = vrot.slane %v467_v33, 1  ;;  %v474_v42 = vrot.slane %v472_v36, 1  ;;  %v1242_v47 = vshrl.u32 %v3633_v41, 16  ;;  %v3636_v54 = vld [vmem:[%s3881_s17 + $0x24] sm:$0xff]   ;;  %v3637_v58 = vld [vmem:[%s3881_s17 + $0x18] sm:$0xff]  }
  0x1c   : > { %620 = vrot.lane.b32.xlu0 %v463_v34, %s3841_s21  ;;  %v1258_v45 = vrot.slane %v1256_v40, 1  ;;  %v1244_v48 = vshll.u32 %v3633_v41, 16  ;;  %v1263_v49 = vrot.slane %v1261_v43, 1  ;;  %v1249_v53 = vshll.u32 %v3634_v46, 16  ;;  %v3635_v59 = vld [vmem:[%s3881_s17 + $0x18] sm:$0xff]   ;;  %v3639_v61 = vld [vmem:[%s3881_s17 + $0x24] sm:$0xff]  }
  0x1d   : > { %v470_v44 = vor.u32 %v469_v38, %v465_v32  ;;  %v3638_v60 = vld [vmem:[%s3881_s17 + $0x20] ss:$0 sps:$4 sm:$0x11]   ;;  %v2030_v63 = vshrl.u32 %v3637_v58, 16  ;;  %v2032_v0 = vshll.u32 %v3637_v58, 16  ;;  %v2042_v3 = vshrl.u32 %v3639_v61, 16 }
  0x1e   : > { %v1259_v51 = vor.u32 %v1258_v45, %v1254_v39  ;;  %v1246_v52 = vrot.slane %v1244_v48, 1  ;;  %v1251_v57 = vrot.slane %v1249_v53, 1  ;;  %v2037_v1 = vshll.u32 %v3638_v60, 16  ;;  %v3640_v2 = vld [vmem:[%s3881_s17 + $0x2c] ss:$0 sps:$4 sm:$0x11]  }
  0x1f   : > { %1664 = vrot.lane.b32.xlu1 %v1625_v35, %s3839_s19  ;;  %v475_v50 = vsel %vm451_vm1, %v470_v44, %v474_v42  ;;  %v2044_v4 = vshll.u32 %v3639_v61, 16  ;;  %v2034_v5 = vrot.slane %v2032_v0, 1  ;;  %v3643_v6 = vld [vmem:[%s3881_s17 + $0x18] sm:$0xff]   ;;  %v2049_v9 = vshll.u32 %v3640_v2, 16  ;;  %v3647_v11 = vld [vmem:[%s3881_s17 + $0x24] sm:$0xff]   ;;  %v3654_v58 = vld [vmem:[%s3881_s17 + $0x30] sm:$0xff]  }
  0x20   : > { %622 = vrot.lane.b32.xlu0 %v475_v50, %s3841_s21  ;;  %v1264_v55 = vsel %vm451_vm1, %v1259_v51, %v1263_v49  ;;  %v1247_v56 = vor.u32 %v1246_v52, %v1242_v47  ;;  %v2039_v7 = vrot.slane %v2037_v1, 1  ;;  %v3641_v10 = vld [vmem:[%s3881_s17 + $0x18] sm:$0xfe]   ;;  %v3642_v13 = vld [vmem:[%s3881_s17 + $0x20] ss:$0 sps:$4 sm:$0x11]  }
  0x21   : > { %v2046_v8 = vrot.slane %v2044_v4, 1  ;;  %v2035_v12 = vor.u32 %v2034_v5, %v2030_v63  ;;  %v477_v14 = vshrl.u32 %v3643_v6, 16  ;;  %v2051_v16 = vrot.slane %v2049_v9, 1  ;;  %v3644_v20 = vld [vmem:[%s3881_s17 + $0x20] ss:$0 sps:$4 sm:$0x11]  }
  0x22   : > { %v1252_v62 = vsel %vm451_vm1, %v1247_v56, %v1251_v57  ;;  %v2408_v17 = vrot.slane %v3641_v10, 1  ;;  %v2409_v19 = vrot.slane %v3642_v13, 1  ;;  %v479_v21 = vshll.u32 %v3643_v6, 16  ;;  %v3645_v26 = vld [vmem:[%s3881_s17 + $0x24] sm:$0xfe]   ;;  %v3657_v50 = vld [vmem:[%s3881_s17 + $0x30] sm:$0xff]  }
  0x23   : > { %1411 = vrot.lane.b32.xlu1 %v1264_v55, %s3842_s22  ;;  %v2047_v15 = vor.u32 %v2046_v8, %v2042_v3  ;;  %v2040_v18 = vsel %vm451_vm1, %v2035_v12, %v2039_v7  ;;  %v489_v22 = vshrl.u32 %v3647_v11, 16  ;;  %v484_v25 = vshll.u32 %v3644_v20, 16  ;;  %v3646_v27 = vld [vmem:[%s3881_s17 + $0x2c] ss:$0 sps:$4 sm:$0x11]   ;;  %v3655_v47 = vld [vmem:[%s3881_s17 + $0x24] sm:$0xff]  }
  0x24   : > { %1409 = vrot.lane.b32.xlu0 %v1252_v62, %s3842_s22  ;;  %v481_v24 = vrot.slane %v479_v21, 1  ;;  %v491_v28 = vshll.u32 %v3647_v11, 16  ;;  %v2410_v29 = vsel %vm831_vm0, %v2408_v17, %v2409_v19  ;;  %v2411_v32 = vrot.slane %v3645_v26, 1  ;;  %v3648_v34 = vld [vmem:[%s3881_s17 + $0x2c] ss:$0 sps:$4 sm:$0x11]  }
  0x25   : > { %v2052_v23 = vsel %vm451_vm1, %v2047_v15, %v2051_v16  ;;  %v486_v31 = vrot.slane %v484_v25, 1  ;;  %v2412_v33 = vrot.slane %v3646_v27, 1  ;;  %v3649_v37 = vld [vmem:[%s3881_s17 + $0x18] sm:$0xfe]   ;;  %v496_v39 = vshll.u32 %v3648_v34, 16  ;;  %v3665_v16 = vld [vmem:[%s3881_s17 + $0x30] sm:$0xff]  }
  0x26   : > { %v482_v30 = vor.u32 %v481_v24, %v477_v14  ;;  %v493_v35 = vrot.slane %v491_v28, 1  ;;  %v3650_v40 = vld [vmem:[%s3881_s17 + $0x20] ss:$0 sps:$4 sm:$0x11]   ;;  %v838_v42 = vrot.slane %v3649_v37, 1  ;;  %v1266_v53 = vshrl.u32 %v3655_v47, 16 }
  0x27   : > { %1820 = vrot.lane.b32.xlu1 %v3636_v54, %s3843_s23  ;;  %v2413_v41 = vsel %vm831_vm0, %v2411_v32, %v2412_v33  ;;  %v498_v43 = vrot.slane %v496_v39, 1  ;;  %v839_v44 = vrot.slane %v3650_v40, 1  ;;  %v3651_v45 = vld [vmem:[%s3881_s17 + $0x24] sm:$0xfe]   ;;  %v1268_v56 = vshll.u32 %v3655_v47, 16  ;;  %v3667_v21 = vld [vmem:[%s3881_s17 + $0x3c] sm:$0xff]  }
  0x28   : > { %1818 = vrot.lane.b32.xlu0 %v3635_v59, %s3843_s23  ;;  %v487_v36 = vsel %vm451_vm1, %v482_v30, %v486_v31  ;;  %v494_v38 = vor.u32 %v493_v35, %v489_v22  ;;  %v3652_v46 = vld [vmem:[%s3881_s17 + $0x2c] ss:$0 sps:$4 sm:$0x11]   ;;  %v841_v49 = vrot.slane %v3651_v45, 1  ;;  %v3653_v54 = vld [vmem:[%s3881_s17 + $0x24] sm:$0xff]   ;;  %v1278_v62 = vshrl.u32 %v3657_v50, 16 }
  0x29   : > { %v840_v51 = vsel %vm831_vm0, %v838_v42, %v839_v44  ;;  %v842_v52 = vrot.slane %v3652_v46, 1  ;;  %v3656_v55 = vld [vmem:[%s3881_s17 + $0x2c] ss:$0 sps:$4 sm:$0x11]   ;;  %v1270_v59 = vrot.slane %v1268_v56, 1  ;;  %v1280_v63 = vshll.u32 %v3657_v50, 16 }
  0x2a   : > { %v499_v48 = vsel %vm451_vm1, %v494_v38, %v498_v43  ;;  %v1273_v60 = vshll.u32 %v3656_v55, 16  ;;  %v3658_v61 = vld [vmem:[%s3881_s17 + $0x38] ss:$0 sps:$4 sm:$0x11]   ;;  %v3659_v3 = vld [vmem:[%s3881_s17 + $0x24] sm:$0xfe]  }
  0x2b   : > { %2199 = vrot.lane.b32.xlu1 %v2052_v23, %s3844_s24  ;;  %v843_v57 = vsel %vm831_vm0, %v841_v49, %v842_v52  ;;  %v1271_v0 = vor.u32 %v1270_v59, %v1266_v53  ;;  %v1285_v2 = vshll.u32 %v3658_v61, 16  ;;  %v1282_v4 = vrot.slane %v1280_v63, 1  ;;  %v3660_v5 = vld [vmem:[%s3881_s17 + $0x2c] ss:$0 sps:$4 sm:$0x11]   ;;  %v3663_v23 = vld [vmem:[%s3881_s17 + $0x30] sm:$0xff]  }
  0x2c   : > { %2197 = vrot.lane.b32.xlu0 %v2040_v18, %s3844_s24  ;;  %v1275_v1 = vrot.slane %v1273_v60, 1  ;;  %v1626_v7 = vrot.slane %v3659_v3, 1  ;;  %v1627_v10 = vrot.slane %v3660_v5, 1  ;;  %v3661_v11 = vld [vmem:[%s3881_s17 + $0x30] sm:$0xfe]   ;;  %v2054_v19 = vshrl.u32 %v3665_v16, 16 }
  0x2d   : > { %v1287_v6 = vrot.slane %v1285_v2, 1  ;;  %v1283_v9 = vor.u32 %v1282_v4, %v1278_v62  ;;  %v3662_v12 = vld [vmem:[%s3881_s17 + $0x38] ss:$0 sps:$4 sm:$0x11]   ;;  %v1629_v14 = vrot.slane %v3661_v11, 1  ;;  %v2056_v20 = vshll.u32 %v3665_v16, 16 }
  0x2e   : > { %v1276_v8 = vsel %vm451_vm1, %v1271_v0, %v1275_v1  ;;  %v1630_v15 = vrot.slane %v3662_v12, 1  ;;  %v1628_v17 = vsel %vm831_vm0, %v1626_v7, %v1627_v10  ;;  %v3666_v18 = vld [vmem:[%s3881_s17 + $0x38] ss:$0 sps:$4 sm:$0x11]   ;;  %v3664_v24 = vld [vmem:[%s3881_s17 + $0x3c] sm:$0xff]   ;;  %v2066_v28 = vshrl.u32 %v3667_v21, 16 }
  0x2f   : > { %624 = vrot.lane.b32.xlu1 %v487_v36, %s3841_s21  ;;  %v1288_v13 = vsel %vm451_vm1, %v1283_v9, %v1287_v6  ;;  %v2058_v25 = vrot.slane %v2056_v20, 1  ;;  %v2061_v26 = vshll.u32 %v3666_v18, 16  ;;  %v3668_v27 = vld [vmem:[%s3881_s17 + $0x44] ss:$0 sps:$4 sm:$0x11]   ;;  %v3671_v30 = vld [vmem:[%s3881_s17 + $0x30] sm:$0xff]  }
  0x30   : > { %2450 = vrot.lane.b32.xlu0 %v2410_v29, %s3845_s25  ;;  %v1631_v22 = vsel %vm831_vm0, %v1629_v14, %v1630_v15  ;;  %v2068_v29 = vshll.u32 %v3667_v21, 16  ;;  %v2073_v33 = vshll.u32 %v3668_v27, 16  ;;  %v3669_v34 = vld [vmem:[%s3881_s17 + $0x30] sm:$0xfe]   ;;  %v501_v42 = vshrl.u32 %v3671_v30, 16  ;;  %v3675_v50 = vld [vmem:[%s3881_s17 + $0x3c] sm:$0xff]  }
  0x31   : > { %v2059_v31 = vor.u32 %v2058_v25, %v2054_v19  ;;  %v2063_v32 = vrot.slane %v2061_v26, 1  ;;  %v3670_v36 = vld [vmem:[%s3881_s17 + $0x38] ss:$0 sps:$4 sm:$0x11]   ;;  %v2414_v38 = vrot.slane %v3669_v34, 1  ;;  %v503_v43 = vshll.u32 %v3671_v30, 16 }
  0x32   : > { %v2070_v35 = vrot.slane %v2068_v29, 1  ;;  %v2075_v37 = vrot.slane %v2073_v33, 1  ;;  %v2415_v40 = vrot.slane %v3670_v36, 1  ;;  %v3674_v49 = vld [vmem:[%s3881_s17 + $0x44] ss:$0 sps:$4 sm:$0x11]  }
  0x33   : > { %626 = vrot.lane.b32.xlu1 %v499_v48, %s3841_s21  ;;  %v2064_v44 = vsel %vm451_vm1, %v2059_v31, %v2063_v32  ;;  %v505_v46 = vrot.slane %v503_v43, 1  ;;  %v3673_v48 = vld [vmem:[%s3881_s17 + $0x3c] sm:$0xfe]   ;;  %v2418_v55 = vrot.slane %v3674_v49, 1  ;;  %v3677_v60 = vld [vmem:[%s3881_s17 + $0x30] sm:$0xfe]  }
  0x34   : > { %2452 = vrot.lane.b32.xlu0 %v2413_v41, %s3845_s25  ;;  %v2071_v39 = vor.u32 %v2070_v35, %v2066_v28  ;;  %v3672_v41 = vld [vmem:[%s3881_s17 + $0x38] ss:$0 sps:$4 sm:$0x11]   ;;  %v2417_v53 = vrot.slane %v3673_v48, 1  ;;  %v844_v0 = vrot.slane %v3677_v60, 1  ;;  %v3683_v7 = vld [vmem:[%s3881_s17 + $0x3c] sm:$0xff]  }
  0x35   : > { %v508_v47 = vshll.u32 %v3672_v41, 16  ;;  %v3676_v56 = vld [vmem:[%s3881_s17 + $0x44] ss:$0 sps:$4 sm:$0x11]   ;;  %v3679_v5 = vld [vmem:[%s3881_s17 + $0x3c] sm:$0xfe]  }
  0x36   : > { %v2076_v45 = vsel %vm451_vm1, %v2071_v39, %v2075_v37  ;;  %v520_v62 = vshll.u32 %v3676_v56, 16  ;;  %v3678_v63 = vld [vmem:[%s3881_s17 + $0x38] ss:$0 sps:$4 sm:$0x11]   ;;  %v2419_v1 = vsel %vm831_vm0, %v2417_v53, %v2418_v55  ;;  %v847_v9 = vrot.slane %v3679_v5, 1  ;;  %v3685_v10 = vld [vmem:[%s3881_s17 + $0x48] sm:$0xff]  }
  0x37   : > { %880 = vrot.lane.b32.xlu1 %v843_v57, %s3840_s20  ;;  %v510_v52 = vrot.slane %v508_v47, 1  ;;  %v513_v57 = vshrl.u32 %v3675_v50, 16  ;;  %v845_v4 = vrot.slane %v3678_v63, 1  ;;  %v3680_v6 = vld [vmem:[%s3881_s17 + $0x44] ss:$0 sps:$4 sm:$0x11]  }
  0x38   : > { %878 = vrot.lane.b32.xlu0 %v840_v51, %s3840_s20  ;;  %v506_v51 = vor.u32 %v505_v46, %v501_v42  ;;  %v522_v3 = vrot.slane %v520_v62, 1  ;;  %v848_v11 = vrot.slane %v3680_v6, 1  ;;  %v1290_v12 = vshrl.u32 %v3683_v7, 16  ;;  %v3681_v19 = vld [vmem:[%s3881_s17 + $0x3c] sm:$0xff]   ;;  %v3682_v21 = vld [vmem:[%s3881_s17 + $0x48] sm:$0xff]   ;;  %v3695_v48 = vld [vmem:[%s3881_s17 + $0x54] sm:$0xff]  }
  0x39   : > { %v1292_v14 = vshll.u32 %v3683_v7, 16  ;;  %v1302_v15 = vshrl.u32 %v3685_v10, 16  ;;  %v1304_v18 = vshll.u32 %v3685_v10, 16  ;;  %v3687_v29 = vld [vmem:[%s3881_s17 + $0x3c] sm:$0xfe]   ;;  %v3693_v31 = vld [vmem:[%s3881_s17 + $0x48] sm:$0xff]  }
  0x3a   : > { %v511_v59 = vsel %vm451_vm1, %v506_v51, %v510_v52  ;;  %v849_v16 = vsel %vm831_vm0, %v847_v9, %v848_v11  ;;  %v3688_v30 = vld [vmem:[%s3881_s17 + $0x44] ss:$0 sps:$4 sm:$0x11]   ;;  %v1632_v33 = vrot.slane %v3687_v29, 1  ;;  %v3689_v34 = vld [vmem:[%s3881_s17 + $0x48] sm:$0xfe]  }
  0x3b   : > { %1036 = vrot.lane.b32.xlu1 %v3654_v58, %s3838_s18  ;;  %v515_v58 = vshll.u32 %v3675_v50, 16  ;;  %v1294_v20 = vrot.slane %v1292_v14, 1  ;;  %v1633_v36 = vrot.slane %v3688_v30, 1  ;;  %v3690_v37 = vld [vmem:[%s3881_s17 + $0x50] ss:$0 sps:$4 sm:$0x11]  }
  0x3c   : > { %1034 = vrot.lane.b32.xlu0 %v3653_v54, %s3838_s18  ;;  %v2416_v54 = vsel %vm831_vm0, %v2414_v38, %v2415_v40  ;;  %v1635_v39 = vrot.slane %v3689_v34, 1  ;;  %v2078_v40 = vshrl.u32 %v3693_v31, 16  ;;  %v1636_v41 = vrot.slane %v3690_v37, 1  ;;  %v3691_v47 = vld [vmem:[%s3881_s17 + $0x48] sm:$0xff]   ;;  %v3692_v50 = vld [vmem:[%s3881_s17 + $0x54] sm:$0xff]  }
  0x3d   : > { %v517_v61 = vrot.slane %v515_v58, 1  ;;  %v1295_v25 = vor.u32 %v1294_v20, %v1290_v12  ;;  %v2080_v42 = vshll.u32 %v3693_v31, 16  ;;  %v1634_v43 = vsel %vm831_vm0, %v1632_v33, %v1633_v36  ;;  %v3696_v49 = vld [vmem:[%s3881_s17 + $0x5c] ss:$0 sps:$4 sm:$0x11]   ;;  %v3699_v55 = vld [vmem:[%s3881_s17 + $0x48] sm:$0xff]  }
  0x3e   : > { %v1637_v46 = vsel %vm831_vm0, %v1635_v39, %v1636_v41  ;;  %v2090_v52 = vshrl.u32 %v3695_v48, 16  ;;  %v2092_v53 = vshll.u32 %v3695_v48, 16  ;;  %v3697_v58 = vld [vmem:[%s3881_s17 + $0x48] sm:$0xfe]   ;;  %v3701_v6 = vld [vmem:[%s3881_s17 + $0x54] sm:$0xfe]  }
  0x3f   : > { %1415 = vrot.lane.b32.xlu1 %v1288_v13, %s3842_s22  ;;  %v518_v2 = vor.u32 %v517_v61, %v513_v57  ;;  %v846_v13 = vsel %vm831_vm0, %v844_v0, %v845_v4  ;;  %v2420_v62 = vrot.slane %v3697_v58, 1  ;;  %v525_v0 = vshrl.u32 %v3699_v55, 16  ;;  %v3702_v10 = vld [vmem:[%s3881_s17 + $0x5c] ss:$0 sps:$4 sm:$0x11]   ;;  %v3711_v31 = vld [vmem:[%s3881_s17 + $0x54] sm:$0xff]  }
  0x40   : > { %1413 = vrot.lane.b32.xlu0 %v1276_v8, %s3842_s22  ;;  %v2094_v60 = vrot.slane %v2092_v53, 1  ;;  %v527_v4 = vshll.u32 %v3699_v55, 16  ;;  %v2423_v12 = vrot.slane %v3701_v6, 1  ;;  %v3708_v30 = vld [vmem:[%s3881_s17 + $0x5c] ss:$0 sps:$4 sm:$0x11]  }
  0x41   : > { %v523_v8 = vsel %vm451_vm1, %v518_v2, %v522_v3  ;;  %v3700_v3 = vld [vmem:[%s3881_s17 + $0x50] ss:$0 sps:$4 sm:$0x11]   ;;  %v3713_v33 = vld [vmem:[%s3881_s17 + $0x60] sm:$0xff]   ;;  %v1314_v36 = vshrl.u32 %v3711_v31, 16  ;;  %v1316_v39 = vshll.u32 %v3711_v31, 16 }
  0x42   : > { %v2095_v2 = vor.u32 %v2094_v60, %v2090_v52  ;;  %v532_v9 = vshll.u32 %v3700_v3, 16  ;;  %v1326_v41 = vshrl.u32 %v3713_v33, 16  ;;  %v3715_v52 = vld [vmem:[%s3881_s17 + $0x54] sm:$0xfe]   ;;  %v3721_v55 = vld [vmem:[%s3881_s17 + $0x60] sm:$0xff]   ;;  %v3723_v3 = vld [vmem:[%s3881_s17 + $0x6c] sm:$0xff]  }
  0x43   : > { %1668 = vrot.lane.b32.xlu1 %v1631_v22, %s3839_s19  ;;  %v3718_v60 = vld [vmem:[%s3881_s17 + $0x68] ss:$0 sps:$4 sm:$0x11]  }
  0x44   : > { %1666 = vrot.lane.b32.xlu0 %v1628_v17, %s3839_s19  ;;  %v3684_v17 = vld [vmem:[%s3881_s17 + $0x44] ss:$0 sps:$4 sm:$0x11]   ;;  %v3729_v31 = vld [vmem:[%s3881_s17 + $0x68] ss:$0 sps:$4 sm:$0x11]  }
  0x45   : > { %v1297_v22 = vshll.u32 %v3684_v17, 16 }
  0x47   : > { %1824 = vrot.lane.b32.xlu1 %v3664_v24, %s3843_s23  ;;  %v1306_v24 = vrot.slane %v1304_v18, 1  ;;  %v1299_v26 = vrot.slane %v1297_v22, 1  ;;  %v3704_v18 = vld [vmem:[%s3881_s17 + $0x5c] ss:$0 sps:$4 sm:$0x11]  }
  0x48   : > { %1822 = vrot.lane.b32.xlu0 %v3663_v23, %s3843_s23  ;;  %v3686_v23 = vld [vmem:[%s3881_s17 + $0x50] ss:$0 sps:$4 sm:$0x11]  }
  0x49   : > { %v1307_v27 = vor.u32 %v1306_v24, %v1302_v15  ;;  %v1309_v28 = vshll.u32 %v3686_v23, 16  ;;  %v1300_v35 = vsel %vm451_vm1, %v1295_v25, %v1299_v26  ;;  %v534_v15 = vrot.slane %v532_v9, 1  ;;  %v3706_v24 = vld [vmem:[%s3881_s17 + $0x50] ss:$0 sps:$4 sm:$0x11]  }
  0x4a   : > { %v544_v23 = vshll.u32 %v3704_v18, 16  ;;  %v3707_v26 = vld [vmem:[%s3881_s17 + $0x54] sm:$0xfe]   ;;  %v851_v29 = vrot.slane %v3706_v24, 1 }
  0x4b   : > { %2203 = vrot.lane.b32.xlu1 %v2076_v45, %s3844_s24  ;;  %v1311_v32 = vrot.slane %v1309_v28, 1  ;;  %v2082_v45 = vrot.slane %v2080_v42, 1  ;;  %v1328_v42 = vshll.u32 %v3713_v33, 16  ;;  %v3730_v33 = vld [vmem:[%s3881_s17 + $0xc] sm:$0xff]  }
  0x4c   : > { %2201 = vrot.lane.b32.xlu0 %v2064_v44, %s3844_s24  ;;  %v3694_v44 = vld [vmem:[%s3881_s17 + $0x50] ss:$0 sps:$4 sm:$0x11]   ;;  %v546_v28 = vrot.slane %v544_v23, 1  ;;  %284 = vst.msk [vmem:[#allocation2 + $0x8] sm:$0xff] %vm282_vm2, %v3730_v33 }
  0x4d   : > { %v1312_v38 = vsel %vm451_vm1, %v1307_v27, %v1311_v32  ;;  %v2085_v51 = vshll.u32 %v3694_v44, 16  ;;  %v2083_v56 = vor.u32 %v2082_v45, %v2078_v40  ;;  %v853_v32 = vrot.slane %v3707_v26, 1 }
  0x4e   : > { %v1318_v44 = vrot.slane %v1316_v39, 1  ;;  %v1330_v48 = vrot.slane %v1328_v42, 1  ;;  %v3731_v39 = vld [vmem:[%s3881_s17 + $0x6c] sm:$0xfe]  }
  0x4f   : > { %628 = vrot.lane.b32.xlu1 %v511_v59, %s3841_s21  ;;  %v2087_v57 = vrot.slane %v2085_v51, 1  ;;  %v3698_v59 = vld [vmem:[%s3881_s17 + $0x50] ss:$0 sps:$4 sm:$0x11]  }
  0x50   : > { %2454 = vrot.lane.b32.xlu0 %v2416_v54, %s3845_s25  ;;  %v2097_v54 = vshll.u32 %v3696_v49, 16  ;;  %v2421_v63 = vrot.slane %v3698_v59, 1  ;;  %v1319_v49 = vor.u32 %v1318_v44, %v1314_v36  ;;  %v1331_v53 = vor.u32 %v1330_v48, %v1326_v41  ;;  %v3717_v59 = vld [vmem:[%s3881_s17 + $0x60] sm:$0xfe]   ;;  %v3733_v41 = vld [vmem:[%s3881_s17 + $0x6c] sm:$0xff]  }
  0x51   : > { %v2088_v5 = vsel %vm451_vm1, %v2083_v56, %v2087_v57  ;;  %v1638_v57 = vrot.slane %v3715_v52, 1  ;;  %v561_v48 = vshrl.u32 %v3733_v41, 16 }
  0x52   : > { %v2099_v61 = vrot.slane %v2097_v54, 1  ;;  %v2422_v17 = vsel %vm831_vm0, %v2420_v62, %v2421_v63  ;;  %v3716_v54 = vld [vmem:[%s3881_s17 + $0x5c] ss:$0 sps:$4 sm:$0x11]   ;;  %v1641_v63 = vrot.slane %v3717_v59, 1 }
  0x53   : > { %630 = vrot.lane.b32.xlu1 %v523_v8, %s3841_s21  ;;  %v529_v8 = vrot.slane %v527_v4, 1  ;;  %v1639_v58 = vrot.slane %v3716_v54, 1 }
  0x54   : > { %2456 = vrot.lane.b32.xlu0 %v2419_v1, %s3845_s25  ;;  %v3703_v1 = vld [vmem:[%s3881_s17 + $0x54] sm:$0xff]   ;;  %v2100_v7 = vsel %vm451_vm1, %v2095_v2, %v2099_v61  ;;  %v3722_v2 = vld [vmem:[%s3881_s17 + $0x68] ss:$0 sps:$4 sm:$0x11]  }
  0x55   : > { %v537_v11 = vshrl.u32 %v3703_v1, 16  ;;  %v530_v14 = vor.u32 %v529_v8, %v525_v0  ;;  %v1642_v0 = vrot.slane %v3718_v60, 1  ;;  %v1640_v4 = vsel %vm831_vm0, %v1638_v57, %v1639_v58 }
  0x57   : > { %884 = vrot.lane.b32.xlu1 %v849_v16, %s3840_s20  ;;  %v2424_v16 = vrot.slane %v3702_v10, 1  ;;  %v535_v20 = vsel %vm451_vm1, %v530_v14, %v534_v15  ;;  %v1643_v9 = vsel %vm831_vm0, %v1641_v63, %v1642_v0  ;;  %v3719_v10 = vld [vmem:[%s3881_s17 + $0x60] sm:$0xff]   ;;  %v2116_v14 = vshll.u32 %v3723_v3, 16  ;;  %v3720_v15 = vld [vmem:[%s3881_s17 + $0x6c] sm:$0xff]  }
  0x58   : > { %882 = vrot.lane.b32.xlu0 %v846_v13, %s3840_s20  ;;  %v539_v13 = vshll.u32 %v3703_v1, 16  ;;  %v2104_v1 = vshll.u32 %v3721_v55, 16  ;;  %v3737_v63 = vld [vmem:[%s3881_s17 + $0x6c] sm:$0xfe]  }
  0x59   : > { %v2425_v27 = vsel %vm831_vm0, %v2423_v12, %v2424_v16  ;;  %v3724_v12 = vld [vmem:[%s3881_s17 + $0x74] ss:$0 sps:$4 sm:$0x11]   ;;  %v3725_v16 = vld [vmem:[%s3881_s17] sm:$0xff]   ;;  %v2118_v18 = vrot.slane %v2116_v14, 1 }
  0x5a   : > { %v2106_v8 = vrot.slane %v2104_v1, 1  ;;  %283 = vst.msk [vmem:[#allocation2] sm:$0xff] %vm282_vm2, %v3725_v16  ;;  %v3738_v0 = vld [vmem:[%s3881_s17 + $0x74] ss:$0 sps:$4 sm:$0x11]  }
  0x5b   : > { %1040 = vrot.lane.b32.xlu1 %v3682_v21, %s3838_s18  ;;  %v3705_v21 = vld [vmem:[%s3881_s17 + $0x48] sm:$0xfe]  }
  0x5c   : > { %1038 = vrot.lane.b32.xlu0 %v3681_v19, %s3838_s18  ;;  %v541_v19 = vrot.slane %v539_v13, 1  ;;  %v850_v25 = vrot.slane %v3705_v21, 1  ;;  %v2114_v13 = vshrl.u32 %v3723_v3, 16  ;;  %v859_v3 = vrot.slane %v3737_v63, 1  ;;  %v3762_v63 = vld [vmem:[%s3881_s17 + $0x78] sm:$0xff]  }
  0x5e   : > { %v542_v22 = vor.u32 %v541_v19, %v537_v11  ;;  %v852_v37 = vsel %vm831_vm0, %v850_v25, %v851_v29  ;;  %v2109_v11 = vshll.u32 %v3722_v2, 16  ;;  %v2121_v19 = vshll.u32 %v3724_v12, 16  ;;  %v3727_v25 = vld [vmem:[%s3881_s17 + $0x68] ss:$0 sps:$4 sm:$0x11]  }
  0x5f   : > { %1419 = vrot.lane.b32.xlu1 %v1312_v38, %s3842_s22  ;;  %v3712_v38 = vld [vmem:[%s3881_s17 + $0x5c] ss:$0 sps:$4 sm:$0x11]   ;;  %v2119_v23 = vor.u32 %v2118_v18, %v2114_v13  ;;  %v3742_v12 = vld [vmem:[%s3881_s17 + $0x74] ss:$0 sps:$4 sm:$0x11]  }
  0x60   : > { %1417 = vrot.lane.b32.xlu0 %v1300_v35, %s3842_s22  ;;  %v547_v34 = vsel %vm451_vm1, %v542_v22, %v546_v28  ;;  %v854_v35 = vrot.slane %v3708_v30, 1  ;;  %v1321_v45 = vshll.u32 %v3712_v38, 16  ;;  %v3726_v22 = vld [vmem:[%s3881_s17 + $0x60] sm:$0xfe]   ;;  %v2123_v24 = vrot.slane %v2121_v19, 1 }
  0x61   : > { %v2426_v28 = vrot.slane %v3726_v22, 1  ;;  %v2427_v30 = vrot.slane %v3727_v25, 1  ;;  %v1345_v16 = vshll.u32 %v3742_v12, 16  ;;  %v3745_v22 = vld [vmem:[%s4542_s1] sm:$0xff]  }
  0x62   : > { %v855_v40 = vsel %vm831_vm0, %v853_v32, %v854_v35  ;;  %v2124_v35 = vsel %vm451_vm1, %v2119_v23, %v2123_v24  ;;  %3555 = vmatprep.subr.bf16.mxu0 %v3745_v22  ;;  %3589 = vmatprep.subr.bf16.mxu1 %v3745_v22 }
  0x63   : > { %1672 = vrot.lane.b32.xlu1 %v1637_v46, %s3839_s19  ;;  %v3714_v46 = vld [vmem:[%s3881_s17 + $0x68] ss:$0 sps:$4 sm:$0x11]   ;;  %v2428_v42 = vsel %vm831_vm0, %v2426_v28, %v2427_v30  ;;  %v1347_v23 = vrot.slane %v1345_v16, 1  ;;  %v3747_v28 = vld [vmem:[%s3881_s17 + $0x6c] sm:$0xfe]   ;;  %3556 = vmatpush3.bf16.msra.mxu0 %v3745_v22 }
  0x64   : > { %1670 = vrot.lane.b32.xlu0 %v1634_v43, %s3839_s19  ;;  %v3709_v43 = vld [vmem:[%s3881_s17 + $0x54] sm:$0xff]   ;;  %v1333_v51 = vshll.u32 %v3714_v46, 16  ;;  %v2429_v46 = vrot.slane %v3731_v39, 1  ;;  %3592 = vmatpush3.bf16.msra.mxu1 %v3745_v22  ;;  %v3766_v16 = vld [vmem:[%s3881_s17 + $0x84] sm:$0xff]  }
  0x65   : > { %v3749_v39 = vld [vmem:[%s3881_s17 + $0x78] sm:$0xfe]  }
  0x66   : > { %v1335_v56 = vrot.slane %v1333_v51, 1  ;;  %v3734_v51 = vld [vmem:[%s3881_s17 + $0x74] ss:$0 sps:$4 sm:$0x11]  }
  0x67   : > { %1828 = vrot.lane.b32.xlu1 %v3692_v50, %s3843_s23  ;;  %v1323_v50 = vrot.slane %v1321_v45, 1  ;;  %v568_v54 = vshll.u32 %v3734_v51, 16  ;;  %v3756_v51 = vld [vmem:[%s3881_s17 + $0x78] sm:$0xff]  }
  0x68   : > { %1826 = vrot.lane.b32.xlu0 %v3691_v47, %s3843_s23  ;;  %v3710_v47 = vld [vmem:[%s3881_s17 + $0x60] sm:$0xff]   ;;  %v1336_v62 = vsel %vm451_vm1, %v1331_v53, %v1335_v56  ;;  %v3736_v56 = vld [vmem:[%s3881_s17 + $0x68] ss:$0 sps:$4 sm:$0x11]  }
  0x69   : > { %v1324_v61 = vsel %vm451_vm1, %v1319_v49, %v1323_v50  ;;  %v563_v49 = vshll.u32 %v3733_v41, 16  ;;  %v570_v60 = vrot.slane %v568_v54, 1  ;;  %v3752_v41 = vld [vmem:[%s3881_s17 + $0x24] sm:$0xff]  }
  0x6a   : > { %286 = vst.msk [vmem:[#allocation2 + $0x18] sm:$0xff] %vm282_vm2, %v3752_v41 }
  0x6b   : > { %2207 = vrot.lane.b32.xlu1 %v2100_v7, %s3844_s24  ;;  %v2102_v7 = vshrl.u32 %v3721_v55, 16  ;;  %v565_v53 = vrot.slane %v563_v49, 1  ;;  %v3735_v55 = vld [vmem:[%s3881_s17 + $0x60] sm:$0xfe]  }
  0x6c   : > { %2205 = vrot.lane.b32.xlu0 %v2088_v5, %s3844_s24  ;;  %v3754_v49 = vld [vmem:[%s3881_s17 + $0x84] sm:$0xff]  }
  0x6d   : > { %v2107_v21 = vor.u32 %v2106_v8, %v2102_v7  ;;  %v566_v58 = vor.u32 %v565_v53, %v561_v48  ;;  %v3739_v8 = vld [vmem:[%s3881_s17 + $0x6c] sm:$0xff]   ;;  %v3757_v53 = vld [vmem:[%s3881_s17 + $0x80] ss:$0 sps:$4 sm:$0x11]  }
  0x6f   : > { %632 = vrot.lane.b32.xlu1 %v535_v20, %s3841_s21  ;;  %v3728_v20 = vld [vmem:[%s3881_s17 + $0x60] sm:$0xff]   ;;  %v571_v1 = vsel %vm451_vm1, %v566_v58, %v570_v60 }
  0x70   : > { %2458 = vrot.lane.b32.xlu0 %v2422_v17, %s3845_s25  ;;  %v2111_v17 = vrot.slane %v2109_v11, 1  ;;  %v549_v29 = vshrl.u32 %v3728_v20, 16  ;;  %v551_v32 = vshll.u32 %v3728_v20, 16  ;;  %v3740_v11 = vld [vmem:[%s3881_s17 + $0x78] sm:$0xff]   ;;  %v3758_v60 = vld [vmem:[%s3881_s17 + $0x84] sm:$0xff]  }
  0x72   : > { %v553_v36 = vrot.slane %v551_v32, 1  ;;  %v3748_v32 = vld [vmem:[%s3881_s17 + $0x74] ss:$0 sps:$4 sm:$0x11]  }
  0x73   : > { %634 = vrot.lane.b32.xlu1 %v547_v34, %s3841_s21  ;;  %v2112_v34 = vsel %vm451_vm1, %v2107_v21, %v2111_v17  ;;  %v3744_v17 = vld [vmem:[%s3881_s17 + $0x80] ss:$0 sps:$4 sm:$0x11]  }
  0x74   : > { %2460 = vrot.lane.b32.xlu0 %v2425_v27, %s3845_s25  ;;  %v1357_v25 = vshll.u32 %v3744_v17, 16 }
  0x77   : > { %888 = vrot.lane.b32.xlu1 %v855_v40, %s3840_s20  ;;  %v3732_v40 = vld [vmem:[%s3881_s17 + $0x74] ss:$0 sps:$4 sm:$0x11]  }
  0x78   : > { %886 = vrot.lane.b32.xlu0 %v852_v37, %s3840_s20  ;;  %v556_v37 = vshll.u32 %v3729_v31, 16  ;;  %v1359_v31 = vrot.slane %v1357_v25, 1 }
  0x7a   : > { %v558_v44 = vrot.slane %v556_v37, 1 }
  0x7b   : > { %1044 = vrot.lane.b32.xlu1 %v3710_v47, %s3838_s18  ;;  %v2430_v47 = vrot.slane %v3732_v40, 1  ;;  %v3750_v40 = vld [vmem:[%s3881_s17 + $0x80] ss:$0 sps:$4 sm:$0x11]  }
  0x7c   : > { %1042 = vrot.lane.b32.xlu0 %v3709_v43, %s3838_s18  ;;  %v554_v43 = vor.u32 %v553_v36, %v549_v29  ;;  %v3751_v36 = vld [vmem:[%s4542_s1 + $0x8] sm:$0xff]  }
  0x7d   : > { %v2431_v57 = vsel %vm831_vm0, %v2429_v46, %v2430_v47  ;;  %3557 = vmatprep.subr.bf16.mxu0 %v3751_v36  ;;  %v3753_v47 = vld [vmem:[%s3881_s17 + $0x78] sm:$0xff]   ;;  %3590 = vmatprep.subr.bf16.mxu1 %v3751_v36 }
  0x7e   : > { %v559_v50 = vsel %vm451_vm1, %v554_v43, %v558_v44  ;;  %v1647_v43 = vrot.slane %v3749_v39, 1  ;;  %v1648_v44 = vrot.slane %v3750_v40, 1  ;;  %3558 = vmatpush3.bf16.msra.mxu0 %v3751_v36  ;;  %3593 = vmatpush3.bf16.msra.mxu1 %v3751_v36  ;;  %v3767_v36 = vld [vmem:[%s3881_s17 + $0x8c] ss:$0 sps:$4 sm:$0x11]  }
  0x7f   : > { %1423 = vrot.lane.b32.xlu1 %v1336_v62, %s3842_s22  ;;  %v857_v62 = vrot.slane %v3736_v56, 1  ;;  %v2128_v56 = vshll.u32 %v3756_v51, 16  ;;  %v3768_v40 = vld [vmem:[%s3881_s17 + $0x78] sm:$0xfe]  }
  0x80   : > { %1421 = vrot.lane.b32.xlu0 %v1324_v61, %s3842_s22  ;;  %v856_v61 = vrot.slane %v3735_v55, 1  ;;  %v1649_v48 = vsel %vm831_vm0, %v1647_v43, %v1648_v44  ;;  %v2126_v55 = vshrl.u32 %v3756_v51, 16  ;;  %v592_v43 = vshll.u32 %v3767_v36, 16  ;;  %v3769_v44 = vld [vmem:[%s3881_s17 + $0x80] ss:$0 sps:$4 sm:$0x11]  }
  0x81   : > { %v3787_v36 = vld [vmem:[%s3881_s17 + $0x98] ss:$0 sps:$4 sm:$0x11]  }
  0x83   : > { %1676 = vrot.lane.b32.xlu1 %v1643_v9, %s3839_s19  ;;  %v3741_v9 = vld [vmem:[%s3881_s17 + $0x6c] sm:$0xff]  }
  0x84   : > { %v4087_v5 = vpop.permute.xlu1 %1032  ;;  %v4089_v6 = vpop.permute.xlu0 %1030  ;;  %1674 = vrot.lane.b32.xlu0 %v1640_v4, %s3839_s19  ;;  %v858_v4 = vsel %vm831_vm0, %v856_v61, %v857_v62  ;;  %v1338_v14 = vshrl.u32 %v3741_v9, 16  ;;  %v3759_v61 = vld [vmem:[%s3881_s17 + $0x8c] ss:$0 sps:$4 sm:$0x11]   ;;  %v2130_v62 = vrot.slane %v2128_v56, 1 }
  0x87   : > { %1832 = vrot.lane.b32.xlu1 %v3720_v15, %s3843_s23  ;;  %v1340_v15 = vshll.u32 %v3741_v9, 16  ;;  %v3761_v9 = vld [vmem:[%s3881_s17 + $0x80] ss:$0 sps:$4 sm:$0x11]  }
  0x88   : > { %v4102_v26 = vpop.permute.xlu0 %1662  ;;  %1830 = vrot.lane.b32.xlu0 %v3719_v10, %s3843_s23 }
  0x89   : > { %v875_v27 = vpop.permute.xlu1 %874  ;;  %v1342_v21 = vrot.slane %v1340_v15, 1  ;;  %v573_v15 = vshrl.u32 %v3762_v63, 16 }
  0x8b   : > { %2211 = vrot.lane.b32.xlu1 %v2124_v35, %s3844_s24  ;;  %v1644_v35 = vrot.slane %v3747_v28, 1  ;;  %v3764_v28 = vld [vmem:[%s3881_s17 + $0x84] sm:$0xfe]  }
  0x8c   : > { %2209 = vrot.lane.b32.xlu0 %v2112_v34, %s3844_s24 }
  0x8d   : > { %v877_v38 = vpop.permute.xlu1 %876 }
  0x8e   : > { %v621_v45 = vpop.permute.xlu0 %620 }
  0x8f   : > { %663 = vst.msk [vmem:[#allocation2] sm:$0xff] %vm662_vm3, %v621_v45  ;;  %636 = vrot.lane.b32.xlu1 %v559_v50, %s3841_s21  ;;  %v3755_v50 = vld [vmem:[%s4542_s1 + $0x10] ss:$0 sps:$4 sm:$0x33]  }
  0x90   : > { %917 = vst.msk [vmem:[#allocation2] sm:$0xff] %vm916_vm4, %v875_v27  ;;  %2462 = vrot.lane.b32.xlu0 %v2428_v42, %s3845_s25  ;;  %v1343_v27 = vor.u32 %v1342_v21, %v1338_v14  ;;  %3595 = vmatprep.subr.msk.bf16.mxu0 %vm2584_vm11, %v3755_v50  ;;  %v2433_v14 = vrot.slane %v3761_v9, 1 }
  0x91   : > { %v1665_v52 = vpop.permute.xlu1 %1664  ;;  %1073 = vst.msk [vmem:[#allocation2] sm:$0xff] %vm1072_vm5, %v4089_v6  ;;  %v860_v6 = vrot.slane %v3738_v0, 1  ;;  %3596 = vmatprep.subr.msk.bf16.mxu1 %vm2584_vm11, %v3755_v50 }
  0x92   : > { %v623_v59 = vpop.permute.xlu0 %622  ;;  %v1348_v34 = vsel %vm451_vm1, %v1343_v27, %v1347_v23  ;;  %v585_v23 = vshrl.u32 %v3766_v16, 16 }
  0x93   : > { %664 = vst.msk [vmem:[#allocation2 + $0x8] sm:$0xff] %vm662_vm3, %v623_v59  ;;  %638 = vrot.lane.b32.xlu1 %v571_v1, %s3841_s21  ;;  %v861_v10 = vsel %vm831_vm0, %v859_v3, %v860_v6  ;;  %v2133_v59 = vshll.u32 %v3757_v53, 16  ;;  %v2138_v1 = vshrl.u32 %v3758_v60, 16  ;;  %v2145_v3 = vshll.u32 %v3759_v61, 16  ;;  %v3772_v53 = vld [vmem:[%s3881_s17 + $0x84] sm:$0xff]  }
  0x94   : > { %918 = vst.msk [vmem:[#allocation2 + $0x8] sm:$0xff] %vm916_vm4, %v877_v38  ;;  %2464 = vrot.lane.b32.xlu0 %v2431_v57, %s3845_s25  ;;  %v1645_v38 = vrot.slane %v3748_v32, 1  ;;  %v3846_v57 = vmov 0   ;;  %v3775_v61 = vld [vmem:[%s3881_s17 + $0x8c] ss:$0 sps:$4 sm:$0x11]  }
  0x95   : > { %v1412_v2 = vpop.permute.xlu1 %1411  ;;  %1074 = vst.msk [vmem:[#allocation2 + $0x8] sm:$0xff] %vm1072_vm5, %v4087_v5  ;;  %v3743_v5 = vld [vmem:[%s3881_s17 + $0x78] sm:$0xff]   ;;  %3616 = vset.pattern.permute.xlu1 %v3846_v57  ;;  %3615 = vset.pattern.permute.xlu0 %v3846_v57  ;;  %v2135_v0 = vrot.slane %v2133_v59, 1  ;;  %v2147_v12 = vrot.slane %v2145_v3, 1  ;;  %v1369_v3 = vshll.u32 %v3775_v61, 16 }
  0x96   : > { %1453 = vst.msk [vmem:[#allocation2 + $0x8] sm:$0xff] %vm1451_vm6, %v1412_v2  ;;  %v1410_v7 = vpop.permute.xlu0 %1409  ;;  %v1350_v18 = vshrl.u32 %v3743_v5, 16  ;;  %v1352_v19 = vshll.u32 %v3743_v5, 16  ;;  %v1646_v42 = vsel %vm831_vm0, %v1644_v35, %v1645_v38  ;;  %v2140_v2 = vshll.u32 %v3758_v60, 16 }
  0x97   : > { %1452 = vst.msk [vmem:[#allocation2] sm:$0xff] %vm1451_vm6, %v1410_v7  ;;  %892 = vrot.lane.b32.xlu1 %v861_v10, %s3840_s20  ;;  %v2131_v7 = vor.u32 %v2130_v62, %v2126_v55  ;;  %v1371_v9 = vrot.slane %v1369_v3, 1 }
  0x98   : > { %1706 = vst.msk [vmem:[#allocation2 + $0x8] sm:$0xff] %vm1704_vm7, %v1665_v52  ;;  %890 = vrot.lane.b32.xlu0 %v858_v4, %s3840_s20  ;;  %1705 = vst.msk [vmem:[#allocation2] sm:$0xff] %vm1704_vm7, %v4102_v26  ;;  %v1354_v24 = vrot.slane %v1352_v19, 1  ;;  %v3746_v26 = vld [vmem:[%s3881_s17 + $0x18] sm:$0xff]   ;;  %v2586_v52 = vsel %vm2584_vm11, %v3755_v50, 0  ;;  %v575_v19 = vshll.u32 %v3762_v63, 16 }
  0x99   : > { %v1821_v13 = vpop.permute.xlu1 %1820  ;;  %285 = vst.msk [vmem:[#allocation2 + $0x10] sm:$0xff] %vm282_vm2, %v3746_v26  ;;  %3560 = vmatpush3.bf16.msra.mxu0 %v2586_v52  ;;  %3594 = vmatpush3.bf16.msra.mxu1 %v2586_v52  ;;  %v2136_v5 = vsel %vm451_vm1, %v2131_v7, %v2135_v0  ;;  %v3770_v50 = vld [vmem:[%s3881_s17 + $0x84] sm:$0xfe]   ;;  %v3771_v52 = vld [vmem:[%s3881_s17 + $0x8c] ss:$0 sps:$4 sm:$0x11]  }
  0x9a   : > { %1862 = vst.msk [vmem:[#allocation2 + $0x8] sm:$0xff] %vm1860_vm8, %v1821_v13  ;;  %v1819_v20 = vpop.permute.xlu0 %1818  ;;  %v1355_v30 = vor.u32 %v1354_v24, %v1350_v18  ;;  %v3763_v18 = vld [vmem:[%s3881_s17 + $0x80] ss:$0 sps:$4 sm:$0x11]   ;;  %v577_v26 = vrot.slane %v575_v19, 1  ;;  %v865_v57 = vrot.slane %v3770_v50, 1 }
  0x9b   : > { %1861 = vst.msk [vmem:[#allocation2] sm:$0xff] %vm1860_vm8, %v1819_v20  ;;  %1048 = vrot.lane.b32.xlu1 %v3740_v11, %s3838_s18  ;;  %v2142_v11 = vrot.slane %v2140_v2, 1  ;;  %v580_v27 = vshll.u32 %v3763_v18, 16  ;;  %v866_v59 = vrot.slane %v3771_v52, 1  ;;  %v3778_v7 = vld [vmem:[%s3881_s17 + $0x30] sm:$0xff]   ;;  %v3783_v18 = vld [vmem:[%s3881_s17 + $0x3c] sm:$0xff]  }
  0x9c   : > { %1046 = vrot.lane.b32.xlu0 %v3739_v8, %s3838_s18  ;;  %v1360_v37 = vsel %vm451_vm1, %v1355_v30, %v1359_v31  ;;  %v3760_v8 = vld [vmem:[%s3881_s17 + $0x78] sm:$0xfe]   ;;  %v587_v30 = vshll.u32 %v3766_v16, 16  ;;  %v578_v31 = vor.u32 %v577_v26, %v573_v15  ;;  %287 = vst.msk [vmem:[#allocation2 + $0x20] sm:$0xff] %vm282_vm2, %v3778_v7  ;;  %288 = vst.msk [vmem:[#allocation2 + $0x28] sm:$0xff] %vm282_vm2, %v3783_v18  ;;  %v3784_v26 = vld [vmem:[%s3881_s17 + $0x90] sm:$0xff]  }
  0x9d   : > { %v2200_v29 = vpop.permute.xlu1 %2199  ;;  %v2432_v13 = vrot.slane %v3760_v8, 1  ;;  %v2143_v17 = vor.u32 %v2142_v11, %v2138_v1  ;;  %v582_v32 = vrot.slane %v580_v27, 1  ;;  %v867_v63 = vsel %vm831_vm0, %v865_v57, %v866_v59  ;;  %v3773_v1 = vld [vmem:[%s3881_s17 + $0x90] sm:$0xff]  }
  0x9e   : > { %v2198_v33 = vpop.permute.xlu0 %2197  ;;  %2241 = vst.msk [vmem:[#allocation2 + $0x8] sm:$0xff] %vm2239_vm9, %v2200_v29  ;;  %v3765_v29 = vld [vmem:[%s3881_s17 + $0x8c] ss:$0 sps:$4 sm:$0x11]   ;;  %v3790_v52 = vld [vmem:[%s3881_s17 + $0x90] sm:$0xfe]  }
  0x9f   : > { %2240 = vst.msk [vmem:[#allocation2] sm:$0xff] %vm2239_vm9, %v2198_v33  ;;  %1427 = vrot.lane.b32.xlu1 %v1360_v37, %s3842_s22  ;;  %v2434_v22 = vsel %vm831_vm0, %v2432_v13, %v2433_v14  ;;  %v2148_v24 = vsel %vm451_vm1, %v2143_v17, %v2147_v12  ;;  %v2435_v33 = vrot.slane %v3764_v28, 1  ;;  %v2436_v35 = vrot.slane %v3765_v29, 1  ;;  %v3779_v13 = vld [vmem:[%s3881_s17 + $0x84] sm:$0xfe]  }
  0xa0   : > { %1425 = vrot.lane.b32.xlu0 %v1348_v34, %s3842_s22  ;;  %v589_v37 = vrot.slane %v587_v30, 1  ;;  %v583_v38 = vsel %vm451_vm1, %v578_v31, %v582_v32  ;;  %v3780_v17 = vld [vmem:[%s3881_s17 + $0x8c] ss:$0 sps:$4 sm:$0x11]   ;;  %v1650_v19 = vrot.slane %v3779_v13, 1  ;;  %v3786_v30 = vld [vmem:[%s3881_s17 + $0x90] sm:$0xff]  }
  0xa1   : > { %v625_v46 = vpop.permute.xlu1 %624  ;;  %v2437_v41 = vsel %vm831_vm0, %v2435_v33, %v2436_v35  ;;  %v3785_v35 = vld [vmem:[%s3881_s17 + $0x9c] sm:$0xff]  }
  0xa2   : > { %v2451_v45 = vpop.permute.xlu0 %2450  ;;  %665 = vst.msk [vmem:[#allocation2 + $0x10] sm:$0xff] %vm662_vm3, %v625_v46  ;;  %v3774_v46 = vld [vmem:[%s3881_s17 + $0x84] sm:$0xff]  }
  0xa3   : > { %2493 = vst.msk [vmem:[#allocation2] sm:$0xff] %vm2492_vm10, %v2451_v45  ;;  %1680 = vrot.lane.b32.xlu1 %v1649_v48, %s3839_s19  ;;  %v862_v45 = vrot.slane %v3768_v40, 1  ;;  %v2157_v40 = vshll.u32 %v3787_v36, 16 }
  0xa4   : > { %1678 = vrot.lane.b32.xlu0 %v1646_v42, %s3839_s19  ;;  %v590_v42 = vor.u32 %v589_v37, %v585_v23  ;;  %v3781_v23 = vld [vmem:[%s3881_s17 + $0x90] sm:$0xfe]   ;;  %v2150_v37 = vshrl.u32 %v3786_v30, 16 }
  0xa5   : > { %v627_v58 = vpop.permute.xlu1 %626  ;;  %v1653_v29 = vrot.slane %v3781_v23, 1 }
  0xa6   : > { %v2453_v54 = vpop.permute.xlu0 %2452  ;;  %666 = vst.msk [vmem:[#allocation2 + $0x18] sm:$0xff] %vm662_vm3, %v627_v58  ;;  %v1364_v58 = vshll.u32 %v3774_v46, 16 }
  0xa7   : > { %2494 = vst.msk [vmem:[#allocation2 + $0x8] sm:$0xff] %vm2492_vm10, %v2453_v54  ;;  %1836 = vrot.lane.b32.xlu1 %v3754_v49, %s3843_s23  ;;  %v863_v49 = vrot.slane %v3769_v44, 1  ;;  %v1362_v54 = vshrl.u32 %v3774_v46, 16 }
  0xa8   : > { %1834 = vrot.lane.b32.xlu0 %v3753_v47, %s3843_s23  ;;  %v594_v47 = vrot.slane %v592_v43, 1  ;;  %v1366_v62 = vrot.slane %v1364_v58, 1 }
  0xa9   : > { %v881_v10 = vpop.permute.xlu1 %880  ;;  %v864_v56 = vsel %vm831_vm0, %v862_v45, %v863_v49 }
  0xaa   : > { %v879_v4 = vpop.permute.xlu0 %878  ;;  %v2507_v6 = vld [vmem:[#allocation2] sm:$0xff]  ;;  %920 = vst.msk [vmem:[#allocation2 + $0x18] sm:$0xff] %vm916_vm4, %v881_v10  ;;  %v595_v55 = vsel %vm451_vm1, %v590_v42, %v594_v47  ;;  %v1367_v2 = vor.u32 %v1366_v62, %v1362_v54 }
  0xab   : > { %919 = vst.msk [vmem:[#allocation2 + $0x10] sm:$0xff] %vm916_vm4, %v879_v4  ;;  %3561 = vmatprep.mubr.msk.bf16.mxu0 %vm2541_vm12, %v2507_v6  ;;  %2215 = vrot.lane.b32.xlu1 %v2148_v24, %s3844_s24  ;;  %v3776_v4 = vld [vmem:[%s3881_s17 + $0x90] sm:$0xff]   ;;  %v3777_v6 = vld [vmem:[%s3881_s17 + $0x98] ss:$0 sps:$4 sm:$0x11]  }
  0xac   : > { %2213 = vrot.lane.b32.xlu0 %v2136_v5, %s3844_s24  ;;  %v1374_v10 = vshrl.u32 %v3776_v4, 16  ;;  %v1376_v11 = vshll.u32 %v3776_v4, 16  ;;  %v1381_v12 = vshll.u32 %v3777_v6, 16  ;;  %v1372_v14 = vsel %vm451_vm1, %v1367_v2, %v1371_v9  ;;  %v3796_v2 = vld [vmem:[%s3881_s17 + $0x9c] sm:$0xff]  }
  0xad   : > { %v1037_v25 = vpop.permute.xlu1 %1036 }
  0xae   : > { %v1035_v20 = vpop.permute.xlu0 %1034  ;;  %v2508_v21 = vld [vmem:[#allocation2 + $0x8] sm:$0xff]  ;;  %1076 = vst.msk [vmem:[#allocation2 + $0x18] sm:$0xff] %vm1072_vm5, %v1037_v25  ;;  %v1378_v15 = vrot.slane %v1376_v11, 1  ;;  %v1383_v16 = vrot.slane %v1381_v12, 1  ;;  %v609_v11 = vshrl.u32 %v3796_v2, 16 }
  0xaf   : > { %1075 = vst.msk [vmem:[#allocation2 + $0x10] sm:$0xff] %vm1072_vm5, %v1035_v20  ;;  %3562 = vmatmul.mubr.msk.bf16.vlgmr.msra.gmra.mrb[0].mxu0 %vm2541_vm12, %v2508_v21  ;;  %640 = vrot.lane.b32.xlu1 %v583_v38, %s3841_s21  ;;  %v3782_v25 = vld [vmem:[%s3881_s17 + $0x98] ss:$0 sps:$4 sm:$0x11]   ;;  %v2152_v38 = vshll.u32 %v3786_v30, 16 }
  0xb0   : > { %2466 = vrot.lane.b32.xlu0 %v2434_v22, %s3845_s25  ;;  %v1379_v20 = vor.u32 %v1378_v15, %v1374_v10  ;;  %v1651_v22 = vrot.slane %v3780_v17, 1  ;;  %v1654_v31 = vrot.slane %v3782_v25, 1  ;;  %v3795_v10 = vld [vmem:[%s3881_s17 + $0xa4] ss:$0 sps:$4 sm:$0x11]   ;;  %v611_v15 = vshll.u32 %v3796_v2, 16 }
  0xb1   : > { %v1416_v39 = vpop.permute.xlu1 %1415  ;;  %v2154_v44 = vrot.slane %v2152_v38, 1  ;;  %v3797_v17 = vld [vmem:[%s3881_s17 + $0xa4] ss:$0 sps:$4 sm:$0x11]  }
  0xb2   : > { %v1414_v34 = vpop.permute.xlu0 %1413  ;;  %1455 = vst.msk [vmem:[#allocation2 + $0x18] sm:$0xff] %vm1451_vm6, %v1416_v39  ;;  %v1384_v27 = vsel %vm451_vm1, %v1379_v20, %v1383_v16  ;;  %v1652_v28 = vsel %vm831_vm0, %v1650_v19, %v1651_v22  ;;  %v1655_v33 = vsel %vm831_vm0, %v1653_v29, %v1654_v31  ;;  %v3788_v39 = vld [vmem:[%s3881_s17 + $0x9c] sm:$0xff]   ;;  %v2442_v16 = vrot.slane %v3795_v10, 1  ;;  %v3799_v25 = vld [vmem:[%s3881_s17 + $0x98] ss:$0 sps:$4 sm:$0x11]  }
  0xb3   : > { %1454 = vst.msk [vmem:[#allocation2 + $0x10] sm:$0xff] %vm1451_vm6, %v1414_v34  ;;  %642 = vrot.lane.b32.xlu1 %v595_v55, %s3841_s21  ;;  %v2162_v45 = vshrl.u32 %v3788_v39, 16  ;;  %v2164_v46 = vshll.u32 %v3788_v39, 16  ;;  %v2155_v50 = vor.u32 %v2154_v44, %v2150_v37  ;;  %v3792_v55 = vld [vmem:[%s3881_s17 + $0x90] sm:$0xff]   ;;  %v613_v19 = vrot.slane %v611_v15, 1  ;;  %v3804_v20 = vld [vmem:[%s3881_s17 + $0x9c] sm:$0xff]  }
  0xb4   : > { %2468 = vrot.lane.b32.xlu0 %v2437_v41, %s3845_s25  ;;  %v3789_v41 = vld [vmem:[%s3881_s17 + $0xa4] ss:$0 sps:$4 sm:$0x11]   ;;  %v616_v22 = vshll.u32 %v3797_v17, 16  ;;  %v869_v30 = vrot.slane %v3799_v25, 1 }
  0xb5   : > { %v1669_v51 = vpop.permute.xlu1 %1668  ;;  %v2169_v49 = vshll.u32 %v3789_v41, 16  ;;  %v3800_v31 = vld [vmem:[%s3881_s17 + $0x9c] sm:$0xfe]   ;;  %v3817_v17 = vld [vmem:[%s3881_s17 + $0xb0] ss:$0 sps:$4 sm:$0x11]  }
  0xb6   : > { %v1667_v48 = vpop.permute.xlu0 %1666  ;;  %1708 = vst.msk [vmem:[#allocation2 + $0x18] sm:$0xff] %vm1704_vm7, %v1669_v51  ;;  %v2166_v51 = vrot.slane %v2164_v46, 1  ;;  %v871_v38 = vrot.slane %v3800_v31, 1  ;;  %v3805_v46 = vld [vmem:[%s3881_s17 + $0xa4] ss:$0 sps:$4 sm:$0x11]  }
  0xb7   : > { %1707 = vst.msk [vmem:[#allocation2 + $0x10] sm:$0xff] %vm1704_vm7, %v1667_v48  ;;  %896 = vrot.lane.b32.xlu1 %v867_v63, %s3840_s20  ;;  %v2159_v48 = vrot.slane %v2157_v40, 1  ;;  %v2171_v54 = vrot.slane %v2169_v49, 1  ;;  %v3793_v63 = vld [vmem:[%s3881_s17 + $0x98] ss:$0 sps:$4 sm:$0x11]  }
  0xb8   : > { %894 = vrot.lane.b32.xlu0 %v864_v56, %s3840_s20  ;;  %v2167_v57 = vor.u32 %v2166_v51, %v2162_v45  ;;  %v604_v7 = vshll.u32 %v3793_v63, 16  ;;  %v3806_v40 = vld [vmem:[%s3881_s17 + $0xa8] sm:$0xff]   ;;  %v3807_v49 = vld [vmem:[%s3881_s17 + $0xb0] ss:$0 sps:$4 sm:$0x11]  }
  0xb9   : > { %v1825_v0 = vpop.permute.xlu1 %1824  ;;  %v2160_v56 = vsel %vm451_vm1, %v2155_v50, %v2159_v48  ;;  %v3803_v45 = vld [vmem:[%s3881_s17 + $0xa8] sm:$0xff]   ;;  %v1400_v50 = vshll.u32 %v3806_v40, 16  ;;  %v3810_v63 = vld [vmem:[%s3881_s17 + $0xa4] ss:$0 sps:$4 sm:$0x11]  }
  0xba   : > { %v1823_v60 = vpop.permute.xlu0 %1822  ;;  %1864 = vst.msk [vmem:[#allocation2 + $0x18] sm:$0xff] %vm1860_vm8, %v1825_v0  ;;  %v597_v0 = vshrl.u32 %v3792_v55, 16  ;;  %v2172_v3 = vsel %vm451_vm1, %v2167_v57, %v2171_v54  ;;  %v3813_v57 = vld [vmem:[%s3881_s17 + $0x54] sm:$0xff]   ;;  %v3820_v31 = vld [vmem:[%s3881_s17 + $0xa8] sm:$0xfe]  }
  0xbb   : > { %1863 = vst.msk [vmem:[#allocation2 + $0x10] sm:$0xff] %vm1860_vm8, %v1823_v60  ;;  %1052 = vrot.lane.b32.xlu1 %v3773_v1, %s3838_s18  ;;  %v2438_v60 = vrot.slane %v3790_v52, 1  ;;  %v599_v1 = vshll.u32 %v3792_v55, 16  ;;  %v1402_v54 = vrot.slane %v1400_v50, 1  ;;  %v1405_v55 = vshll.u32 %v3807_v49, 16 }
  0xbc   : > { %1050 = vrot.lane.b32.xlu0 %v3772_v53, %s3838_s18  ;;  %v3791_v53 = vld [vmem:[%s3881_s17 + $0x98] ss:$0 sps:$4 sm:$0x11]   ;;  %290 = vst.msk [vmem:[#allocation2 + $0x38] sm:$0xff] %vm282_vm2, %v3813_v57 }
  0xbd   : > { %v2204_v5 = vpop.permute.xlu1 %2203  ;;  %v2439_v61 = vrot.slane %v3791_v53, 1  ;;  %v601_v6 = vrot.slane %v599_v1, 1  ;;  %v1393_v53 = vshll.u32 %v3805_v46, 16 }
  0xbe   : > { %v2202_v8 = vpop.permute.xlu0 %2201  ;;  %2243 = vst.msk [vmem:[#allocation2 + $0x18] sm:$0xff] %vm2239_vm9, %v2204_v5  ;;  %v606_v5 = vrot.slane %v604_v7, 1  ;;  %v3812_v7 = vld [vmem:[%s3881_s17 + $0xb0] ss:$0 sps:$4 sm:$0x11]  }
  0xbf   : > { %2242 = vst.msk [vmem:[#allocation2 + $0x10] sm:$0xff] %vm2239_vm9, %v2202_v8  ;;  %1431 = vrot.lane.b32.xlu1 %v1384_v27, %s3842_s22  ;;  %v2440_v4 = vsel %vm831_vm0, %v2438_v60, %v2439_v61  ;;  %v3794_v8 = vld [vmem:[%s3881_s17 + $0x9c] sm:$0xfe]   ;;  %v602_v12 = vor.u32 %v601_v6, %v597_v0  ;;  %v1407_v60 = vrot.slane %v1405_v55, 1  ;;  %v3811_v6 = vld [vmem:[%s3881_s17 + $0xa8] sm:$0xfe]  }
  0xc0   : > { %1429 = vrot.lane.b32.xlu0 %v1372_v14, %s3842_s22  ;;  %v2441_v14 = vrot.slane %v3794_v8, 1 }
  0xc1   : > { %v629_v24 = vpop.permute.xlu1 %628  ;;  %v607_v18 = vsel %vm451_vm1, %v602_v12, %v606_v5  ;;  %v3816_v12 = vld [vmem:[%s3881_s17 + $0xa8] sm:$0xff]   ;;  %v1660_v5 = vrot.slane %v3812_v7, 1 }
  0xc2   : > { %v2455_v21 = vpop.permute.xlu0 %2454  ;;  %667 = vst.msk [vmem:[#allocation2 + $0x20] sm:$0xff] %vm662_vm3, %v629_v24  ;;  %v3798_v24 = vld [vmem:[%s3881_s17 + $0x90] sm:$0xfe]  }
  0xc3   : > { %2495 = vst.msk [vmem:[#allocation2 + $0x10] sm:$0xff] %vm2492_vm10, %v2455_v21  ;;  %1684 = vrot.lane.b32.xlu1 %v1655_v33, %s3839_s19  ;;  %v2443_v21 = vsel %vm831_vm0, %v2441_v14, %v2442_v16  ;;  %v868_v29 = vrot.slane %v3798_v24, 1  ;;  %v3801_v33 = vld [vmem:[%s3881_s17 + $0xa4] ss:$0 sps:$4 sm:$0x11]   ;;  %v3818_v14 = vld [vmem:[%s3881_s17 + $0xb4] sm:$0xff]  }
  0xc4   : > { %1682 = vrot.lane.b32.xlu0 %v1652_v28, %s3839_s19  ;;  %v618_v28 = vrot.slane %v616_v22, 1  ;;  %v872_v41 = vrot.slane %v3801_v33, 1  ;;  %v3815_v16 = vld [vmem:[%s3881_s17 + $0xb4] sm:$0xff]  }
  0xc5   : > { %v631_v34 = vpop.permute.xlu1 %630  ;;  %v870_v37 = vsel %vm831_vm0, %v868_v29, %v869_v30 }
  0xc6   : > { %v2457_v32 = vpop.permute.xlu0 %2456  ;;  %668 = vst.msk [vmem:[#allocation2 + $0x28] sm:$0xff] %vm662_vm3, %v631_v34  ;;  %v3802_v34 = vld [vmem:[%s3881_s17 + $0x9c] sm:$0xff]   ;;  %v873_v44 = vsel %vm831_vm0, %v871_v38, %v872_v41 }
  0xc7   : > { %2496 = vst.msk [vmem:[#allocation2 + $0x18] sm:$0xff] %vm2492_vm10, %v2457_v32  ;;  %1840 = vrot.lane.b32.xlu1 %v3785_v35, %s3843_s23  ;;  %v1386_v32 = vshrl.u32 %v3804_v20, 16  ;;  %v1388_v35 = vshll.u32 %v3804_v20, 16  ;;  %v2186_v20 = vshrl.u32 %v3818_v14, 16 }
  0xc8   : > { %1838 = vrot.lane.b32.xlu0 %v3784_v26, %s3843_s23  ;;  %v614_v26 = vor.u32 %v613_v19, %v609_v11  ;;  %v3814_v11 = vld [vmem:[%s3881_s17 + $0xa8] sm:$0xff]   ;;  %v2176_v19 = vshll.u32 %v3816_v12, 16 }
  0xc9   : > { %v885_v47 = vpop.permute.xlu1 %884 }
  0xca   : > { %v883_v42 = vpop.permute.xlu0 %882  ;;  %v2509_v43 = vld [vmem:[#allocation2 + $0x10] sm:$0xff]  ;;  %922 = vst.msk [vmem:[#allocation2 + $0x28] sm:$0xff] %vm916_vm4, %v885_v47  ;;  %v619_v36 = vsel %vm451_vm1, %v614_v26, %v618_v28  ;;  %v1398_v47 = vshrl.u32 %v3806_v40, 16  ;;  %v2178_v25 = vrot.slane %v2176_v19, 1  ;;  %v2181_v26 = vshll.u32 %v3817_v17, 16 }
  0xcb   : > { %921 = vst.msk [vmem:[#allocation2 + $0x20] sm:$0xff] %vm916_vm4, %v883_v42  ;;  %3565 = vmatprep.mubr.msk.bf16.mxu0 %vm2541_vm12, %v2509_v43  ;;  %2219 = vrot.lane.b32.xlu1 %v2172_v3, %s3844_s24  ;;  %v1390_v43 = vrot.slane %v1388_v35, 1  ;;  %v2743_v17 = vld [vmem:[%s4543_s2 + $0x50] sm:$0xff] }
  0xcc   : > { %2217 = vrot.lane.b32.xlu0 %v2160_v56, %s3844_s24  ;;  %v3808_v56 = vld [vmem:[%s3881_s17 + $0x48] sm:$0xff]   ;;  %v2183_v30 = vrot.slane %v2181_v26, 1  ;;  %v2747_v26 = vld [vmem:[%s4543_s2 + $0x70] sm:$0xff] }
  0xcd   : > { %v1041_v62 = vpop.permute.xlu1 %1040  ;;  %v1391_v52 = vor.u32 %v1390_v43, %v1386_v32  ;;  %289 = vst.msk [vmem:[#allocation2 + $0x30] sm:$0xff] %vm282_vm2, %v3808_v56  ;;  %v3823_v43 = vld [vmem:[%s3881_s17 + $0xbc] ss:$0 sps:$4 sm:$0x11]   ;;  %v3827_v56 = vld [vmem:[%s3881_s17 + $0x84] sm:$0xff]  }
  0xce   : > { %v1039_v58 = vpop.permute.xlu0 %1038  ;;  %v2510_v59 = vld [vmem:[#allocation2 + $0x18] sm:$0xff]  ;;  %1078 = vst.msk [vmem:[#allocation2 + $0x28] sm:$0xff] %vm1072_vm5, %v1041_v62  ;;  %v2448_v49 = vrot.slane %v3823_v43, 1 }
  0xcf   : > { %1077 = vst.msk [vmem:[#allocation2 + $0x20] sm:$0xff] %vm1072_vm5, %v1039_v58  ;;  %3566 = vmatmul.mubr.msk.bf16.gmra.mrb[4].mxu0 %vm2541_vm12, %v2510_v59  ;;  %644 = vrot.lane.b32.xlu1 %v607_v18, %s3841_s21  ;;  %v1395_v58 = vrot.slane %v1393_v53, 1  ;;  %v1403_v59 = vor.u32 %v1402_v54, %v1398_v47  ;;  %v3809_v62 = vld [vmem:[%s3881_s17 + $0x9c] sm:$0xfe]   ;;  %v2174_v18 = vshrl.u32 %v3816_v12, 16 }
  0xd0   : > { %2470 = vrot.lane.b32.xlu0 %v2440_v4, %s3845_s25  ;;  %v1656_v3 = vrot.slane %v3809_v62, 1  ;;  %v1657_v4 = vrot.slane %v3810_v63, 1  ;;  %v2733_v53 = vld [vmem:[%s4543_s2] sm:$0xff]  ;;  %v3826_v54 = vld [vmem:[%s3881_s17 + $0x78] sm:$0xff]   ;;  %294 = vst.msk [vmem:[#allocation2 + $0x58] sm:$0xff] %vm282_vm2, %v3827_v56 }
  0xd1   : > { %v1420_v13 = vpop.permute.xlu1 %1419  ;;  %v1396_v0 = vsel %vm451_vm1, %v1391_v52, %v1395_v58  ;;  %v1408_v2 = vsel %vm451_vm1, %v1403_v59, %v1407_v60  ;;  %v2179_v29 = vor.u32 %v2178_v25, %v2174_v18  ;;  %v2734_v58 = vld [vmem:[%s4543_s2 + $0x8] sm:$0xff]  ;;  %293 = vst.msk [vmem:[#allocation2 + $0x50] sm:$0xff] %vm282_vm2, %v3826_v54  ;;  %v3828_v59 = vld [vmem:[%s3881_s17 + $0x90] sm:$0xff]   ;;  %v2736_v60 = vld [vmem:[%s4543_s2 + $0x18] sm:$0xff] }
  0xd2   : > { %v1418_v9 = vpop.permute.xlu0 %1417  ;;  %1457 = vst.msk [vmem:[#allocation2 + $0x28] sm:$0xff] %vm1451_vm6, %v1420_v13  ;;  %v1658_v8 = vsel %vm831_vm0, %v1656_v3, %v1657_v4  ;;  %v3829_v62 = vld [vmem:[%s3881_s17 + $0x9c] sm:$0xff]   ;;  %v2746_v18 = vld [vmem:[%s4543_s2 + $0x68] sm:$0xff] }
  0xd3   : > { %1456 = vst.msk [vmem:[#allocation2 + $0x20] sm:$0xff] %vm1451_vm6, %v1418_v9  ;;  %646 = vrot.lane.b32.xlu1 %v619_v36, %s3841_s21  ;;  %v1659_v9 = vrot.slane %v3811_v6, 1  ;;  %v3821_v36 = vld [vmem:[%s3881_s17 + $0xb0] ss:$0 sps:$4 sm:$0x11]   ;;  %v2737_v4 = vld [vmem:[%s4543_s2 + $0x20] sm:$0xff] }
  0xd4   : > { %2472 = vrot.lane.b32.xlu0 %v2443_v21, %s3845_s25  ;;  %v2445_v41 = vrot.slane %v3821_v36, 1  ;;  %295 = vst.msk [vmem:[#allocation2 + $0x60] sm:$0xff] %vm282_vm2, %v3828_v59  ;;  %296 = vst.msk [vmem:[#allocation2 + $0x68] sm:$0xff] %vm282_vm2, %v3829_v62  ;;  %v2740_v6 = vld [vmem:[%s4543_s2 + $0x38] sm:$0xff] }
  0xd5   : > { %v1673_v27 = vpop.permute.xlu1 %1672  ;;  %v1661_v15 = vsel %vm831_vm0, %v1659_v9, %v1660_v5  ;;  %v2739_v9 = vld [vmem:[%s4543_s2 + $0x30] sm:$0xff]  ;;  %v2741_v5 = vld [vmem:[%s4543_s2 + $0x40] sm:$0xff] }
  0xd6   : > { %v1671_v23 = vpop.permute.xlu0 %1670  ;;  %1710 = vst.msk [vmem:[#allocation2 + $0x28] sm:$0xff] %vm1704_vm7, %v1673_v27  ;;  %v3819_v27 = vld [vmem:[%s3881_s17 + $0xbc] ss:$0 sps:$4 sm:$0x11]  }
  0xd7   : > { %1709 = vst.msk [vmem:[#allocation2 + $0x20] sm:$0xff] %vm1704_vm7, %v1671_v23  ;;  %900 = vrot.lane.b32.xlu1 %v873_v44, %s3840_s20  ;;  %v2188_v23 = vshll.u32 %v3818_v14, 16  ;;  %v2193_v33 = vshll.u32 %v3819_v27, 16  ;;  %v3824_v44 = vld [vmem:[%s3881_s17 + $0x60] sm:$0xff]   ;;  %v2750_v27 = vld [vmem:[%s4543_s2 + $0x88] sm:$0xff] }
  0xd8   : > { %898 = vrot.lane.b32.xlu0 %v870_v37, %s3840_s20  ;;  %v2184_v37 = vsel %vm451_vm1, %v2179_v29, %v2183_v30  ;;  %291 = vst.msk [vmem:[#allocation2 + $0x40] sm:$0xff] %vm282_vm2, %v3824_v44  ;;  %v2749_v30 = vld [vmem:[%s4543_s2 + $0x80] sm:$0xff] }
  0xd9   : > { %v1829_v42 = vpop.permute.xlu1 %1828  ;;  %v2190_v28 = vrot.slane %v2188_v23, 1  ;;  %v2195_v40 = vrot.slane %v2193_v33, 1  ;;  %v2748_v23 = vld [vmem:[%s4543_s2 + $0x78] sm:$0xff] }
  0xda   : > { %v1827_v39 = vpop.permute.xlu0 %1826  ;;  %1866 = vst.msk [vmem:[#allocation2 + $0x28] sm:$0xff] %vm1860_vm8, %v1829_v42  ;;  %v3822_v42 = vld [vmem:[%s3881_s17 + $0xb4] sm:$0xfe]  }
  0xdb   : > { %1865 = vst.msk [vmem:[#allocation2 + $0x20] sm:$0xff] %vm1860_vm8, %v1827_v39  ;;  %1056 = vrot.lane.b32.xlu1 %v3803_v45, %s3838_s18  ;;  %v2191_v32 = vor.u32 %v2190_v28, %v2186_v20  ;;  %v2444_v39 = vrot.slane %v3820_v31, 1  ;;  %v2447_v47 = vrot.slane %v3822_v42, 1  ;;  %v2752_v31 = vld [vmem:[%s4543_s2 + $0x98] sm:$0xff]  ;;  %v2758_v42 = vld [vmem:[%s4543_s2 + $0xc8] sm:$0xff] }
  0xdc   : > { %1054 = vrot.lane.b32.xlu0 %v3802_v34, %s3838_s18 }
  0xdd   : > { %v2208_v51 = vpop.permute.xlu1 %2207  ;;  %v2196_v45 = vsel %vm451_vm1, %v2191_v32, %v2195_v40  ;;  %v2446_v46 = vsel %vm831_vm0, %v2444_v39, %v2445_v41  ;;  %v2449_v52 = vsel %vm831_vm0, %v2447_v47, %v2448_v49  ;;  %v2755_v41 = vld [vmem:[%s4543_s2 + $0xb0] sm:$0xff] }
  0xde   : > { %v2206_v48 = vpop.permute.xlu0 %2205  ;;  %2245 = vst.msk [vmem:[#allocation2 + $0x28] sm:$0xff] %vm2239_vm9, %v2208_v51  ;;  %v3825_v51 = vld [vmem:[%s3881_s17 + $0x6c] sm:$0xff]  }
  0xdf   : > { %2244 = vst.msk [vmem:[#allocation2 + $0x20] sm:$0xff] %vm2239_vm9, %v2206_v48  ;;  %1435 = vrot.lane.b32.xlu1 %v1408_v2, %s3842_s22 }
  0xe0   : > { %1433 = vrot.lane.b32.xlu0 %v1396_v0, %s3842_s22  ;;  %292 = vst.msk [vmem:[#allocation2 + $0x48] sm:$0xff] %vm282_vm2, %v3825_v51  ;;  %v2735_v0 = vld [vmem:[%s4543_s2 + $0x10] sm:$0xff] }
  0xe1   : > { %v633_v1 = vpop.permute.xlu1 %632 }
  0xe2   : > { %v2459_v61 = vpop.permute.xlu0 %2458  ;;  %669 = vst.msk [vmem:[#allocation2 + $0x30] sm:$0xff] %vm662_vm3, %v633_v1  ;;  %v2738_v1 = vld [vmem:[%s4543_s2 + $0x28] sm:$0xff] }
  0xe3   : > { %2497 = vst.msk [vmem:[#allocation2 + $0x20] sm:$0xff] %vm2492_vm10, %v2459_v61  ;;  %1688 = vrot.lane.b32.xlu1 %v1661_v15, %s3839_s19 }
  0xe4   : > { %1686 = vrot.lane.b32.xlu0 %v1658_v8, %s3839_s19 }
  0xe5   : > { %v635_v13 = vpop.permute.xlu1 %634 }
  0xe6   : > { %v2461_v10 = vpop.permute.xlu0 %2460  ;;  %670 = vst.msk [vmem:[#allocation2 + $0x38] sm:$0xff] %vm662_vm3, %v635_v13  ;;  %v2744_v13 = vld [vmem:[%s4543_s2 + $0x58] sm:$0xff] }
  0xe7   : > { %2498 = vst.msk [vmem:[#allocation2 + $0x28] sm:$0xff] %vm2492_vm10, %v2461_v10  ;;  %1844 = vrot.lane.b32.xlu1 %v3815_v16, %s3843_s23  ;;  %v2742_v10 = vld [vmem:[%s4543_s2 + $0x48] sm:$0xff] }
  0xe8   : > { %1842 = vrot.lane.b32.xlu0 %v3814_v11, %s3843_s23 }
  0xe9   : > { %v889_v24 = vpop.permute.xlu1 %888 }
  0xea   : > { %v887_v21 = vpop.permute.xlu0 %886  ;;  %v2511_v22 = vld [vmem:[#allocation2 + $0x20] sm:$0xff]  ;;  %924 = vst.msk [vmem:[#allocation2 + $0x38] sm:$0xff] %vm916_vm4, %v889_v24 }
  0xeb   : > { %923 = vst.msk [vmem:[#allocation2 + $0x30] sm:$0xff] %vm916_vm4, %v887_v21  ;;  %3569 = vmatprep.mubr.msk.bf16.mxu0 %vm2541_vm12, %v2511_v22  ;;  %2223 = vrot.lane.b32.xlu1 %v2196_v45, %s3844_s24  ;;  %v2745_v22 = vld [vmem:[%s4543_s2 + $0x60] sm:$0xff] }
  0xec   : > { %2221 = vrot.lane.b32.xlu0 %v2184_v37, %s3844_s24  ;;  %v2753_v37 = vld [vmem:[%s4543_s2 + $0xa0] sm:$0xff] }
  0xed   : > { %v1045_v38 = vpop.permute.xlu1 %1044  ;;  %v2757_v45 = vld [vmem:[%s4543_s2 + $0xc0] sm:$0xff] }
  0xee   : > { %v1043_v34 = vpop.permute.xlu0 %1042  ;;  %v2512_v35 = vld [vmem:[#allocation2 + $0x28] sm:$0xff]  ;;  %1080 = vst.msk [vmem:[#allocation2 + $0x38] sm:$0xff] %vm1072_vm5, %v1045_v38  ;;  %v2756_v38 = vld [vmem:[%s4543_s2 + $0xb8] sm:$0xff] }
  0xef   : > { %1079 = vst.msk [vmem:[#allocation2 + $0x30] sm:$0xff] %vm1072_vm5, %v1043_v34  ;;  %3570 = vmatmul.mubr.msk.bf16.gmra.mrb[8].mxu0 %vm2541_vm12, %v2512_v35  ;;  %2476 = vrot.lane.b32.xlu1 %v2449_v52, %s3845_s25  ;;  %v2751_v34 = vld [vmem:[%s4543_s2 + $0x90] sm:$0xff]  ;;  %v2754_v35 = vld [vmem:[%s4543_s2 + $0xa8] sm:$0xff] }
  0xf0   : > { %2474 = vrot.lane.b32.xlu0 %v2446_v46, %s3845_s25  ;;  %v2760_v46 = vld [vmem:[%s4543_s2 + $0xd8] sm:$0xff] }
  0xf1   : > { %v1424_v50 = vpop.permute.xlu1 %1423 }
  0xf2   : > { %v1422_v48 = vpop.permute.xlu0 %1421  ;;  %1459 = vst.msk [vmem:[#allocation2 + $0x38] sm:$0xff] %vm1451_vm6, %v1424_v50  ;;  %v2759_v50 = vld [vmem:[%s4543_s2 + $0xd0] sm:$0xff] }
  0xf3   : > { %1458 = vst.msk [vmem:[#allocation2 + $0x30] sm:$0xff] %vm1451_vm6, %v1422_v48  ;;  %2768 = vperm.xlu1 %3616, %v2734_v58  }
  0xf4   : > { %2763 = vperm.xlu0 %3615, %v2733_v53  }
  0xf5   : > { %v1677_v57 = vpop.permute.xlu1 %1676 }
  0xf6   : > { %v1675_v55 = vpop.permute.xlu0 %1674  ;;  %1712 = vst.msk [vmem:[#allocation2 + $0x38] sm:$0xff] %vm1704_vm7, %v1677_v57 }
  0xf7   : > { %1711 = vst.msk [vmem:[#allocation2 + $0x30] sm:$0xff] %vm1704_vm7, %v1675_v55  ;;  %2773 = vperm.xlu1 %3616, %v2735_v0  }
  0xf8   : > { %2778 = vperm.xlu0 %3615, %v2736_v60  }
  0xf9   : > { %v1833_v63 = vpop.permute.xlu1 %1832 }
  0xfa   : > { %v1831_v61 = vpop.permute.xlu0 %1830  ;;  %1868 = vst.msk [vmem:[#allocation2 + $0x38] sm:$0xff] %vm1860_vm8, %v1833_v63 }
  0xfb   : > { %1867 = vst.msk [vmem:[#allocation2 + $0x30] sm:$0xff] %vm1860_vm8, %v1831_v61  ;;  %2783 = vperm.xlu1 %3616, %v2737_v4  }
  0xfc   : > { %2788 = vperm.xlu0 %3615, %v2738_v1  }
  0xfd   : > { %v2212_v3 = vpop.permute.xlu1 %2211 }
  0xfe   : > { %v2210_v2 = vpop.permute.xlu0 %2209  ;;  %2247 = vst.msk [vmem:[#allocation2 + $0x38] sm:$0xff] %vm2239_vm9, %v2212_v3 }
  0xff   : > { %2246 = vst.msk [vmem:[#allocation2 + $0x30] sm:$0xff] %vm2239_vm9, %v2210_v2  ;;  %2793 = vperm.xlu1 %3616, %v2739_v9  }
 0x100   : > { %2798 = vperm.xlu0 %3615, %v2740_v6  }
 0x101   : > { %v637_v8 = vpop.permute.xlu1 %636 }
 0x102   : > { %v2463_v7 = vpop.permute.xlu0 %2462  ;;  %671 = vst.msk [vmem:[#allocation2 + $0x40] sm:$0xff] %vm662_vm3, %v637_v8 }
 0x103   : > { %2499 = vst.msk [vmem:[#allocation2 + $0x30] sm:$0xff] %vm2492_vm10, %v2463_v7  ;;  %2803 = vperm.xlu1 %3616, %v2741_v5  }
 0x104   : > { %2808 = vperm.xlu0 %3615, %v2742_v10  }
 0x105   : > { %v639_v12 = vpop.permute.xlu1 %638 }
 0x106   : > { %v2465_v11 = vpop.permute.xlu0 %2464  ;;  %672 = vst.msk [vmem:[#allocation2 + $0x48] sm:$0xff] %vm662_vm3, %v639_v12 }
 0x107   : > { %2500 = vst.msk [vmem:[#allocation2 + $0x38] sm:$0xff] %vm2492_vm10, %v2465_v11  ;;  %2813 = vperm.xlu1 %3616, %v2743_v17  }
 0x108   : > { %2818 = vperm.xlu0 %3615, %v2744_v13  }
 0x109   : > { %v893_v16 = vpop.permute.xlu1 %892 }
 0x10a   : > { %v891_v14 = vpop.permute.xlu0 %890  ;;  %v2513_v15 = vld [vmem:[#allocation2 + $0x30] sm:$0xff]  ;;  %926 = vst.msk [vmem:[#allocation2 + $0x48] sm:$0xff] %vm916_vm4, %v893_v16 }
 0x10b   : > { %925 = vst.msk [vmem:[#allocation2 + $0x40] sm:$0xff] %vm916_vm4, %v891_v14  ;;  %3573 = vmatprep.mubr.msk.bf16.mxu0 %vm2541_vm12, %v2513_v15  ;;  %2823 = vperm.xlu1 %3616, %v2745_v22  }
 0x10c   : > { %2828 = vperm.xlu0 %3615, %v2746_v18  }
 0x10d   : > { %v1049_v21 = vpop.permute.xlu1 %1048 }
 0x10e   : > { %v1047_v19 = vpop.permute.xlu0 %1046  ;;  %v2514_v20 = vld [vmem:[#allocation2 + $0x38] sm:$0xff]  ;;  %1082 = vst.msk [vmem:[#allocation2 + $0x48] sm:$0xff] %vm1072_vm5, %v1049_v21 }
 0x10f   : > { %1081 = vst.msk [vmem:[#allocation2 + $0x40] sm:$0xff] %vm1072_vm5, %v1047_v19  ;;  %3574 = vmatmul.mubr.msk.bf16.gmra.mrb[12].mxu0 %vm2541_vm12, %v2514_v20  ;;  %2833 = vperm.xlu1 %3616, %v2747_v26  }
 0x110   : > { %2838 = vperm.xlu0 %3615, %v2748_v23  }
 0x111   : > { %v1428_v25 = vpop.permute.xlu1 %1427 }
 0x112   : > { %v1426_v24 = vpop.permute.xlu0 %1425  ;;  %1461 = vst.msk [vmem:[#allocation2 + $0x48] sm:$0xff] %vm1451_vm6, %v1428_v25 }
 0x113   : > { %1460 = vst.msk [vmem:[#allocation2 + $0x40] sm:$0xff] %vm1451_vm6, %v1426_v24  ;;  %2843 = vperm.xlu1 %3616, %v2749_v30  }
 0x114   : > { %2848 = vperm.xlu0 %3615, %v2750_v27  }
 0x115   : > { %v1681_v29 = vpop.permute.xlu1 %1680 }
 0x116   : > { %v1679_v28 = vpop.permute.xlu0 %1678  ;;  %1714 = vst.msk [vmem:[#allocation2 + $0x48] sm:$0xff] %vm1704_vm7, %v1681_v29 }
 0x117   : > { %1713 = vst.msk [vmem:[#allocation2 + $0x40] sm:$0xff] %vm1704_vm7, %v1679_v28  ;;  %2853 = vperm.xlu1 %3616, %v2751_v34  }
 0x118   : > { %2858 = vperm.xlu0 %3615, %v2752_v31  }
 0x119   : > { %v1837_v33 = vpop.permute.xlu1 %1836 }
 0x11a   : > { %v1835_v32 = vpop.permute.xlu0 %1834  ;;  %1870 = vst.msk [vmem:[#allocation2 + $0x48] sm:$0xff] %vm1860_vm8, %v1837_v33 }
 0x11b   : > { %1869 = vst.msk [vmem:[#allocation2 + $0x40] sm:$0xff] %vm1860_vm8, %v1835_v32  ;;  %2863 = vperm.xlu1 %3616, %v2753_v37  }
 0x11c   : > { %2868 = vperm.xlu0 %3615, %v2754_v35  }
 0x11d   : > { %v2216_v39 = vpop.permute.xlu1 %2215 }
 0x11e   : > { %v2214_v36 = vpop.permute.xlu0 %2213  ;;  %2249 = vst.msk [vmem:[#allocation2 + $0x48] sm:$0xff] %vm2239_vm9, %v2216_v39 }
 0x11f   : > { %2248 = vst.msk [vmem:[#allocation2 + $0x40] sm:$0xff] %vm2239_vm9, %v2214_v36  ;;  %2873 = vperm.xlu1 %3616, %v2755_v41  }
 0x120   : > { %2878 = vperm.xlu0 %3615, %v2756_v38  }
 0x121   : > { %v641_v43 = vpop.permute.xlu1 %640 }
 0x122   : > { %v2467_v40 = vpop.permute.xlu0 %2466  ;;  %673 = vst.msk [vmem:[#allocation2 + $0x50] sm:$0xff] %vm662_vm3, %v641_v43 }
 0x123   : > { %2501 = vst.msk [vmem:[#allocation2 + $0x40] sm:$0xff] %vm2492_vm10, %v2467_v40  ;;  %2883 = vperm.xlu1 %3616, %v2757_v45  }
 0x124   : > { %2888 = vperm.xlu0 %3615, %v2758_v42  }
 0x125   : > { %v643_v47 = vpop.permute.xlu1 %642 }
 0x126   : > { %v2469_v44 = vpop.permute.xlu0 %2468  ;;  %674 = vst.msk [vmem:[#allocation2 + $0x58] sm:$0xff] %vm662_vm3, %v643_v47 }
 0x127   : > { %2502 = vst.msk [vmem:[#allocation2 + $0x48] sm:$0xff] %vm2492_vm10, %v2469_v44  ;;  %2893 = vperm.xlu1 %3616, %v2759_v50  }
 0x128   : > { %2898 = vperm.xlu0 %3615, %v2760_v46  }
 0x129   : > { %v897_v51 = vpop.permute.xlu1 %896 }
 0x12a   : > { %v895_v48 = vpop.permute.xlu0 %894  ;;  %v2515_v49 = vld [vmem:[#allocation2 + $0x40] sm:$0xff]  ;;  %928 = vst.msk [vmem:[#allocation2 + $0x58] sm:$0xff] %vm916_vm4, %v897_v51 }
 0x12b   : > { %927 = vst.msk [vmem:[#allocation2 + $0x50] sm:$0xff] %vm916_vm4, %v895_v48  ;;  %3577 = vmatprep.mubr.msk.bf16.mxu1 %vm2541_vm12, %v2515_v49 }
 0x12d   : > { %v1053_v54 = vpop.permute.xlu1 %1052 }
 0x12e   : > { %v1051_v52 = vpop.permute.xlu0 %1050  ;;  %v2516_v53 = vld [vmem:[#allocation2 + $0x48] sm:$0xff]  ;;  %1084 = vst.msk [vmem:[#allocation2 + $0x58] sm:$0xff] %vm1072_vm5, %v1053_v54 }
 0x12f   : > { %1083 = vst.msk [vmem:[#allocation2 + $0x50] sm:$0xff] %vm1072_vm5, %v1051_v52  ;;  %3578 = vmatmul.mubr.msk.bf16.vlgmr.msra.gmra.mrb[0].mxu1 %vm2541_vm12, %v2516_v53 }
 0x131   : > { %v1432_v56 = vpop.permute.xlu1 %1431 }
 0x132   : > { %v1430_v55 = vpop.permute.xlu0 %1429  ;;  %1463 = vst.msk [vmem:[#allocation2 + $0x58] sm:$0xff] %vm1451_vm6, %v1432_v56 }
 0x133   : > { %1462 = vst.msk [vmem:[#allocation2 + $0x50] sm:$0xff] %vm1451_vm6, %v1430_v55 }
 0x135   : > { %v1685_v58 = vpop.permute.xlu1 %1684 }
 0x136   : > { %v1683_v57 = vpop.permute.xlu0 %1682  ;;  %1716 = vst.msk [vmem:[#allocation2 + $0x58] sm:$0xff] %vm1704_vm7, %v1685_v58 }
 0x137   : > { %1715 = vst.msk [vmem:[#allocation2 + $0x50] sm:$0xff] %vm1704_vm7, %v1683_v57 }
 0x139   : > { %v1841_v60 = vpop.permute.xlu1 %1840 }
 0x13a   : > { %v1839_v59 = vpop.permute.xlu0 %1838  ;;  %1872 = vst.msk [vmem:[#allocation2 + $0x58] sm:$0xff] %vm1860_vm8, %v1841_v60 }
 0x13b   : > { %1871 = vst.msk [vmem:[#allocation2 + $0x50] sm:$0xff] %vm1860_vm8, %v1839_v59 }
 0x13d   : > { %v2220_v62 = vpop.permute.xlu1 %2219 }
 0x13e   : > { %v2218_v61 = vpop.permute.xlu0 %2217  ;;  %2251 = vst.msk [vmem:[#allocation2 + $0x58] sm:$0xff] %vm2239_vm9, %v2220_v62 }
 0x13f   : > { %2250 = vst.msk [vmem:[#allocation2 + $0x50] sm:$0xff] %vm2239_vm9, %v2218_v61 }
 0x141   : > { %v645_v0 = vpop.permute.xlu1 %644 }
 0x142   : > { %v2471_v63 = vpop.permute.xlu0 %2470  ;;  %675 = vst.msk [vmem:[#allocation2 + $0x60] sm:$0xff] %vm662_vm3, %v645_v0 }
 0x143   : > { %2503 = vst.msk [vmem:[#allocation2 + $0x50] sm:$0xff] %vm2492_vm10, %v2471_v63 }
 0x145   : > { %v647_v2 = vpop.permute.xlu1 %646 }
 0x146   : > { %v2473_v1 = vpop.permute.xlu0 %2472  ;;  %676 = vst.msk [vmem:[#allocation2 + $0x68] sm:$0xff] %vm662_vm3, %v647_v2 }
 0x147   : > { %2504 = vst.msk [vmem:[#allocation2 + $0x58] sm:$0xff] %vm2492_vm10, %v2473_v1 }
 0x149   : > { %v901_v6 = vpop.permute.xlu1 %900 }
 0x14a   : > { %v899_v3 = vpop.permute.xlu0 %898  ;;  %v2517_v4 = vld [vmem:[#allocation2 + $0x50] sm:$0xff]  ;;  %930 = vst.msk [vmem:[#allocation2 + $0x68] sm:$0xff] %vm916_vm4, %v901_v6 }
 0x14b   : > { %929 = vst.msk [vmem:[#allocation2 + $0x60] sm:$0xff] %vm916_vm4, %v899_v3  ;;  %3581 = vmatprep.mubr.msk.bf16.mxu1 %vm2541_vm12, %v2517_v4 }
 0x14d   : > { %v1057_v9 = vpop.permute.xlu1 %1056 }
 0x14e   : > { %v1055_v7 = vpop.permute.xlu0 %1054  ;;  %v2518_v8 = vld [vmem:[#allocation2 + $0x58] sm:$0xff]  ;;  %1086 = vst.msk [vmem:[#allocation2 + $0x68] sm:$0xff] %vm1072_vm5, %v1057_v9 }
 0x14f   : > { %1085 = vst.msk [vmem:[#allocation2 + $0x60] sm:$0xff] %vm1072_vm5, %v1055_v7  ;;  %3582 = vmatmul.mubr.msk.bf16.gmra.mrb[4].mxu1 %vm2541_vm12, %v2518_v8 }
 0x151   : > { %v1436_v11 = vpop.permute.xlu1 %1435 }
 0x152   : > { %v1434_v10 = vpop.permute.xlu0 %1433  ;;  %1465 = vst.msk [vmem:[#allocation2 + $0x68] sm:$0xff] %vm1451_vm6, %v1436_v11 }
 0x153   : > { %1464 = vst.msk [vmem:[#allocation2 + $0x60] sm:$0xff] %vm1451_vm6, %v1434_v10 }
 0x155   : > { %v1689_v5 = vpop.permute.xlu1 %1688 }
 0x156   : > { %v1687_v12 = vpop.permute.xlu0 %1686  ;;  %1718 = vst.msk [vmem:[#allocation2 + $0x68] sm:$0xff] %vm1704_vm7, %v1689_v5 }
 0x157   : > { %1717 = vst.msk [vmem:[#allocation2 + $0x60] sm:$0xff] %vm1704_vm7, %v1687_v12 }
 0x159   : > { %v1845_v14 = vpop.permute.xlu1 %1844 }
 0x15a   : > { %v1843_v13 = vpop.permute.xlu0 %1842  ;;  %1874 = vst.msk [vmem:[#allocation2 + $0x68] sm:$0xff] %vm1860_vm8, %v1845_v14 }
 0x15b   : > { %1873 = vst.msk [vmem:[#allocation2 + $0x60] sm:$0xff] %vm1860_vm8, %v1843_v13 }
 0x15d   : > { %v2224_v16 = vpop.permute.xlu1 %2223 }
 0x15e   : > { %v2222_v15 = vpop.permute.xlu0 %2221  ;;  %2253 = vst.msk [vmem:[#allocation2 + $0x68] sm:$0xff] %vm2239_vm9, %v2224_v16 }
 0x15f   : > { %2252 = vst.msk [vmem:[#allocation2 + $0x60] sm:$0xff] %vm2239_vm9, %v2222_v15 }
 0x161   : > { %v2477_v18 = vpop.permute.xlu1 %2476 }
 0x162   : > { %v2475_v17 = vpop.permute.xlu0 %2474  ;;  %2506 = vst.msk [vmem:[#allocation2 + $0x68] sm:$0xff] %vm2492_vm10, %v2477_v18 }
 0x163   : > { %2505 = vst.msk [vmem:[#allocation2 + $0x60] sm:$0xff] %vm2492_vm10, %v2475_v17 }
 0x169   : > { %v2520_v20 = vld [vmem:[#allocation2 + $0x68] sm:$0xff] }
 0x16a   : > { %v2519_v19 = vld [vmem:[#allocation2 + $0x60] sm:$0xff] }
 0x16b   : > { %3585 = vmatprep.mubr.msk.bf16.mxu1 %vm2541_vm12, %v2519_v19 }
 0x16c   : > { %3586 = vmatmul.mubr.msk.bf16.gmra.mrb[8].mxu1 %vm2541_vm12, %v2520_v20 }
 0x172   : > { %v2769_v21 = vpop.permute.xlu1 %2768 }
 0x173   : > { %v2764_v22 = vpop.permute.xlu0 %2763 }
 0x176   : > { %v2774_v24 = vpop.permute.xlu1 %2773 }
 0x177   : > { %v2779_v28 = vpop.permute.xlu0 %2778 }
 0x17a   : > { %v2784_v43 = vpop.permute.xlu1 %2783 }
 0x17b   : > { %v2789_v44 = vpop.permute.xlu0 %2788 }
 0x17e   : > { %v2794_v46 = vpop.permute.xlu1 %2793 }
 0x17f   : > { %v2799_v50 = vpop.permute.xlu0 %2798 }
 0x182   : > { %v3563_v23 = vpop.f32.mrb[0].mxu0  ;;  %v2804_v3 = vpop.permute.xlu1 %2803 }
 0x183   : > { %v2622_v25 = vpop.f32.mrb[1].mxu0  ;;  %v2903_v30 = vmul.f32 %v3563_v23, %v2774_v24  ;;  %v2809_v4 = vpop.permute.xlu0 %2808 }
 0x184   : > { %v2901_v26 = vmul.f32 %v2764_v22, %v2622_v25  ;;  %v3564_v27 = vpop.f32.mrb[2].mxu0 }
 0x185   : > { %v2625_v29 = vpop.f32.mrb[3].mxu0  ;;  %v2904_v33 = vmul.f32 %v3564_v27, %v2779_v28  ;;  %v2965_v36 = vmul.f32 %v2903_v30, %v2903_v30 }
 0x186   : > { %v2902_v31 = vmul.f32 %v2769_v21, %v2625_v29  ;;  %v2963_v32 = vmul.f32 %v2901_v26, %v2901_v26  ;;  %v2814_v7 = vpop.permute.xlu1 %2813 }
 0x187   : > { %v2966_v39 = vmul.f32 %v2904_v33, %v2904_v33  ;;  %v2819_v11 = vpop.permute.xlu0 %2818 }
 0x188   : > { %v2929_v34 = vadd.f32 %v2902_v31, %v2901_v26  ;;  %v2964_v35 = vmul.f32 %v2902_v31, %v2902_v31 }
 0x18a   : > { %v2930_v37 = vadd.f32 %v2929_v34, %v2903_v30  ;;  %v2991_v38 = vadd.f32 %v2964_v35, %v2963_v32  ;;  %v2824_v27 = vpop.permute.xlu1 %2823 }
 0x18b   : > { %v2829_v28 = vpop.permute.xlu0 %2828 }
 0x18c   : > { %v2992_v40 = vadd.f32 %v2991_v38, %v2965_v36  ;;  %v2931_v41 = vadd.f32 %v2930_v37, %v2904_v33 }
 0x18e   : > { %v2993_v42 = vadd.f32 %v2992_v40, %v2966_v39  ;;  %v2834_v30 = vpop.permute.xlu1 %2833 }
 0x18f   : > { %v2839_v34 = vpop.permute.xlu0 %2838 }
 0x1a2   : > { %v3567_v45 = vpop.f32.mrb[4].mxu0 }
 0x1a3   : > { %v2638_v47 = vpop.f32.mrb[5].mxu0  ;;  %v2907_v52 = vmul.f32 %v3567_v45, %v2794_v46 }
 0x1a4   : > { %v2905_v48 = vmul.f32 %v2784_v43, %v2638_v47  ;;  %v3568_v49 = vpop.f32.mrb[6].mxu0 }
 0x1a5   : > { %v2641_v51 = vpop.f32.mrb[7].mxu0  ;;  %v2908_v57 = vmul.f32 %v3568_v49, %v2799_v50  ;;  %v2969_v60 = vmul.f32 %v2907_v52, %v2907_v52 }
 0x1a6   : > { %v2932_v53 = vadd.f32 %v2931_v41, %v2905_v48  ;;  %v2967_v54 = vmul.f32 %v2905_v48, %v2905_v48  ;;  %v2906_v55 = vmul.f32 %v2789_v44, %v2641_v51  ;;  %v2844_v51 = vpop.permute.xlu1 %2843 }
 0x1a7   : > { %v2970_v63 = vmul.f32 %v2908_v57, %v2908_v57 }
 0x1a8   : > { %v2994_v56 = vadd.f32 %v2993_v42, %v2967_v54  ;;  %v2933_v58 = vadd.f32 %v2932_v53, %v2906_v55  ;;  %v2968_v59 = vmul.f32 %v2906_v55, %v2906_v55 }
 0x1aa   : > { %v2934_v61 = vadd.f32 %v2933_v58, %v2907_v52  ;;  %v2995_v62 = vadd.f32 %v2994_v56, %v2968_v59  ;;  %v2849_v52 = vpop.permute.xlu0 %2848 }
 0x1ac   : > { %v2996_v0 = vadd.f32 %v2995_v62, %v2969_v60  ;;  %v2935_v1 = vadd.f32 %v2934_v61, %v2908_v57  ;;  %v2854_v57 = vpop.permute.xlu1 %2853 }
 0x1ae   : > { %v2997_v2 = vadd.f32 %v2996_v0, %v2970_v63  ;;  %v2859_v63 = vpop.permute.xlu0 %2858 }
 0x1c2   : > { %v3571_v6 = vpop.f32.mrb[8].mxu0 }
 0x1c3   : > { %v2654_v8 = vpop.f32.mrb[9].mxu0  ;;  %v2911_v5 = vmul.f32 %v3571_v6, %v2814_v7 }
 0x1c4   : > { %v2909_v9 = vmul.f32 %v2804_v3, %v2654_v8  ;;  %v3572_v10 = vpop.f32.mrb[10].mxu0 }
 0x1c5   : > { %v2657_v12 = vpop.f32.mrb[11].mxu0  ;;  %v2912_v17 = vmul.f32 %v3572_v10, %v2819_v11  ;;  %v2973_v20 = vmul.f32 %v2911_v5, %v2911_v5 }
 0x1c6   : > { %v2936_v13 = vadd.f32 %v2935_v1, %v2909_v9  ;;  %v2971_v14 = vmul.f32 %v2909_v9, %v2909_v9  ;;  %v2910_v15 = vmul.f32 %v2809_v4, %v2657_v12  ;;  %v2864_v12 = vpop.permute.xlu1 %2863 }
 0x1c7   : > { %v2974_v23 = vmul.f32 %v2912_v17, %v2912_v17 }
 0x1c8   : > { %v2998_v16 = vadd.f32 %v2997_v2, %v2971_v14  ;;  %v2937_v18 = vadd.f32 %v2936_v13, %v2910_v15  ;;  %v2972_v19 = vmul.f32 %v2910_v15, %v2910_v15 }
 0x1ca   : > { %v2938_v21 = vadd.f32 %v2937_v18, %v2911_v5  ;;  %v2999_v22 = vadd.f32 %v2998_v16, %v2972_v19  ;;  %v2869_v5 = vpop.permute.xlu0 %2868 }
 0x1cc   : > { %v3000_v24 = vadd.f32 %v2999_v22, %v2973_v20  ;;  %v2939_v25 = vadd.f32 %v2938_v21, %v2912_v17  ;;  %v2874_v17 = vpop.permute.xlu1 %2873 }
 0x1ce   : > { %v3001_v26 = vadd.f32 %v3000_v24, %v2974_v23  ;;  %v2879_v23 = vpop.permute.xlu0 %2878 }
 0x1e2   : > { %v3575_v29 = vpop.f32.mrb[12].mxu0 }
 0x1e3   : > { %v2670_v31 = vpop.f32.mrb[13].mxu0  ;;  %v2915_v36 = vmul.f32 %v3575_v29, %v2834_v30 }
 0x1e4   : > { %v2913_v32 = vmul.f32 %v2824_v27, %v2670_v31  ;;  %v3576_v33 = vpop.f32.mrb[14].mxu0 }
 0x1e5   : > { %v2673_v35 = vpop.f32.mrb[15].mxu0  ;;  %v2916_v41 = vmul.f32 %v3576_v33, %v2839_v34  ;;  %v2977_v44 = vmul.f32 %v2915_v36, %v2915_v36 }
 0x1e6   : > { %v2940_v37 = vadd.f32 %v2939_v25, %v2913_v32  ;;  %v2975_v38 = vmul.f32 %v2913_v32, %v2913_v32  ;;  %v2914_v39 = vmul.f32 %v2829_v28, %v2673_v35  ;;  %v2884_v35 = vpop.permute.xlu1 %2883 }
 0x1e7   : > { %v2978_v47 = vmul.f32 %v2916_v41, %v2916_v41 }
 0x1e8   : > { %v3002_v40 = vadd.f32 %v3001_v26, %v2975_v38  ;;  %v2941_v42 = vadd.f32 %v2940_v37, %v2914_v39  ;;  %v2976_v43 = vmul.f32 %v2914_v39, %v2914_v39 }
 0x1ea   : > { %v2942_v45 = vadd.f32 %v2941_v42, %v2915_v36  ;;  %v3003_v46 = vadd.f32 %v3002_v40, %v2976_v43  ;;  %v2889_v36 = vpop.permute.xlu0 %2888 }
 0x1ec   : > { %v3004_v48 = vadd.f32 %v3003_v46, %v2977_v44  ;;  %v2943_v49 = vadd.f32 %v2942_v45, %v2916_v41  ;;  %v2894_v41 = vpop.permute.xlu1 %2893 }
 0x1ee   : > { %v3005_v50 = vadd.f32 %v3004_v48, %v2978_v47  ;;  %v2899_v47 = vpop.permute.xlu0 %2898 }
 0x202   : > { %v3579_v53 = vpop.f32.mrb[0].mxu1 }
 0x203   : > { %v2686_v54 = vpop.f32.mrb[1].mxu1  ;;  %v2919_v59 = vmul.f32 %v3579_v53, %v2854_v57 }
 0x204   : > { %v2917_v55 = vmul.f32 %v2844_v51, %v2686_v54  ;;  %v3580_v56 = vpop.f32.mrb[2].mxu1 }
 0x205   : > { %v2689_v58 = vpop.f32.mrb[3].mxu1  ;;  %v2920_v1 = vmul.f32 %v3580_v56, %v2859_v63  ;;  %v2981_v4 = vmul.f32 %v2919_v59, %v2919_v59 }
 0x206   : > { %v2944_v60 = vadd.f32 %v2943_v49, %v2917_v55  ;;  %v2979_v61 = vmul.f32 %v2917_v55, %v2917_v55  ;;  %v2918_v62 = vmul.f32 %v2849_v52, %v2689_v58 }
 0x207   : > { %v2982_v8 = vmul.f32 %v2920_v1, %v2920_v1 }
 0x208   : > { %v3006_v0 = vadd.f32 %v3005_v50, %v2979_v61  ;;  %v2945_v2 = vadd.f32 %v2944_v60, %v2918_v62  ;;  %v2980_v3 = vmul.f32 %v2918_v62, %v2918_v62 }
 0x20a   : > { %v2946_v6 = vadd.f32 %v2945_v2, %v2919_v59  ;;  %v3007_v7 = vadd.f32 %v3006_v0, %v2980_v3 }
 0x20c   : > { %v3008_v9 = vadd.f32 %v3007_v7, %v2981_v4  ;;  %v2947_v10 = vadd.f32 %v2946_v6, %v2920_v1 }
 0x20e   : > { %v3009_v11 = vadd.f32 %v3008_v9, %v2982_v8 }
 0x222   : > { %v3583_v13 = vpop.f32.mrb[4].mxu1 }
 0x223   : > { %v2702_v14 = vpop.f32.mrb[5].mxu1  ;;  %v2923_v19 = vmul.f32 %v3583_v13, %v2874_v17 }
 0x224   : > { %v2921_v15 = vmul.f32 %v2864_v12, %v2702_v14  ;;  %v3584_v16 = vpop.f32.mrb[6].mxu1 }
 0x225   : > { %v2705_v18 = vpop.f32.mrb[7].mxu1  ;;  %v2924_v25 = vmul.f32 %v3584_v16, %v2879_v23  ;;  %v2985_v28 = vmul.f32 %v2923_v19, %v2923_v19 }
 0x226   : > { %v2948_v20 = vadd.f32 %v2947_v10, %v2921_v15  ;;  %v2983_v21 = vmul.f32 %v2921_v15, %v2921_v15  ;;  %v2922_v22 = vmul.f32 %v2869_v5, %v2705_v18 }
 0x227   : > { %v2986_v31 = vmul.f32 %v2924_v25, %v2924_v25 }
 0x228   : > { %v3010_v24 = vadd.f32 %v3009_v11, %v2983_v21  ;;  %v2949_v26 = vadd.f32 %v2948_v20, %v2922_v22  ;;  %v2984_v27 = vmul.f32 %v2922_v22, %v2922_v22 }
 0x22a   : > { %v2950_v29 = vadd.f32 %v2949_v26, %v2923_v19  ;;  %v3011_v30 = vadd.f32 %v3010_v24, %v2984_v27 }
 0x22c   : > { %v3012_v32 = vadd.f32 %v3011_v30, %v2985_v28  ;;  %v2951_v33 = vadd.f32 %v2950_v29, %v2924_v25 }
 0x22e   : > { %v3013_v34 = vadd.f32 %v3012_v32, %v2986_v31 }
 0x23f   : > { %v3587_v37 = vpop.f32.mrb[8].mxu1 }
 0x240   : > { %v2718_v38 = vpop.f32.mrb[9].mxu1  ;;  %v2927_v43 = vmul.f32 %v3587_v37, %v2894_v41 }
 0x241   : > { %v2925_v39 = vmul.f32 %v2884_v35, %v2718_v38  ;;  %v3588_v40 = vpop.f32.mrb[10].mxu1 }
 0x242   : > { %v2721_v42 = vpop.f32.mrb[11].mxu1  ;;  %v2928_v49 = vmul.f32 %v3588_v40, %v2899_v47  ;;  %v2989_v52 = vmul.f32 %v2927_v43, %v2927_v43 }
 0x243   : > { %v2952_v44 = vadd.f32 %v2951_v33, %v2925_v39  ;;  %v2987_v45 = vmul.f32 %v2925_v39, %v2925_v39  ;;  %v2926_v46 = vmul.f32 %v2889_v36, %v2721_v42 }
 0x244   : > { %v2990_v55 = vmul.f32 %v2928_v49, %v2928_v49 }
 0x245   : > { %v3014_v48 = vadd.f32 %v3013_v34, %v2987_v45  ;;  %v2953_v50 = vadd.f32 %v2952_v44, %v2926_v46  ;;  %v2988_v51 = vmul.f32 %v2926_v46, %v2926_v46 }
 0x247   : > { %v2954_v53 = vadd.f32 %v2953_v50, %v2927_v43  ;;  %v3015_v54 = vadd.f32 %v3014_v48, %v2988_v51 }
 0x249   : > { %v2955_v56 = vadd.f32 %v2954_v53, %v2928_v49  ;;  %v3016_v57 = vadd.f32 %v3015_v54, %v2989_v52 }
 0x24b   : > { %v2956_v58 = vrot.slane %v2955_v56, 4  ;;  %v3017_v59 = vadd.f32 %v3016_v57, %v2990_v55 }
 0x24d   : > { %v2957_v60 = vadd.f32 %v2956_v58, %v2955_v56  ;;  %v3018_v61 = vrot.slane %v3017_v59, 4 }
 0x24f   : > { %v2958_v62 = vrot.slane %v2957_v60, 2  ;;  %v3019_v63 = vadd.f32 %v3018_v61, %v3017_v59 }
 0x251   : > { %v2959_v0 = vadd.f32 %v2958_v62, %v2957_v60  ;;  %v3020_v1 = vrot.slane %v3019_v63, 2 }
 0x253   : > { %v2960_v2 = vrot.slane %v2959_v0, 1  ;;  %v3021_v3 = vadd.f32 %v3020_v1, %v3019_v63 }
 0x255   : > { %v2961_v4 = vadd.f32 %v2960_v2, %v2959_v0  ;;  %v3022_v6 = vrot.slane %v3021_v3, 1 }
 0x257   : > { %2962 = vst [vmem:[%s168_s16] sm:$0x1] %v2961_v4  ;;  %v3023_v7 = vadd.f32 %v3022_v6, %v3021_v3 }
 0x259   : > { %3024 = vst [vmem:[%s168_s16 + $0x1] sm:$0x1] %v3023_v7 }
 0x25a PF: > { %s13_s12 = sadd.s32 1, %s3836_s12  }
 0x25b   : > { %p10_p4 = scmp.ge.s32.totalorder %s13_s12, 4  }
 0x25d   :  { %12 = sbr.rel (!%p10_p4) target bundleno = 1 (0x1), region = 64 }

// kernel: conv2d_bn_relu.3
= control target key start
LH: loop header
LB: loop body
LE: loop exit
PB: predicated region body
PF: predicated region fallthrough
CT: control target
= control target key end

     0   :  { %s3738_s15 = smov 0   ;;  %s4452_s0 = inlined_call_operand.vmem [shape: bf16[2,16,18,4], index: 0, kind: input, shape index: {}]   ;;  %s4453_s1 = inlined_call_operand.vmem [shape: bf16[36,128], index: 1, kind: input, shape index: {}]   ;;  %s4454_s2 = inlined_call_operand.vmem [shape: f32[1,128], index: 2, kind: input, shape index: {}]   ;;  %s4455_s3 = inlined_call_operand.vmem [shape: f32[1,128], index: 3, kind: input, shape index: {}]   ;;  %s4456_s4 = inlined_call_operand.vmem [shape: f32[2,14,14,8], index: 4, kind: output, shape index: {}]  }
   0x1 LB: > { %s2945_s16 = sadd.s32 4294967295, %s3703_s15   ;;  %p2949_p0 = scmp.ge.s32.totalorder %s3703_s15, 1  ;;  %s3703_s15 = sphi %s3738_s15, %s14_s15  }
   0x2   : > { %p162_p1 = scmp.lt.s32.totalorder %s3703_s15, 3 }
   0x4   : > { %p163_p2 = pnand %p2949_p0, %p162_p1 }
   0x5   : > { %p188_p3 = scmp.lt.s32.totalorder (!%p163_p2), %s2945_s16, 1  ;;  %vm860_vm0 = vcmask (!%p163_p2), 1046528   ;;  %s3705_s21 = smov (!%p163_p2), 12   ;;  %vm480_vm1 = vsmask.f32 (!%p163_p2), 7424  ;;  %vm311_vm2 = vcmask (!%p163_p2), 31744  }
   0x6   : > { %166 = sbr.rel (%p163_p2) target bundleno = 586 (0x24a), region = 36  ;;  %s3706_s22 = smov (!%p163_p2), 20   ;;  %vm691_vm3 = vcmask (!%p163_p2), 64544   ;;  %vm945_vm4 = vcmask (!%p163_p2), 97344   ;;  %vm1101_vm5 = vcmask (!%p163_p2), 130144   ;;  %vm1480_vm6 = vcmask (!%p163_p2), 162944  }
   0x7   : > { %s3707_s23 = smov (!%p163_p2), 8   ;;  %s3708_s24 = smov (!%p163_p2), 4   ;;  %vm1733_vm7 = vcmask (!%p163_p2), 195744   ;;  %vm1889_vm8 = vcmask (!%p163_p2), 228544   ;;  %vm2268_vm9 = vcmask (!%p163_p2), 261344   ;;  %vm2521_vm10 = vcmask (!%p163_p2), 294144  }
   0x8   : > { %s3709_s25 = smov (!%p163_p2), 16   ;;  %s3710_s26 = smov (!%p163_p2), 24   ;;  %vm2613_vm11 = vcmask (!%p163_p2), 1041408   ;;  %vm2570_vm12 = vcmask (!%p163_p2), 293888   ;;  %vm2860_vm13 = vcmask (!%p163_p2), 64512   ;;  %vm2862_vm14 = vcmask (!%p163_p2), 62464  }
   0x9   : > { %s3711_s27 = smov (!%p163_p2), 28   ;;  %s3712_s28 = smov (!%p163_p2), 32  }
   0xd   : > { %s4458_s16 = smov (!%p188_p3, %s2945_s16), 1 }
   0xe   : > { %s3466_s17 = smul.u32 192, %s4458_s16 }
   0xf   : > { %s3467_s11 = smul.u32 224, %s4458_s16 }
  0x10   : > { %s3752_s20 = scalar_lea.vmem %s4452_s0, %s3466_s17 }
  0x11   : > { %v3484_v0 = vld [vmem:[%s3752_s20 + $0x18] sm:$0xff]   ;;  %v3485_v1 = vld [vmem:[%s3752_s20 + $0xc] sm:$0xff]   ;;  %v3487_v3 = vld [vmem:[%s3752_s20 + $0x14] ss:$0 sps:$4 sm:$0x11]   ;;  %s4339_s16 = scalar_lea.vmem %s4456_s4, %s3467_s11 }
  0x12   : > { %1061 = vrot.lane.b32.xlu1 %v3484_v0, %s3705_s21  ;;  %1059 = vrot.lane.b32.xlu0 %v3485_v1, %s3705_s21  ;;  %v3486_v2 = vld [vmem:[%s3752_s20 + $0xc] sm:$0xfe]   ;;  %v3492_v4 = vld [vmem:[%s3752_s20] sm:$0xff]   ;;  %v1650_v6 = vrot.slane %v3487_v3, 1 }
  0x13   : > { %v1649_v5 = vrot.slane %v3486_v2, 1  ;;  %v3488_v7 = vld [vmem:[%s3752_s20] sm:$0xfe]   ;;  %v3489_v8 = vld [vmem:[%s3752_s20 + $0x8] ss:$0 sps:$4 sm:$0x11]  }
  0x14   : > { %v482_v9 = vshrl.u32 %v3492_v4, 16  ;;  %v861_v11 = vrot.slane %v3488_v7, 1  ;;  %v3490_v12 = vld [vmem:[%s3752_s20 + $0xc] sm:$0xfe]   ;;  %v484_v13 = vshll.u32 %v3492_v4, 16  ;;  %v862_v14 = vrot.slane %v3489_v8, 1 }
  0x15   : > { %v1651_v10 = vsel %vm860_vm0, %v1649_v5, %v1650_v6  ;;  %v3491_v15 = vld [vmem:[%s3752_s20 + $0x14] ss:$0 sps:$4 sm:$0x11]   ;;  %v864_v16 = vrot.slane %v3490_v12, 1  ;;  %v3494_v21 = vld [vmem:[%s3752_s20 + $0x18] sm:$0xfe]  }
  0x16   : > { %1691 = vrot.lane.b32.xlu0 %v1651_v10, %s3706_s22  ;;  %v486_v17 = vrot.slane %v484_v13, 1  ;;  %v863_v18 = vsel %vm860_vm0, %v861_v11, %v862_v14  ;;  %v865_v19 = vrot.slane %v3491_v15, 1  ;;  %v3493_v20 = vld [vmem:[%s3752_s20 + $0x8] ss:$0 sps:$4 sm:$0x11]   ;;  %v1652_v26 = vrot.slane %v3494_v21, 1 }
  0x17   : > { %903 = vrot.lane.b32.xlu1 %v863_v18, %s3707_s23  ;;  %v489_v24 = vshll.u32 %v3493_v20, 16  ;;  %v3495_v25 = vld [vmem:[%s3752_s20 + $0x20] ss:$0 sps:$4 sm:$0x11]   ;;  %v3496_v27 = vld [vmem:[%s3752_s20 + $0xc] sm:$0xff]   ;;  %v3498_v31 = vld [vmem:[%s3752_s20 + $0x18] sm:$0xff]  }
  0x18   : > { %v866_v22 = vsel %vm860_vm0, %v864_v16, %v865_v19  ;;  %v487_v23 = vor.u32 %v486_v17, %v482_v9  ;;  %v1653_v29 = vrot.slane %v3495_v25, 1  ;;  %v3497_v30 = vld [vmem:[%s3752_s20 + $0x14] ss:$0 sps:$4 sm:$0x11]   ;;  %v494_v32 = vshrl.u32 %v3496_v27, 16  ;;  %v3500_v41 = vld [vmem:[%s3752_s20 + $0xc] sm:$0xff]  }
  0x19   : > { %v491_v28 = vrot.slane %v489_v24, 1  ;;  %v496_v33 = vshll.u32 %v3496_v27, 16  ;;  %v501_v36 = vshll.u32 %v3497_v30, 16  ;;  %v3499_v37 = vld [vmem:[%s3752_s20 + $0x20] ss:$0 sps:$4 sm:$0x11]  }
  0x1a   : > { %v1654_v35 = vsel %vm860_vm0, %v1652_v26, %v1653_v29  ;;  %v1283_v39 = vshrl.u32 %v3498_v31, 16  ;;  %v1285_v40 = vshll.u32 %v3498_v31, 16  ;;  %v1290_v43 = vshll.u32 %v3499_v37, 16  ;;  %v3501_v46 = vld [vmem:[%s3752_s20 + $0x14] ss:$0 sps:$4 sm:$0x11]  }
  0x1b   : > { %905 = vrot.lane.b32.xlu1 %v866_v22, %s3707_s23  ;;  %v492_v34 = vsel %vm480_vm1, %v487_v23, %v491_v28  ;;  %v498_v38 = vrot.slane %v496_v33, 1  ;;  %v503_v42 = vrot.slane %v501_v36, 1  ;;  %v1271_v47 = vshrl.u32 %v3500_v41, 16  ;;  %v3502_v54 = vld [vmem:[%s3752_s20 + $0x24] sm:$0xff]   ;;  %v3503_v59 = vld [vmem:[%s3752_s20 + $0x18] sm:$0xff]  }
  0x1c   : > { %649 = vrot.lane.b32.xlu0 %v492_v34, %s3708_s24  ;;  %v1287_v45 = vrot.slane %v1285_v40, 1  ;;  %v1273_v48 = vshll.u32 %v3500_v41, 16  ;;  %v1292_v49 = vrot.slane %v1290_v43, 1  ;;  %v1278_v53 = vshll.u32 %v3501_v46, 16  ;;  %v3504_v58 = vld [vmem:[%s3752_s20 + $0x24] sm:$0xff]   ;;  %v3506_v61 = vld [vmem:[%s3752_s20 + $0x18] sm:$0xff]  }
  0x1d   : > { %v499_v44 = vor.u32 %v498_v38, %v494_v32  ;;  %v3505_v60 = vld [vmem:[%s3752_s20 + $0x2c] ss:$0 sps:$4 sm:$0x11]   ;;  %v2071_v63 = vshrl.u32 %v3504_v58, 16  ;;  %v2073_v0 = vshll.u32 %v3504_v58, 16  ;;  %v2059_v3 = vshrl.u32 %v3506_v61, 16 }
  0x1e   : > { %v1288_v51 = vor.u32 %v1287_v45, %v1283_v39  ;;  %v1275_v52 = vrot.slane %v1273_v48, 1  ;;  %v1280_v57 = vrot.slane %v1278_v53, 1  ;;  %v2078_v1 = vshll.u32 %v3505_v60, 16  ;;  %v3507_v2 = vld [vmem:[%s3752_s20 + $0x20] ss:$0 sps:$4 sm:$0x11]  }
  0x1f   : > { %1693 = vrot.lane.b32.xlu1 %v1654_v35, %s3706_s22  ;;  %v504_v50 = vsel %vm480_vm1, %v499_v44, %v503_v42  ;;  %v2061_v4 = vshll.u32 %v3506_v61, 16  ;;  %v2075_v5 = vrot.slane %v2073_v0, 1  ;;  %v3508_v6 = vld [vmem:[%s3752_s20 + $0x18] sm:$0xff]   ;;  %v2066_v9 = vshll.u32 %v3507_v2, 16  ;;  %v3512_v26 = vld [vmem:[%s3752_s20 + $0x24] sm:$0xfe]  }
  0x20   : > { %651 = vrot.lane.b32.xlu0 %v504_v50, %s3708_s24  ;;  %v1293_v55 = vsel %vm480_vm1, %v1288_v51, %v1292_v49  ;;  %v1276_v56 = vor.u32 %v1275_v52, %v1271_v47  ;;  %v2080_v7 = vrot.slane %v2078_v1, 1  ;;  %v3509_v10 = vld [vmem:[%s3752_s20 + $0x20] ss:$0 sps:$4 sm:$0x11]   ;;  %v506_v12 = vshrl.u32 %v3508_v6, 16  ;;  %v3516_v38 = vld [vmem:[%s3752_s20 + $0x6c] sm:$0xff]  }
  0x21   : > { %v2063_v8 = vrot.slane %v2061_v4, 1  ;;  %v2076_v11 = vor.u32 %v2075_v5, %v2071_v63  ;;  %v508_v13 = vshll.u32 %v3508_v6, 16  ;;  %v2068_v15 = vrot.slane %v2066_v9, 1  ;;  %v3510_v17 = vld [vmem:[%s3752_s20 + $0x18] sm:$0xfe]   ;;  %v3514_v32 = vld [vmem:[%s3752_s20 + $0x60] sm:$0xff]  }
  0x22   : > { %v1281_v62 = vsel %vm480_vm1, %v1276_v56, %v1280_v57  ;;  %v513_v16 = vshll.u32 %v3509_v10, 16  ;;  %v3511_v20 = vld [vmem:[%s3752_s20 + $0x20] ss:$0 sps:$4 sm:$0x11]   ;;  %v2437_v23 = vrot.slane %v3510_v17, 1  ;;  %v2440_v30 = vrot.slane %v3512_v26, 1 }
  0x23   : > { %1440 = vrot.lane.b32.xlu1 %v1293_v55, %s3709_s25  ;;  %v2064_v14 = vor.u32 %v2063_v8, %v2059_v3  ;;  %v2081_v18 = vsel %vm480_vm1, %v2076_v11, %v2080_v7  ;;  %v510_v19 = vrot.slane %v508_v13, 1  ;;  %v2438_v25 = vrot.slane %v3511_v20, 1  ;;  %v3513_v27 = vld [vmem:[%s3752_s20 + $0x2c] ss:$0 sps:$4 sm:$0x11]   ;;  %v3518_v40 = vld [vmem:[%s3752_s20 + $0x24] sm:$0xff]  }
  0x24   : > { %1438 = vrot.lane.b32.xlu0 %v1281_v62, %s3709_s25  ;;  %v515_v22 = vrot.slane %v513_v16, 1  ;;  %v2441_v31 = vrot.slane %v3513_v27, 1  ;;  %v3515_v33 = vld [vmem:[%s3752_s20 + $0x68] ss:$0 sps:$4 sm:$0x11]   ;;  %v578_v35 = vshrl.u32 %v3514_v32, 16 }
  0x25   : > { %v2069_v21 = vsel %vm480_vm1, %v2064_v14, %v2068_v15  ;;  %v511_v24 = vor.u32 %v510_v19, %v506_v12  ;;  %v2439_v29 = vsel %vm860_vm0, %v2437_v23, %v2438_v25  ;;  %v580_v36 = vshll.u32 %v3514_v32, 16  ;;  %v3517_v39 = vld [vmem:[%s3752_s20 + $0x74] ss:$0 sps:$4 sm:$0x11]   ;;  %v3520_v56 = vld [vmem:[%s3752_s20 + $0x60] sm:$0xfe]  }
  0x26   : > { %v2442_v34 = vsel %vm860_vm0, %v2440_v30, %v2441_v31  ;;  %v585_v37 = vshll.u32 %v3515_v33, 16  ;;  %v590_v43 = vshrl.u32 %v3516_v38, 16  ;;  %v592_v44 = vshll.u32 %v3516_v38, 16  ;;  %v3519_v46 = vld [vmem:[%s3752_s20 + $0x2c] ss:$0 sps:$4 sm:$0x11]  }
  0x27   : > { %1849 = vrot.lane.b32.xlu1 %v3502_v54, %s3710_s26  ;;  %v516_v28 = vsel %vm480_vm1, %v511_v24, %v515_v22  ;;  %v582_v41 = vrot.slane %v580_v36, 1  ;;  %v597_v45 = vshll.u32 %v3517_v39, 16  ;;  %v518_v47 = vshrl.u32 %v3518_v40, 16  ;;  %v3521_v57 = vld [vmem:[%s3752_s20 + $0x68] ss:$0 sps:$4 sm:$0x11]  }
  0x28   : > { %1847 = vrot.lane.b32.xlu0 %v3503_v59, %s3710_s26  ;;  %v587_v42 = vrot.slane %v585_v37, 1  ;;  %v520_v48 = vshll.u32 %v3518_v40, 16  ;;  %v594_v50 = vrot.slane %v592_v44, 1  ;;  %v525_v53 = vshll.u32 %v3519_v46, 16  ;;  %v3522_v63 = vld [vmem:[%s3752_s20 + $0x18] sm:$0xfe]  }
  0x29   : > { %v583_v49 = vor.u32 %v582_v41, %v578_v35  ;;  %v599_v51 = vrot.slane %v597_v45, 1  ;;  %v885_v61 = vrot.slane %v3520_v56, 1  ;;  %v886_v62 = vrot.slane %v3521_v57, 1  ;;  %v3523_v1 = vld [vmem:[%s3752_s20 + $0x20] ss:$0 sps:$4 sm:$0x11]  }
  0x2a   : > { %v522_v52 = vrot.slane %v520_v48, 1  ;;  %v595_v55 = vor.u32 %v594_v50, %v590_v43  ;;  %v527_v59 = vrot.slane %v525_v53, 1  ;;  %v867_v3 = vrot.slane %v3522_v63, 1  ;;  %v3532_v4 = vld [vmem:[%s3752_s20 + $0x6c] sm:$0xff]   ;;  %v3534_v8 = vld [vmem:[%s3752_s20 + $0x24] sm:$0xff]   ;;  %v3530_v25 = vld [vmem:[%s3752_s20 + $0x78] sm:$0xff]  }
  0x2b   : > { %2228 = vrot.lane.b32.xlu1 %v2081_v18, %s3711_s27  ;;  %v588_v54 = vsel %vm480_vm1, %v583_v49, %v587_v42  ;;  %v887_v2 = vsel %vm860_vm0, %v885_v61, %v886_v62  ;;  %v868_v5 = vrot.slane %v3523_v1, 1  ;;  %v3524_v6 = vld [vmem:[%s3752_s20 + $0x6c] sm:$0xfe]   ;;  %v3525_v7 = vld [vmem:[%s3752_s20 + $0x74] ss:$0 sps:$4 sm:$0x11]  }
  0x2c   : > { %2226 = vrot.lane.b32.xlu0 %v2069_v21, %s3711_s27  ;;  %v523_v58 = vor.u32 %v522_v52, %v518_v47  ;;  %v600_v60 = vsel %vm480_vm1, %v595_v55, %v599_v51  ;;  %v888_v10 = vrot.slane %v3524_v6, 1  ;;  %v889_v11 = vrot.slane %v3525_v7, 1  ;;  %v3526_v12 = vld [vmem:[%s3752_s20 + $0x24] sm:$0xfe]   ;;  %v3528_v17 = vld [vmem:[%s3752_s20 + $0x6c] sm:$0xff]   ;;  %v3536_v27 = vld [vmem:[%s3752_s20 + $0x78] sm:$0xff]  }
  0x2d   : > { %v869_v9 = vsel %vm860_vm0, %v867_v3, %v868_v5  ;;  %v3527_v13 = vld [vmem:[%s3752_s20 + $0x2c] ss:$0 sps:$4 sm:$0x11]   ;;  %v1367_v14 = vshrl.u32 %v3532_v4, 16  ;;  %v870_v16 = vrot.slane %v3526_v12, 1  ;;  %v1369_v18 = vshll.u32 %v3532_v4, 16 }
  0x2e   : > { %v528_v0 = vsel %vm480_vm1, %v523_v58, %v527_v59  ;;  %v890_v15 = vsel %vm860_vm0, %v888_v10, %v889_v11  ;;  %v871_v19 = vrot.slane %v3527_v13, 1  ;;  %v1295_v20 = vshrl.u32 %v3534_v8, 16  ;;  %v3529_v21 = vld [vmem:[%s3752_s20 + $0x24] sm:$0xff]   ;;  %v3533_v26 = vld [vmem:[%s3752_s20 + $0x74] ss:$0 sps:$4 sm:$0x11]  }
  0x2f   : > { %653 = vrot.lane.b32.xlu1 %v516_v28, %s3708_s24  ;;  %v1371_v23 = vrot.slane %v1369_v18, 1  ;;  %v1297_v24 = vshll.u32 %v3534_v8, 16  ;;  %v3531_v30 = vld [vmem:[%s3752_s20 + $0x30] sm:$0xff]   ;;  %v1374_v31 = vshll.u32 %v3533_v26, 16  ;;  %v1381_v35 = vshll.u32 %v3536_v27, 16  ;;  %v3552_v4 = vld [vmem:[%s3752_s20 + $0x78] sm:$0xff]  }
  0x30   : > { %2479 = vrot.lane.b32.xlu0 %v2439_v29, %s3712_s28  ;;  %v872_v22 = vsel %vm860_vm0, %v870_v16, %v871_v19  ;;  %v3538_v29 = vld [vmem:[%s3752_s20 + $0x30] sm:$0xff]   ;;  %v3535_v32 = vld [vmem:[%s3752_s20 + $0x2c] ss:$0 sps:$4 sm:$0x11]   ;;  %v3542_v59 = vld [vmem:[%s3752_s20 + $0x24] sm:$0xfe]  }
  0x31   : > { %v1299_v28 = vrot.slane %v1297_v24, 1  ;;  %v1372_v33 = vor.u32 %v1371_v23, %v1367_v14  ;;  %v1376_v36 = vrot.slane %v1374_v31, 1  ;;  %v1302_v37 = vshll.u32 %v3535_v32, 16  ;;  %v3537_v38 = vld [vmem:[%s3752_s20 + $0x80] ss:$0 sps:$4 sm:$0x11]  }
  0x32   : > { %v1307_v39 = vshrl.u32 %v3538_v29, 16  ;;  %v1383_v41 = vrot.slane %v1381_v35, 1  ;;  %v1309_v42 = vshll.u32 %v3538_v29, 16  ;;  %v1386_v44 = vshll.u32 %v3537_v38, 16  ;;  %v3540_v50 = vld [vmem:[%s3752_s20 + $0x6c] sm:$0xfe]  }
  0x33   : > { %2481 = vrot.lane.b32.xlu1 %v2442_v34, %s3712_s28  ;;  %v1379_v34 = vshrl.u32 %v3536_v27, 16  ;;  %v1300_v40 = vor.u32 %v1299_v28, %v1295_v20  ;;  %v1304_v43 = vrot.slane %v1302_v37, 1  ;;  %v1377_v45 = vsel %vm480_vm1, %v1372_v33, %v1376_v36  ;;  %v3539_v47 = vld [vmem:[%s3752_s20 + $0x38] ss:$0 sps:$4 sm:$0x11]   ;;  %v3554_v16 = vld [vmem:[%s3752_s20 + $0x30] sm:$0xff]  }
  0x34   : > { %665 = vrot.lane.b32.xlu0 %v588_v54, %s3708_s24  ;;  %v1311_v48 = vrot.slane %v1309_v42, 1  ;;  %v1388_v49 = vrot.slane %v1386_v44, 1  ;;  %v1314_v53 = vshll.u32 %v3539_v47, 16  ;;  %v3541_v54 = vld [vmem:[%s3752_s20 + $0x74] ss:$0 sps:$4 sm:$0x11]  }
  0x35   : > { %v1384_v46 = vor.u32 %v1383_v41, %v1379_v34  ;;  %v1305_v51 = vsel %vm480_vm1, %v1300_v40, %v1304_v43  ;;  %v1673_v55 = vrot.slane %v3540_v50, 1  ;;  %v1674_v58 = vrot.slane %v3541_v54, 1  ;;  %v3544_v63 = vld [vmem:[%s3752_s20 + $0x78] sm:$0xfe]   ;;  %v3546_v6 = vld [vmem:[%s3752_s20 + $0x30] sm:$0xfe]  }
  0x36   : > { %v1312_v52 = vor.u32 %v1311_v48, %v1307_v39  ;;  %v1316_v57 = vrot.slane %v1314_v53, 1  ;;  %v1655_v62 = vrot.slane %v3542_v59, 1  ;;  %v3545_v1 = vld [vmem:[%s3752_s20 + $0x80] ss:$0 sps:$4 sm:$0x11]   ;;  %v1676_v3 = vrot.slane %v3544_v63, 1 }
  0x37   : > { %667 = vrot.lane.b32.xlu1 %v600_v60, %s3708_s24  ;;  %v1389_v56 = vsel %vm480_vm1, %v1384_v46, %v1388_v49  ;;  %v3543_v60 = vld [vmem:[%s3752_s20 + $0x2c] ss:$0 sps:$4 sm:$0x11]   ;;  %v1677_v5 = vrot.slane %v3545_v1, 1  ;;  %v3548_v13 = vld [vmem:[%s3752_s20 + $0x78] sm:$0xff]   ;;  %v2155_v18 = vshrl.u32 %v3552_v4, 16 }
  0x38   : > { %655 = vrot.lane.b32.xlu0 %v528_v0, %s3708_s24  ;;  %v1317_v61 = vsel %vm480_vm1, %v1312_v52, %v1316_v57  ;;  %v1656_v0 = vrot.slane %v3543_v60, 1  ;;  %v3547_v7 = vld [vmem:[%s3752_s20 + $0x38] ss:$0 sps:$4 sm:$0x11]   ;;  %v2085_v23 = vshll.u32 %v3554_v16, 16  ;;  %v3556_v24 = vld [vmem:[%s3752_s20 + $0x84] sm:$0xff]  }
  0x39   : > { %v1659_v10 = vrot.slane %v3547_v7, 1  ;;  %v1678_v11 = vsel %vm860_vm0, %v1676_v3, %v1677_v5  ;;  %v3553_v14 = vld [vmem:[%s3752_s20 + $0x80] ss:$0 sps:$4 sm:$0x11]   ;;  %v2169_v31 = vshll.u32 %v3556_v24, 16  ;;  %v2167_v33 = vshrl.u32 %v3556_v24, 16 }
  0x3a   : > { %v1657_v8 = vsel %vm860_vm0, %v1655_v62, %v1656_v0  ;;  %v2162_v20 = vshll.u32 %v3553_v14, 16  ;;  %v3551_v27 = vld [vmem:[%s3752_s20 + $0x3c] sm:$0xff]   ;;  %v2087_v29 = vrot.slane %v2085_v23, 1  ;;  %v3559_v38 = vld [vmem:[%s3752_s20 + $0x44] ss:$0 sps:$4 sm:$0x11]  }
  0x3b   : > { %919 = vrot.lane.b32.xlu1 %v887_v2, %s3707_s23  ;;  %v1675_v2 = vsel %vm860_vm0, %v1673_v55, %v1674_v58  ;;  %v3558_v34 = vld [vmem:[%s3752_s20 + $0x3c] sm:$0xff]   ;;  %v2171_v36 = vrot.slane %v2169_v31, 1  ;;  %v2102_v43 = vshll.u32 %v3559_v38, 16  ;;  %v3562_v55 = vld [vmem:[%s3752_s20 + $0x30] sm:$0xfe]  }
  0x3c   : > { %907 = vrot.lane.b32.xlu0 %v869_v9, %s3707_s23  ;;  %v1658_v9 = vrot.slane %v3546_v6, 1  ;;  %v2164_v28 = vrot.slane %v2162_v20, 1  ;;  %v2095_v40 = vshrl.u32 %v3558_v34, 16  ;;  %v2097_v41 = vshll.u32 %v3558_v34, 16  ;;  %v3560_v44 = vld [vmem:[%s3752_s20 + $0x78] sm:$0xfe]  }
  0x3d   : > { %v2172_v47 = vor.u32 %v2171_v36, %v2167_v33  ;;  %v3561_v49 = vld [vmem:[%s3752_s20 + $0x80] ss:$0 sps:$4 sm:$0x11]   ;;  %v2104_v50 = vrot.slane %v2102_v43, 1  ;;  %v2443_v58 = vrot.slane %v3562_v55, 1  ;;  %v3572_v6 = vld [vmem:[%s3752_s20 + $0x84] sm:$0xff]  }
  0x3e   : > { %v1660_v12 = vsel %vm860_vm0, %v1658_v9, %v1659_v10  ;;  %v2099_v48 = vrot.slane %v2097_v41, 1  ;;  %v2462_v54 = vrot.slane %v3561_v49, 1  ;;  %v3565_v60 = vld [vmem:[%s3752_s20 + $0x80] ss:$0 sps:$4 sm:$0x11]   ;;  %v616_v23 = vshll.u32 %v3572_v6, 16 }
  0x3f   : > { %921 = vrot.lane.b32.xlu1 %v890_v15, %s3707_s23  ;;  %v2157_v15 = vshll.u32 %v3552_v4, 16  ;;  %v609_v1 = vshll.u32 %v3565_v60, 16  ;;  %v3570_v20 = vld [vmem:[%s3752_s20 + $0x3c] sm:$0xfe]  }
  0x40   : > { %909 = vrot.lane.b32.xlu0 %v872_v22, %s3707_s23  ;;  %v3550_v22 = vld [vmem:[%s3752_s20 + $0x84] sm:$0xff]   ;;  %v2100_v53 = vor.u32 %v2099_v48, %v2095_v40  ;;  %v3574_v24 = vld [vmem:[%s3752_s20 + $0x3c] sm:$0xff]   ;;  %v3579_v48 = vld [vmem:[%s3752_s20 + $0x38] ss:$0 sps:$4 sm:$0x11]  }
  0x41   : > { %v2159_v19 = vrot.slane %v2157_v15, 1  ;;  %v3575_v33 = vld [vmem:[%s3752_s20 + $0x44] ss:$0 sps:$4 sm:$0x11]   ;;  %v542_v34 = vshrl.u32 %v3574_v24, 16 }
  0x42   : > { %v2105_v0 = vsel %vm480_vm1, %v2100_v53, %v2104_v50  ;;  %v549_v38 = vshll.u32 %v3575_v33, 16  ;;  %v3577_v41 = vld [vmem:[%s3752_s20 + $0x80] ss:$0 sps:$4 sm:$0x11]  }
  0x43   : > { %1075 = vrot.lane.b32.xlu1 %v3528_v17, %s3705_s21  ;;  %v3549_v17 = vld [vmem:[%s3752_s20 + $0x30] sm:$0xff]   ;;  %v2160_v32 = vor.u32 %v2159_v19, %v2155_v18  ;;  %v3583_v60 = vld [vmem:[%s3752_s20 + $0x44] ss:$0 sps:$4 sm:$0x11]  }
  0x44   : > { %1063 = vrot.lane.b32.xlu0 %v3529_v21, %s3705_s21  ;;  %v3555_v21 = vld [vmem:[%s3752_s20 + $0x38] ss:$0 sps:$4 sm:$0x11]   ;;  %v551_v43 = vrot.slane %v549_v38, 1 }
  0x45   : > { %v2090_v26 = vshll.u32 %v3555_v21, 16  ;;  %v2165_v46 = vsel %vm480_vm1, %v2160_v32, %v2164_v28  ;;  %v3573_v28 = vld [vmem:[%s3752_s20 + $0x8c] ss:$0 sps:$4 sm:$0x11]  }
  0x46   : > { %v621_v32 = vshll.u32 %v3573_v28, 16 }
  0x47   : > { %1077 = vrot.lane.b32.xlu1 %v3530_v25, %s3705_s21  ;;  %v2083_v25 = vshrl.u32 %v3554_v16, 16  ;;  %v2092_v35 = vrot.slane %v2090_v26, 1  ;;  %v614_v16 = vshrl.u32 %v3572_v6, 16  ;;  %v2446_v26 = vrot.slane %v3570_v20, 1 }
  0x48   : > { %1065 = vrot.lane.b32.xlu0 %v3531_v30, %s3705_s21  ;;  %v3557_v30 = vld [vmem:[%s3752_s20 + $0x8c] ss:$0 sps:$4 sm:$0x11]  }
  0x49   : > { %v2174_v37 = vshll.u32 %v3557_v30, 16  ;;  %v2088_v39 = vor.u32 %v2087_v29, %v2083_v25  ;;  %v618_v29 = vrot.slane %v616_v23, 1  ;;  %v3594_v23 = vld [vmem:[%s3752_s20 + $0x98] ss:$0 sps:$4 sm:$0x11]  }
  0x4b   : > { %1454 = vrot.lane.b32.xlu1 %v1377_v45, %s3709_s25  ;;  %v2176_v42 = vrot.slane %v2174_v37, 1  ;;  %v3564_v45 = vld [vmem:[%s3752_s20 + $0x78] sm:$0xff]   ;;  %v2093_v52 = vsel %vm480_vm1, %v2088_v39, %v2092_v35  ;;  %v619_v31 = vor.u32 %v618_v29, %v614_v16  ;;  %v544_v35 = vshll.u32 %v3574_v24, 16  ;;  %v3587_v16 = vld [vmem:[%s3752_s20 + $0x48] sm:$0xff]  }
  0x4c   : > { %1442 = vrot.lane.b32.xlu0 %v1305_v51, %s3709_s25  ;;  %v2461_v51 = vrot.slane %v3560_v44, 1  ;;  %v602_v62 = vshrl.u32 %v3564_v45, 16  ;;  %v604_v63 = vshll.u32 %v3564_v45, 16  ;;  %v623_v37 = vrot.slane %v621_v32, 1  ;;  %v3576_v39 = vld [vmem:[%s3752_s20 + $0x78] sm:$0xfe]  }
  0x4d   : > { %v2177_v57 = vsel %vm480_vm1, %v2172_v47, %v2176_v42  ;;  %v546_v40 = vrot.slane %v544_v35, 1  ;;  %v891_v44 = vrot.slane %v3576_v39, 1  ;;  %v3578_v47 = vld [vmem:[%s3752_s20 + $0x30] sm:$0xfe]   ;;  %v3595_v29 = vld [vmem:[%s3752_s20 + $0x48] sm:$0xff]  }
  0x4e   : > { %v606_v3 = vrot.slane %v604_v63, 1  ;;  %v2463_v7 = vsel %vm860_vm0, %v2461_v51, %v2462_v54  ;;  %v624_v42 = vsel %vm480_vm1, %v619_v31, %v623_v37  ;;  %v873_v50 = vrot.slane %v3578_v47, 1  ;;  %v3581_v54 = vld [vmem:[%s3752_s20 + $0x8c] ss:$0 sps:$4 sm:$0x11]  }
  0x4f   : > { %1456 = vrot.lane.b32.xlu1 %v1389_v56, %s3709_s25  ;;  %v3563_v56 = vld [vmem:[%s3752_s20 + $0x38] ss:$0 sps:$4 sm:$0x11]   ;;  %v547_v45 = vor.u32 %v546_v40, %v542_v34  ;;  %v874_v51 = vrot.slane %v3579_v48, 1  ;;  %v877_v63 = vrot.slane %v3583_v60, 1  ;;  %v1410_v31 = vshll.u32 %v3594_v23, 16 }
  0x50   : > { %1444 = vrot.lane.b32.xlu0 %v1317_v61, %s3709_s25  ;;  %v2444_v59 = vrot.slane %v3563_v56, 1  ;;  %v3566_v61 = vld [vmem:[%s3752_s20 + $0x30] sm:$0xff]   ;;  %v607_v10 = vor.u32 %v606_v3, %v602_v62  ;;  %v3582_v56 = vld [vmem:[%s3752_s20 + $0x3c] sm:$0xfe]   ;;  %v1331_v35 = vshrl.u32 %v3595_v29, 16 }
  0x51   : > { %v530_v4 = vshrl.u32 %v3566_v61, 16  ;;  %v532_v5 = vshll.u32 %v3566_v61, 16  ;;  %v552_v49 = vsel %vm480_vm1, %v547_v45, %v551_v43  ;;  %v876_v61 = vrot.slane %v3582_v56, 1  ;;  %v3585_v3 = vld [vmem:[%s3752_s20 + $0x3c] sm:$0xff]   ;;  %v3598_v43 = vld [vmem:[%s3752_s20 + $0x84] sm:$0xfe]  }
  0x52   : > { %v2445_v14 = vsel %vm860_vm0, %v2443_v58, %v2444_v59  ;;  %v875_v58 = vsel %vm860_vm0, %v873_v50, %v874_v51  ;;  %v895_v59 = vrot.slane %v3581_v54, 1  ;;  %v3596_v32 = vld [vmem:[%s3752_s20 + $0x50] ss:$0 sps:$4 sm:$0x11]   ;;  %v1412_v37 = vrot.slane %v1410_v31, 1  ;;  %v3617_v31 = vld [vmem:[%s4453_s1 + $0x8] sm:$0xff]  }
  0x53   : > { %1707 = vrot.lane.b32.xlu1 %v1675_v2, %s3706_s22  ;;  %v3567_v2 = vld [vmem:[%s3752_s20 + $0x38] ss:$0 sps:$4 sm:$0x11]   ;;  %v1338_v38 = vshll.u32 %v3596_v32, 16  ;;  %v3600_v51 = vld [vmem:[%s3752_s20 + $0x3c] sm:$0xfe]  }
  0x54   : > { %1695 = vrot.lane.b32.xlu0 %v1657_v8, %s3706_s22  ;;  %v611_v8 = vrot.slane %v609_v1, 1  ;;  %v537_v9 = vshll.u32 %v3567_v2, 16  ;;  %v3584_v1 = vld [vmem:[%s3752_s20 + $0x84] sm:$0xff]   ;;  %v878_v2 = vsel %vm860_vm0, %v876_v61, %v877_v63  ;;  %v3599_v45 = vld [vmem:[%s3752_s20 + $0x8c] ss:$0 sps:$4 sm:$0x11]  }
  0x55   : > { %v1680_v50 = vrot.slane %v3599_v45, 1  ;;  %v3615_v23 = vld [vmem:[%s3752_s20 + $0x50] ss:$0 sps:$4 sm:$0x11]   ;;  %v3618_v32 = vld [vmem:[%s3752_s20 + $0x9c] sm:$0xff]  }
  0x56   : > { %v539_v15 = vrot.slane %v537_v9, 1  ;;  %v612_v21 = vsel %vm480_vm1, %v607_v10, %v611_v8  ;;  %v3590_v9 = vld [vmem:[%s3752_s20 + $0x3c] sm:$0xff]   ;;  %v3586_v10 = vld [vmem:[%s3752_s20 + $0x90] sm:$0xff]  }
  0x57   : > { %1709 = vrot.lane.b32.xlu1 %v1678_v11, %s3706_s22  ;;  %v534_v11 = vrot.slane %v532_v5, 1  ;;  %v3621_v45 = vld [vmem:[%s3752_s20 + $0x5c] ss:$0 sps:$4 sm:$0x11]  }
  0x58   : > { %1697 = vrot.lane.b32.xlu0 %v1660_v12, %s3706_s22  ;;  %v3568_v12 = vld [vmem:[%s3752_s20 + $0x84] sm:$0xfe]  }
  0x59   : > { %v2464_v18 = vrot.slane %v3568_v12, 1  ;;  %v3591_v12 = vld [vmem:[%s3752_s20 + $0x44] ss:$0 sps:$4 sm:$0x11]  }
  0x5b   : > { %1863 = vrot.lane.b32.xlu1 %v3548_v13, %s3710_s26  ;;  %v3569_v13 = vld [vmem:[%s3752_s20 + $0x8c] ss:$0 sps:$4 sm:$0x11]  }
  0x5c   : > { %1851 = vrot.lane.b32.xlu0 %v3549_v17, %s3710_s26  ;;  %v535_v17 = vor.u32 %v534_v11, %v530_v4  ;;  %v2465_v19 = vrot.slane %v3569_v13, 1  ;;  %v3589_v4 = vld [vmem:[%s3752_s20 + $0x8c] ss:$0 sps:$4 sm:$0x11]   ;;  %v3592_v13 = vld [vmem:[%s3752_s20] sm:$0xff]  }
  0x5d   : > { %v1398_v11 = vshll.u32 %v3589_v4, 16  ;;  %312 = vst.msk [vmem:[#allocation2] sm:$0xff] %vm311_vm2, %v3592_v13 }
  0x5e   : > { %v540_v25 = vsel %vm480_vm1, %v535_v17, %v539_v15  ;;  %v2466_v30 = vsel %vm860_vm0, %v2464_v18, %v2465_v19  ;;  %v1321_v15 = vshll.u32 %v3590_v9, 16  ;;  %v1326_v18 = vshll.u32 %v3591_v12, 16  ;;  %v3611_v12 = vld [vmem:[%s4453_s1] sm:$0xff]  }
  0x5f   : > { %1865 = vrot.lane.b32.xlu1 %v3550_v22, %s3710_s26  ;;  %v3571_v22 = vld [vmem:[%s3752_s20 + $0x44] ss:$0 sps:$4 sm:$0x11]   ;;  %v1400_v17 = vrot.slane %v1398_v11, 1  ;;  %v3610_v11 = vld [vmem:[%s3752_s20 + $0x18] sm:$0xff]   ;;  %3424 = vmatprep.subr.bf16.mxu0 %v3611_v12 }
  0x60   : > { %1853 = vrot.lane.b32.xlu0 %v3551_v27, %s3710_s26  ;;  %v2447_v27 = vrot.slane %v3571_v22, 1  ;;  %v1323_v20 = vrot.slane %v1321_v15, 1  ;;  %v1328_v22 = vrot.slane %v1326_v18, 1  ;;  %314 = vst.msk [vmem:[#allocation2 + $0x10] sm:$0xff] %vm311_vm2, %v3610_v11  ;;  %v3612_v15 = vld [vmem:[%s3752_s20 + $0x90] sm:$0xff]   ;;  %3425 = vmatpush3.bf16.msra.mxu0 %v3611_v12 }
  0x61   : > { %3458 = vmatprep.subr.bf16.mxu1 %v3611_v12  ;;  %3426 = vmatprep.subr.bf16.mxu0 %v3617_v31 }
  0x62   : > { %v2448_v36 = vsel %vm860_vm0, %v2446_v26, %v2447_v27  ;;  %3461 = vmatpush3.bf16.msra.mxu1 %v3611_v12 }
  0x63   : > { %2242 = vrot.lane.b32.xlu1 %v2165_v46, %s3711_s27  ;;  %v892_v46 = vrot.slane %v3577_v41, 1  ;;  %3459 = vmatprep.subr.bf16.mxu1 %v3617_v31 }
  0x64   : > { %2230 = vrot.lane.b32.xlu0 %v2093_v52, %s3711_s27  ;;  %v3580_v52 = vld [vmem:[%s3752_s20 + $0x84] sm:$0xfe]   ;;  %3427 = vmatpush3.bf16.msra.mxu0 %v3617_v31 }
  0x65   : > { %v893_v53 = vsel %vm860_vm0, %v891_v44, %v892_v46  ;;  %v894_v55 = vrot.slane %v3580_v52, 1  ;;  %v1340_v44 = vrot.slane %v1338_v38, 1  ;;  %v3601_v52 = vld [vmem:[%s3752_s20 + $0x44] ss:$0 sps:$4 sm:$0x11]  }
  0x66   : > { %v1662_v56 = vrot.slane %v3601_v52, 1  ;;  %v3619_v38 = vld [vmem:[%s3752_s20 + $0xa4] ss:$0 sps:$4 sm:$0x11]   ;;  %3462 = vmatpush3.bf16.msra.mxu1 %v3617_v31 }
  0x67   : > { %2244 = vrot.lane.b32.xlu1 %v2177_v57, %s3711_s27  ;;  %v3588_v57 = vld [vmem:[%s3752_s20 + $0x84] sm:$0xff]   ;;  %v896_v62 = vsel %vm860_vm0, %v894_v55, %v895_v59  ;;  %v1661_v55 = vrot.slane %v3600_v51, 1  ;;  %v3603_v59 = vld [vmem:[%s3752_s20 + $0x98] ss:$0 sps:$4 sm:$0x11]  }
  0x68   : > { %2232 = vrot.lane.b32.xlu0 %v2105_v0, %s3711_s27  ;;  %v1393_v0 = vshll.u32 %v3588_v57, 16  ;;  %v1391_v5 = vshrl.u32 %v3588_v57, 16  ;;  %v3602_v57 = vld [vmem:[%s3752_s20 + $0x90] sm:$0xfe]  }
  0x69   : > { %v1682_v61 = vrot.slane %v3602_v57, 1  ;;  %v1663_v63 = vsel %vm860_vm0, %v1661_v55, %v1662_v56  ;;  %v3623_v56 = vld [vmem:[%s3752_s20 + $0x24] sm:$0xff]  }
  0x6a   : > { %v1395_v8 = vrot.slane %v1393_v0, 1  ;;  %v1683_v0 = vrot.slane %v3603_v59, 1  ;;  %315 = vst.msk [vmem:[#allocation2 + $0x18] sm:$0xff] %vm311_vm2, %v3623_v56 }
  0x6b   : > { %2495 = vrot.lane.b32.xlu1 %v2463_v7, %s3712_s28 }
  0x6c   : > { %2483 = vrot.lane.b32.xlu0 %v2445_v14, %s3712_s28  ;;  %v1319_v14 = vshrl.u32 %v3590_v9, 16  ;;  %v1396_v19 = vor.u32 %v1395_v8, %v1391_v5  ;;  %v1684_v4 = vsel %vm860_vm0, %v1682_v61, %v1683_v0  ;;  %v3625_v61 = vld [vmem:[%s3752_s20 + $0x90] sm:$0xfe]   ;;  %v3626_v0 = vld [vmem:[%s3752_s20 + $0x98] ss:$0 sps:$4 sm:$0x11]  }
  0x6e   : > { %v1324_v26 = vor.u32 %v1323_v20, %v1319_v14  ;;  %v1401_v33 = vsel %vm480_vm1, %v1396_v19, %v1400_v17  ;;  %v3608_v14 = vld [vmem:[%s3752_s20 + $0x9c] sm:$0xff]   ;;  %v3614_v17 = vld [vmem:[%s3752_s20 + $0x48] sm:$0xff]   ;;  %v3609_v19 = vld [vmem:[%s3752_s20 + $0x54] sm:$0xff]   ;;  %v2179_v20 = vshrl.u32 %v3612_v15, 16 }
  0x6f   : > { %669 = vrot.lane.b32.xlu1 %v612_v21, %s3708_s24  ;;  %v3593_v21 = vld [vmem:[%s3752_s20 + $0x90] sm:$0xff]  }
  0x70   : > { %657 = vrot.lane.b32.xlu0 %v540_v25, %s3708_s24  ;;  %v1403_v27 = vshrl.u32 %v3593_v21, 16  ;;  %v1405_v28 = vshll.u32 %v3593_v21, 16  ;;  %v1329_v39 = vsel %vm480_vm1, %v1324_v26, %v1328_v22  ;;  %v2181_v21 = vshll.u32 %v3612_v15, 16 }
  0x72   : > { %v1407_v34 = vrot.slane %v1405_v28, 1 }
  0x73   : > { %2497 = vrot.lane.b32.xlu1 %v2466_v30, %s3712_s28  ;;  %v3597_v30 = vld [vmem:[%s3752_s20 + $0xc] sm:$0xff]  }
  0x74   : > { %2485 = vrot.lane.b32.xlu0 %v2448_v36, %s3712_s28  ;;  %v1333_v36 = vshll.u32 %v3595_v29, 16  ;;  %313 = vst.msk [vmem:[#allocation2 + $0x8] sm:$0xff] %vm311_vm2, %v3597_v30  ;;  %v1408_v41 = vor.u32 %v1407_v34, %v1403_v27  ;;  %v2183_v27 = vrot.slane %v2181_v21, 1  ;;  %v2114_v29 = vshll.u32 %v3615_v23, 16  ;;  %v3616_v30 = vld [vmem:[%s3752_s20 + $0x60] sm:$0xff]   ;;  %v3620_v34 = vld [vmem:[%s3752_s20 + $0x54] sm:$0xff]  }
  0x75   : > { %320 = vst.msk [vmem:[#allocation2 + $0x40] sm:$0xff] %vm311_vm2, %v3616_v30 }
  0x76   : > { %v1413_v47 = vsel %vm480_vm1, %v1408_v41, %v1412_v37  ;;  %v2116_v37 = vrot.slane %v2114_v29, 1  ;;  %v2193_v41 = vshll.u32 %v3618_v32, 16 }
  0x77   : > { %671 = vrot.lane.b32.xlu1 %v624_v42, %s3708_s24  ;;  %v1335_v42 = vrot.slane %v1333_v36, 1  ;;  %v2184_v36 = vor.u32 %v2183_v27, %v2179_v20 }
  0x78   : > { %659 = vrot.lane.b32.xlu0 %v552_v49, %s3708_s24  ;;  %v1679_v49 = vrot.slane %v3598_v43, 1 }
  0x79   : > { %v1336_v48 = vor.u32 %v1335_v42, %v1331_v35 }
  0x7b   : > { %923 = vrot.lane.b32.xlu1 %v893_v53, %s3707_s23  ;;  %v1341_v53 = vsel %vm480_vm1, %v1336_v48, %v1340_v44  ;;  %v2198_v44 = vshll.u32 %v3619_v38, 16  ;;  %v2119_v48 = vshrl.u32 %v3620_v34, 16 }
  0x7c   : > { %911 = vrot.lane.b32.xlu0 %v875_v58, %s3707_s23  ;;  %v1681_v58 = vsel %vm860_vm0, %v1679_v49, %v1680_v50  ;;  %v2121_v49 = vshll.u32 %v3620_v34, 16  ;;  %v3622_v50 = vld [vmem:[%s3752_s20 + $0x6c] sm:$0xff]   ;;  %v3634_v34 = vld [vmem:[%s3752_s20 + $0xa4] ss:$0 sps:$4 sm:$0x11]  }
  0x7d   : > { %v2200_v52 = vrot.slane %v2198_v44, 1  ;;  %321 = vst.msk [vmem:[#allocation2 + $0x48] sm:$0xff] %vm311_vm2, %v3622_v50  ;;  %v3638_v50 = vld [vmem:[%s3752_s20 + $0xa4] ss:$0 sps:$4 sm:$0x11]  }
  0x7e   : > { %v2123_v55 = vrot.slane %v2121_v49, 1 }
  0x7f   : > { %925 = vrot.lane.b32.xlu1 %v896_v62, %s3707_s23  ;;  %v3604_v62 = vld [vmem:[%s3752_s20 + $0x48] sm:$0xfe]  }
  0x80   : > { %913 = vrot.lane.b32.xlu0 %v878_v2, %s3707_s23 }
  0x83   : > { %1079 = vrot.lane.b32.xlu1 %v3584_v1, %s3705_s21  ;;  %v3605_v1 = vld [vmem:[%s3752_s20 + $0x50] ss:$0 sps:$4 sm:$0x11]  }
  0x84   : > { %v3957_v6 = vpop.permute.xlu1 %1061  ;;  %v3959_v7 = vpop.permute.xlu0 %1059  ;;  %1067 = vrot.lane.b32.xlu0 %v3585_v3, %s3705_s21  ;;  %v1664_v3 = vrot.slane %v3604_v62, 1  ;;  %v1665_v5 = vrot.slane %v3605_v1, 1 }
  0x86   : > { %v1666_v8 = vsel %vm860_vm0, %v1664_v3, %v1665_v5  ;;  %v3627_v3 = vld [vmem:[%s3752_s20 + $0x48] sm:$0xfe]  }
  0x87   : > { %1081 = vrot.lane.b32.xlu1 %v3586_v10, %s3705_s21  ;;  %v3607_v10 = vld [vmem:[%s3752_s20 + $0x48] sm:$0xff]  }
  0x88   : > { %v3972_v24 = vpop.permute.xlu0 %1691  ;;  %1069 = vrot.lane.b32.xlu0 %v3587_v16, %s3705_s21  ;;  %v3613_v16 = vld [vmem:[%s3752_s20 + $0x98] ss:$0 sps:$4 sm:$0x11]  }
  0x89   : > { %v904_v25 = vpop.permute.xlu1 %903  ;;  %v2186_v22 = vshll.u32 %v3613_v16, 16 }
  0x8b   : > { %1458 = vrot.lane.b32.xlu1 %v1401_v33, %s3709_s25  ;;  %v2188_v28 = vrot.slane %v2186_v22, 1 }
  0x8c   : > { %1446 = vrot.lane.b32.xlu0 %v1329_v39, %s3709_s25 }
  0x8d   : > { %v906_v40 = vpop.permute.xlu1 %905  ;;  %v2189_v43 = vsel %vm480_vm1, %v2184_v36, %v2188_v28  ;;  %v3639_v36 = vld [vmem:[%s3752_s20 + $0x54] sm:$0xff]  }
  0x8e   : > { %v650_v46 = vpop.permute.xlu0 %649  ;;  %v566_v56 = vshrl.u32 %v3639_v36, 16 }
  0x8f   : > { %692 = vst.msk [vmem:[#allocation2] sm:$0xff] %vm691_vm3, %v650_v46  ;;  %1460 = vrot.lane.b32.xlu1 %v1413_v47, %s3709_s25  ;;  %v2195_v47 = vrot.slane %v2193_v41, 1 }
  0x90   : > { %946 = vst.msk [vmem:[#allocation2] sm:$0xff] %vm945_vm4, %v904_v25  ;;  %1448 = vrot.lane.b32.xlu0 %v1341_v53, %s3709_s25  ;;  %v2109_v25 = vshll.u32 %v3614_v17, 16  ;;  %v2126_v53 = vshll.u32 %v3621_v45, 16 }
  0x91   : > { %v1694_v54 = vpop.permute.xlu1 %1693  ;;  %1102 = vst.msk [vmem:[#allocation2] sm:$0xff] %vm1101_vm5, %v3959_v7 }
  0x92   : > { %v652_v60 = vpop.permute.xlu0 %651  ;;  %v2111_v33 = vrot.slane %v2109_v25, 1  ;;  %v2128_v57 = vrot.slane %v2126_v53, 1 }
  0x93   : > { %693 = vst.msk [vmem:[#allocation2 + $0x8] sm:$0xff] %vm691_vm3, %v652_v60  ;;  %1711 = vrot.lane.b32.xlu1 %v1681_v58, %s3706_s22  ;;  %v3624_v58 = vld [vmem:[%s4453_s1 + $0x10] ss:$0 sps:$4 sm:$0x33]   ;;  %v2124_v60 = vor.u32 %v2123_v55, %v2119_v48 }
  0x94   : > { %947 = vst.msk [vmem:[#allocation2 + $0x8] sm:$0xff] %vm945_vm4, %v906_v40  ;;  %1699 = vrot.lane.b32.xlu0 %v1663_v63, %s3706_s22  ;;  %v2191_v40 = vshrl.u32 %v3618_v32, 16  ;;  %3464 = vmatprep.subr.msk.bf16.mxu0 %vm2613_vm11, %v3624_v58  ;;  %v2615_v63 = vsel %vm2613_vm11, %v3624_v58, 0  ;;  %v3633_v32 = vld [vmem:[%s3752_s20 + $0x9c] sm:$0xfe]  }
  0x95   : > { %v1441_v2 = vpop.permute.xlu1 %1440  ;;  %1103 = vst.msk [vmem:[#allocation2 + $0x8] sm:$0xff] %vm1101_vm5, %v3957_v6  ;;  %v3606_v6 = vld [vmem:[%s3752_s20 + $0x90] sm:$0xff]   ;;  %v2129_v1 = vsel %vm480_vm1, %v2124_v60, %v2128_v57  ;;  %3429 = vmatpush3.bf16.msra.mxu0 %v2615_v63  ;;  %3465 = vmatprep.subr.msk.bf16.mxu1 %vm2613_vm11, %v3624_v58  ;;  %v3640_v55 = vld [vmem:[%s3752_s20 + $0x5c] ss:$0 sps:$4 sm:$0x11]   ;;  %v568_v57 = vshll.u32 %v3639_v36, 16 }
  0x96   : > { %1482 = vst.msk [vmem:[#allocation2 + $0x8] sm:$0xff] %vm1480_vm6, %v1441_v2  ;;  %v1439_v7 = vpop.permute.xlu0 %1438  ;;  %v2467_v2 = vrot.slane %v3625_v61, 1  ;;  %3463 = vmatpush3.bf16.msra.mxu1 %v2615_v63  ;;  %v573_v61 = vshll.u32 %v3640_v55, 16  ;;  %v3641_v63 = vld [vmem:[%s3752_s20 + $0x90] sm:$0xfe]  }
  0x97   : > { %1481 = vst.msk [vmem:[#allocation2] sm:$0xff] %vm1480_vm6, %v1439_v7  ;;  %1713 = vrot.lane.b32.xlu1 %v1684_v4, %s3706_s22  ;;  %v3629_v4 = vld [vmem:[%s3752_s20 + $0x90] sm:$0xff]   ;;  %v570_v60 = vrot.slane %v568_v57, 1 }
  0x98   : > { %1735 = vst.msk [vmem:[#allocation2 + $0x8] sm:$0xff] %vm1733_vm7, %v1694_v54  ;;  %1734 = vst.msk [vmem:[#allocation2] sm:$0xff] %vm1733_vm7, %v3972_v24  ;;  %1701 = vrot.lane.b32.xlu0 %v1666_v8, %s3706_s22  ;;  %v2107_v24 = vshrl.u32 %v3614_v17, 16  ;;  %v2196_v54 = vor.u32 %v2195_v47, %v2191_v40  ;;  %v2468_v8 = vrot.slane %v3626_v0, 1  ;;  %v626_v11 = vshrl.u32 %v3629_v4, 16 }
  0x99   : > { %v1850_v9 = vpop.permute.xlu1 %1849  ;;  %v628_v16 = vshll.u32 %v3629_v4, 16  ;;  %v3635_v40 = vld [vmem:[%s3752_s20 + $0x54] sm:$0xfe]  }
  0x9a   : > { %1891 = vst.msk [vmem:[#allocation2 + $0x8] sm:$0xff] %vm1889_vm8, %v1850_v9  ;;  %v1848_v13 = vpop.permute.xlu0 %1847  ;;  %v2112_v39 = vor.u32 %v2111_v33, %v2107_v24  ;;  %v2201_v59 = vsel %vm480_vm1, %v2196_v54, %v2200_v52  ;;  %v3631_v9 = vld [vmem:[%s3752_s20 + $0x48] sm:$0xff]   ;;  %v3632_v24 = vld [vmem:[%s3752_s20 + $0x50] ss:$0 sps:$4 sm:$0x11]   ;;  %v2452_v45 = vrot.slane %v3635_v40, 1 }
  0x9b   : > { %1890 = vst.msk [vmem:[#allocation2] sm:$0xff] %vm1889_vm8, %v1848_v13  ;;  %1867 = vrot.lane.b32.xlu1 %v3606_v6, %s3710_s26  ;;  %v3628_v6 = vld [vmem:[%s3752_s20 + $0x50] ss:$0 sps:$4 sm:$0x11]   ;;  %v2469_v13 = vsel %vm860_vm0, %v2467_v2, %v2468_v8  ;;  %v554_v17 = vshrl.u32 %v3631_v9, 16  ;;  %v630_v22 = vrot.slane %v628_v16, 1  ;;  %v571_v2 = vor.u32 %v570_v60, %v566_v56 }
  0x9c   : > { %1855 = vrot.lane.b32.xlu0 %v3607_v10, %s3710_s26  ;;  %v2117_v46 = vsel %vm480_vm1, %v2112_v39, %v2116_v37  ;;  %v2449_v10 = vrot.slane %v3627_v3, 1  ;;  %v561_v31 = vshll.u32 %v3632_v24, 16  ;;  %v2470_v39 = vrot.slane %v3633_v32, 1  ;;  %v3642_v0 = vld [vmem:[%s3752_s20 + $0x98] ss:$0 sps:$4 sm:$0x11]  }
  0x9d   : > { %v2229_v18 = vpop.permute.xlu1 %2228  ;;  %v631_v28 = vor.u32 %v630_v22, %v626_v11  ;;  %v645_v54 = vshll.u32 %v3638_v50, 16  ;;  %v575_v3 = vrot.slane %v573_v61, 1  ;;  %v3643_v8 = vld [vmem:[%s3752_s20 + $0x48] sm:$0xfe]  }
  0x9e   : > { %2270 = vst.msk [vmem:[#allocation2 + $0x8] sm:$0xff] %vm2268_vm9, %v2229_v18  ;;  %v2227_v26 = vpop.permute.xlu0 %2226  ;;  %v3630_v18 = vld [vmem:[%s3752_s20 + $0x98] ss:$0 sps:$4 sm:$0x11]   ;;  %v563_v38 = vrot.slane %v561_v31, 1 }
  0x9f   : > { %2269 = vst.msk [vmem:[#allocation2] sm:$0xff] %vm2268_vm9, %v2227_v26  ;;  %1869 = vrot.lane.b32.xlu1 %v3608_v14, %s3710_s26  ;;  %v2450_v14 = vrot.slane %v3628_v6, 1  ;;  %v633_v23 = vshll.u32 %v3630_v18, 16  ;;  %v3637_v26 = vld [vmem:[%s3752_s20 + $0x9c] sm:$0xff]   ;;  %v3650_v31 = vld [vmem:[%s3752_s20 + $0x54] sm:$0xff]  }
  0xa0   : > { %1857 = vrot.lane.b32.xlu0 %v3609_v19, %s3710_s26  ;;  %v556_v19 = vshll.u32 %v3631_v9, 16  ;;  %v3644_v6 = vld [vmem:[%s3752_s20 + $0x50] ss:$0 sps:$4 sm:$0x11]   ;;  %v576_v9 = vsel %vm480_vm1, %v571_v2, %v575_v3 }
  0xa1   : > { %v654_v35 = vpop.permute.xlu1 %653  ;;  %v2451_v20 = vsel %vm860_vm0, %v2449_v10, %v2450_v14  ;;  %v635_v29 = vrot.slane %v633_v23, 1  ;;  %v3645_v14 = vld [vmem:[%s3752_s20 + $0x9c] sm:$0xfe]   ;;  %v3646_v16 = vld [vmem:[%s3752_s20 + $0xa4] ss:$0 sps:$4 sm:$0x11]  }
  0xa2   : > { %694 = vst.msk [vmem:[#allocation2 + $0x10] sm:$0xff] %vm691_vm3, %v654_v35  ;;  %v2480_v42 = vpop.permute.xlu0 %2479  ;;  %v558_v25 = vrot.slane %v556_v19, 1  ;;  %v638_v35 = vshrl.u32 %v3637_v26, 16  ;;  %v900_v18 = vrot.slane %v3645_v14, 1  ;;  %v3647_v19 = vld [vmem:[%s3752_s20 + $0x54] sm:$0xfe]  }
  0xa3   : > { %2522 = vst.msk [vmem:[#allocation2] sm:$0xff] %vm2521_vm10, %v2480_v42  ;;  %2246 = vrot.lane.b32.xlu1 %v2189_v43, %s3711_s27  ;;  %v636_v37 = vsel %vm480_vm1, %v631_v28, %v635_v29  ;;  %v2471_v42 = vrot.slane %v3634_v34, 1  ;;  %v3636_v43 = vld [vmem:[%s3752_s20 + $0x5c] ss:$0 sps:$4 sm:$0x11]   ;;  %v882_v24 = vrot.slane %v3647_v19, 1 }
  0xa4   : > { %2234 = vrot.lane.b32.xlu0 %v2117_v46, %s3711_s27  ;;  %v559_v30 = vor.u32 %v558_v25, %v554_v17  ;;  %v640_v46 = vshll.u32 %v3637_v26, 16  ;;  %v2453_v48 = vrot.slane %v3636_v43, 1  ;;  %v3648_v22 = vld [vmem:[%s3752_s20 + $0x5c] ss:$0 sps:$4 sm:$0x11]   ;;  %v3651_v34 = vld [vmem:[%s3752_s20 + $0xa8] sm:$0xff]  }
  0xa5   : > { %v2482_v51 = vpop.permute.xlu1 %2481  ;;  %v2472_v47 = vsel %vm860_vm0, %v2470_v39, %v2471_v42  ;;  %v3649_v25 = vld [vmem:[%s3752_s20 + $0x9c] sm:$0xff]   ;;  %v883_v28 = vrot.slane %v3648_v22, 1  ;;  %v3660_v60 = vld [vmem:[%s3752_s20 + $0x68] ss:$0 sps:$4 sm:$0x11]   ;;  %v3674_v19 = vld [vmem:[%s3752_s20 + $0x30] sm:$0xff]  }
  0xa6   : > { %2523 = vst.msk [vmem:[#allocation2 + $0x8] sm:$0xff] %vm2521_vm10, %v2482_v51  ;;  %v666_v62 = vpop.permute.xlu0 %665  ;;  %v564_v44 = vsel %vm480_vm1, %v559_v30, %v563_v38  ;;  %v642_v51 = vrot.slane %v640_v46, 1  ;;  %v2454_v52 = vsel %vm860_vm0, %v2452_v45, %v2453_v48  ;;  %v3655_v38 = vld [vmem:[%s3752_s20 + $0x54] sm:$0xff]   ;;  %v3652_v39 = vld [vmem:[%s3752_s20 + $0x60] sm:$0xff]   ;;  %v3657_v48 = vld [vmem:[%s3752_s20 + $0xa8] sm:$0xff]  }
  0xa7   : > { %2248 = vrot.lane.b32.xlu1 %v2201_v59, %s3711_s27  ;;  %700 = vst.msk [vmem:[#allocation2 + $0x40] sm:$0xff] %vm691_vm3, %v666_v62  ;;  %v647_v59 = vrot.slane %v645_v54, 1  ;;  %v884_v32 = vsel %vm860_vm0, %v882_v24, %v883_v28  ;;  %v3656_v42 = vld [vmem:[%s3752_s20 + $0x5c] ss:$0 sps:$4 sm:$0x11]   ;;  %v1345_v45 = vshll.u32 %v3655_v38, 16 }
  0xa8   : > { %2236 = vrot.lane.b32.xlu0 %v2129_v1, %s3711_s27  ;;  %v643_v58 = vor.u32 %v642_v51, %v638_v35  ;;  %v3654_v35 = vld [vmem:[%s3752_s20 + $0xa4] ss:$0 sps:$4 sm:$0x11]   ;;  %v1427_v55 = vshrl.u32 %v3657_v48, 16  ;;  %v1429_v56 = vshll.u32 %v3657_v48, 16  ;;  %316 = vst.msk [vmem:[#allocation2 + $0x20] sm:$0xff] %vm311_vm2, %v3674_v19 }
  0xa9   : > { %v668_v5 = vpop.permute.xlu1 %667  ;;  %v1347_v51 = vrot.slane %v1345_v45, 1  ;;  %v3671_v45 = vld [vmem:[%s3752_s20 + $0xb4] sm:$0xff]  }
  0xaa   : > { %v2536_v7 = vld [vmem:[#allocation2] sm:$0xff]  ;;  %701 = vst.msk [vmem:[#allocation2 + $0x48] sm:$0xff] %vm691_vm3, %v668_v5  ;;  %v656_v12 = vpop.permute.xlu0 %655  ;;  %v648_v1 = vsel %vm480_vm1, %v643_v58, %v647_v59  ;;  %v897_v5 = vrot.slane %v3641_v63, 1  ;;  %v1431_v63 = vrot.slane %v1429_v56, 1 }
  0xab   : > { %3430 = vmatprep.mubr.msk.bf16.mxu0 %vm2570_vm12, %v2536_v7  ;;  %695 = vst.msk [vmem:[#allocation2 + $0x18] sm:$0xff] %vm691_vm3, %v656_v12  ;;  %2499 = vrot.lane.b32.xlu1 %v2469_v13, %s3712_s28  ;;  %v898_v7 = vrot.slane %v3642_v0, 1  ;;  %v879_v12 = vrot.slane %v3643_v8, 1  ;;  %v880_v13 = vrot.slane %v3644_v6, 1 }
  0xac   : > { %2487 = vrot.lane.b32.xlu0 %v2451_v20, %s3712_s28  ;;  %v3653_v20 = vld [vmem:[%s3752_s20 + $0x9c] sm:$0xff]   ;;  %v3662_v8 = vld [vmem:[%s3752_s20 + $0xa4] ss:$0 sps:$4 sm:$0x11]  }
  0xad   : > { %v2537_v15 = vld [vmem:[#allocation2 + $0x8] sm:$0xff]  ;;  %v920_v21 = vpop.permute.xlu1 %919  ;;  %v899_v11 = vsel %vm860_vm0, %v897_v5, %v898_v7  ;;  %v881_v17 = vsel %vm860_vm0, %v879_v12, %v880_v13  ;;  %v1415_v26 = vshrl.u32 %v3653_v20, 16  ;;  %v1417_v30 = vshll.u32 %v3653_v20, 16  ;;  %v3661_v7 = vld [vmem:[%s3752_s20 + $0x9c] sm:$0xfe]  }
  0xae   : > { %3431 = vmatmul.mubr.msk.bf16.vlgmr.msra.gmra.mrb[0].mxu0 %vm2570_vm12, %v2537_v15  ;;  %954 = vst.msk [vmem:[#allocation2 + $0x40] sm:$0xff] %vm945_vm4, %v920_v21  ;;  %v908_v27 = vpop.permute.xlu0 %907  ;;  %v901_v21 = vrot.slane %v3646_v16, 1  ;;  %v1432_v5 = vor.u32 %v1431_v63, %v1427_v55  ;;  %v1685_v13 = vrot.slane %v3661_v7, 1  ;;  %v1686_v14 = vrot.slane %v3662_v8, 1 }
  0xaf   : > { %948 = vst.msk [vmem:[#allocation2 + $0x10] sm:$0xff] %vm945_vm4, %v908_v27  ;;  %673 = vrot.lane.b32.xlu1 %v636_v37, %s3708_s24  ;;  %v1419_v36 = vrot.slane %v1417_v30, 1 }
  0xb0   : > { %661 = vrot.lane.b32.xlu0 %v564_v44, %s3708_s24  ;;  %v902_v27 = vsel %vm860_vm0, %v900_v18, %v901_v21  ;;  %v1343_v44 = vshrl.u32 %v3655_v38, 16  ;;  %v3664_v18 = vld [vmem:[%s3752_s20 + $0x5c] ss:$0 sps:$4 sm:$0x11]   ;;  %v3675_v21 = vld [vmem:[%s3752_s20 + $0xa8] sm:$0xff]   ;;  %v1687_v22 = vsel %vm860_vm0, %v1685_v13, %v1686_v14 }
  0xb1   : > { %v922_v33 = vpop.permute.xlu1 %921  ;;  %v1420_v40 = vor.u32 %v1419_v36, %v1415_v26  ;;  %v3666_v26 = vld [vmem:[%s3752_s20 + $0xb0] ss:$0 sps:$4 sm:$0x11]   ;;  %v3684_v13 = vld [vmem:[%s3752_s20 + $0x3c] sm:$0xff]  }
  0xb2   : > { %955 = vst.msk [vmem:[#allocation2 + $0x48] sm:$0xff] %vm945_vm4, %v922_v33  ;;  %v910_v41 = vpop.permute.xlu0 %909  ;;  %v1348_v57 = vor.u32 %v1347_v51, %v1343_v44  ;;  %v1689_v30 = vrot.slane %v3666_v26, 1  ;;  %v3672_v51 = vld [vmem:[%s3752_s20 + $0x6c] sm:$0xff]  }
  0xb3   : > { %949 = vst.msk [vmem:[#allocation2 + $0x18] sm:$0xff] %vm945_vm4, %v910_v41  ;;  %2501 = vrot.lane.b32.xlu1 %v2472_v47, %s3712_s28  ;;  %v1422_v41 = vshll.u32 %v3654_v35, 16  ;;  %v1350_v47 = vshll.u32 %v3656_v42, 16  ;;  %v3694_v26 = vld [vmem:[%s3752_s20 + $0x48] sm:$0xff]  }
  0xb4   : > { %2489 = vrot.lane.b32.xlu0 %v2454_v52, %s3712_s28  ;;  %v3659_v52 = vld [vmem:[%s3752_s20 + $0x60] sm:$0xff]   ;;  %317 = vst.msk [vmem:[#allocation2 + $0x28] sm:$0xff] %vm311_vm2, %v3684_v13  ;;  %318 = vst.msk [vmem:[#allocation2 + $0x30] sm:$0xff] %vm311_vm2, %v3694_v26 }
  0xb5   : > { %v1076_v49 = vpop.permute.xlu1 %1075  ;;  %v1424_v46 = vrot.slane %v1422_v41, 1  ;;  %v1352_v54 = vrot.slane %v1350_v47, 1  ;;  %v1355_v61 = vshrl.u32 %v3659_v52, 16 }
  0xb6   : > { %1110 = vst.msk [vmem:[#allocation2 + $0x40] sm:$0xff] %vm1101_vm5, %v1076_v49  ;;  %v1064_v53 = vpop.permute.xlu0 %1063  ;;  %v3658_v49 = vld [vmem:[%s3752_s20 + $0xb0] ss:$0 sps:$4 sm:$0x11]  }
  0xb7   : > { %1104 = vst.msk [vmem:[#allocation2 + $0x10] sm:$0xff] %vm1101_vm5, %v1064_v53  ;;  %675 = vrot.lane.b32.xlu1 %v648_v1, %s3708_s24  ;;  %v1425_v53 = vsel %vm480_vm1, %v1420_v40, %v1424_v46  ;;  %v1434_v59 = vshll.u32 %v3658_v49, 16  ;;  %v1353_v0 = vsel %vm480_vm1, %v1348_v57, %v1352_v54  ;;  %v3677_v40 = vld [vmem:[%s3752_s20 + $0x60] sm:$0xff]   ;;  %v3676_v46 = vld [vmem:[%s3752_s20 + $0xb0] ss:$0 sps:$4 sm:$0x11]  }
  0xb8   : > { %663 = vrot.lane.b32.xlu0 %v576_v9, %s3708_s24  ;;  %v2131_v49 = vshrl.u32 %v3677_v40, 16  ;;  %v3679_v57 = vld [vmem:[%s3752_s20 + $0xb4] sm:$0xff]  }
  0xb9   : > { %v1078_v62 = vpop.permute.xlu1 %1077  ;;  %v1436_v2 = vrot.slane %v1434_v59, 1 }
  0xba   : > { %1111 = vst.msk [vmem:[#allocation2 + $0x48] sm:$0xff] %vm1101_vm5, %v1078_v62  ;;  %v1066_v4 = vpop.permute.xlu0 %1065  ;;  %v1357_v62 = vshll.u32 %v3659_v52, 16  ;;  %v2210_v52 = vshll.u32 %v3676_v46, 16 }
  0xbb   : > { %1105 = vst.msk [vmem:[#allocation2 + $0x18] sm:$0xff] %vm1101_vm5, %v1066_v4  ;;  %927 = vrot.lane.b32.xlu1 %v899_v11, %s3707_s23  ;;  %v1362_v4 = vshll.u32 %v3660_v60, 16  ;;  %v3673_v11 = vld [vmem:[%s3752_s20 + $0x78] sm:$0xff]   ;;  %v1437_v12 = vsel %vm480_vm1, %v1432_v5, %v1436_v2  ;;  %v3683_v5 = vld [vmem:[%s3752_s20 + $0x84] sm:$0xff]  }
  0xbc   : > { %915 = vrot.lane.b32.xlu0 %v881_v17, %s3707_s23  ;;  %v1359_v3 = vrot.slane %v1357_v62, 1  ;;  %322 = vst.msk [vmem:[#allocation2 + $0x50] sm:$0xff] %vm311_vm2, %v3673_v11  ;;  %v3680_v60 = vld [vmem:[%s3752_s20 + $0xbc] ss:$0 sps:$4 sm:$0x11]   ;;  %323 = vst.msk [vmem:[#allocation2 + $0x58] sm:$0xff] %vm311_vm2, %v3683_v5 }
  0xbd   : > { %v1455_v10 = vpop.permute.xlu1 %1454  ;;  %v1364_v9 = vrot.slane %v1362_v4, 1 }
  0xbe   : > { %1489 = vst.msk [vmem:[#allocation2 + $0x40] sm:$0xff] %vm1480_vm6, %v1455_v10  ;;  %v1443_v15 = vpop.permute.xlu0 %1442  ;;  %v1360_v6 = vor.u32 %v1359_v3, %v1355_v61  ;;  %v3681_v61 = vld [vmem:[%s3752_s20 + $0x6c] sm:$0xff]   ;;  %v2222_v3 = vshll.u32 %v3680_v60, 16 }
  0xbf   : > { %1483 = vst.msk [vmem:[#allocation2 + $0x10] sm:$0xff] %vm1480_vm6, %v1443_v15  ;;  %929 = vrot.lane.b32.xlu1 %v902_v27, %s3707_s23  ;;  %v3663_v15 = vld [vmem:[%s3752_s20 + $0x54] sm:$0xfe]   ;;  %v2143_v4 = vshrl.u32 %v3681_v61, 16  ;;  %v2145_v11 = vshll.u32 %v3681_v61, 16 }
  0xc0   : > { %917 = vrot.lane.b32.xlu0 %v884_v32, %s3707_s23  ;;  %v1365_v16 = vsel %vm480_vm1, %v1360_v6, %v1364_v9  ;;  %v1667_v20 = vrot.slane %v3663_v15, 1  ;;  %v3668_v32 = vld [vmem:[%s3752_s20 + $0x68] ss:$0 sps:$4 sm:$0x11]  }
  0xc1   : > { %v1457_v23 = vpop.permute.xlu1 %1456  ;;  %v1671_v38 = vrot.slane %v3668_v32, 1  ;;  %v3696_v32 = vld [vmem:[%s3752_s20 + $0x54] sm:$0xff]  }
  0xc2   : > { %1490 = vst.msk [vmem:[#allocation2 + $0x48] sm:$0xff] %vm1480_vm6, %v1457_v23  ;;  %v1445_v29 = vpop.permute.xlu0 %1444  ;;  %v1668_v23 = vrot.slane %v3664_v18, 1  ;;  %v2147_v18 = vrot.slane %v2145_v11, 1 }
  0xc3   : > { %1484 = vst.msk [vmem:[#allocation2 + $0x18] sm:$0xff] %vm1480_vm6, %v1445_v29  ;;  %1083 = vrot.lane.b32.xlu1 %v3649_v25, %s3705_s21  ;;  %v3665_v25 = vld [vmem:[%s3752_s20 + $0xa8] sm:$0xfe]  }
  0xc4   : > { %1071 = vrot.lane.b32.xlu0 %v3650_v31, %s3705_s21  ;;  %v1669_v27 = vsel %vm860_vm0, %v1667_v20, %v1668_v23  ;;  %v1688_v29 = vrot.slane %v3665_v25, 1  ;;  %v3667_v31 = vld [vmem:[%s3752_s20 + $0x60] sm:$0xfe]   ;;  %v3693_v20 = vld [vmem:[%s3752_s20 + $0x90] sm:$0xff]   ;;  %v3685_v25 = vld [vmem:[%s3752_s20 + $0xa8] sm:$0xfe]  }
  0xc5   : > { %v1708_v33 = vpop.permute.xlu1 %1707  ;;  %v1670_v35 = vrot.slane %v3667_v31, 1  ;;  %324 = vst.msk [vmem:[#allocation2 + $0x60] sm:$0xff] %vm311_vm2, %v3693_v20  ;;  %v2473_v31 = vrot.slane %v3685_v25, 1  ;;  %319 = vst.msk [vmem:[#allocation2 + $0x38] sm:$0xff] %vm311_vm2, %v3696_v32 }
  0xc6   : > { %1742 = vst.msk [vmem:[#allocation2 + $0x40] sm:$0xff] %vm1733_vm7, %v1708_v33  ;;  %v1696_v37 = vpop.permute.xlu0 %1695  ;;  %v2203_v33 = vshrl.u32 %v3675_v21, 16 }
  0xc7   : > { %1736 = vst.msk [vmem:[#allocation2 + $0x10] sm:$0xff] %vm1733_vm7, %v1696_v37  ;;  %1085 = vrot.lane.b32.xlu1 %v3651_v34, %s3705_s21  ;;  %v1690_v34 = vsel %vm860_vm0, %v1688_v29, %v1689_v30  ;;  %v2205_v37 = vshll.u32 %v3675_v21, 16  ;;  %v1672_v42 = vsel %vm860_vm0, %v1670_v35, %v1671_v38  ;;  %v3688_v35 = vld [vmem:[%s3752_s20 + $0x68] ss:$0 sps:$4 sm:$0x11]  }
  0xc8   : > { %1073 = vrot.lane.b32.xlu0 %v3652_v39, %s3705_s21  ;;  %v3669_v39 = vld [vmem:[%s3752_s20 + $0xa8] sm:$0xff]  }
  0xc9   : > { %v1710_v43 = vpop.permute.xlu1 %1709  ;;  %v2207_v47 = vrot.slane %v2205_v37, 1 }
  0xca   : > { %1743 = vst.msk [vmem:[#allocation2 + $0x48] sm:$0xff] %vm1733_vm7, %v1710_v43  ;;  %v1698_v50 = vpop.permute.xlu0 %1697  ;;  %v3670_v43 = vld [vmem:[%s3752_s20 + $0x60] sm:$0xff]  }
  0xcb   : > { %1737 = vst.msk [vmem:[#allocation2 + $0x18] sm:$0xff] %vm1733_vm7, %v1698_v50  ;;  %1462 = vrot.lane.b32.xlu1 %v1425_v53, %s3709_s25  ;;  %v2133_v50 = vshll.u32 %v3677_v40, 16  ;;  %v3678_v53 = vld [vmem:[%s3752_s20 + $0x68] ss:$0 sps:$4 sm:$0x11]   ;;  %v2208_v55 = vor.u32 %v2207_v47, %v2203_v33  ;;  %v2456_v40 = vrot.slane %v3688_v35, 1 }
  0xcc   : > { %1450 = vrot.lane.b32.xlu0 %v1353_v0, %s3709_s25  ;;  %v2138_v59 = vshll.u32 %v3678_v53, 16  ;;  %v2215_v0 = vshrl.u32 %v3679_v57, 16 }
  0xcd   : > { %v1864_v58 = vpop.permute.xlu1 %1863  ;;  %v2135_v56 = vrot.slane %v2133_v50, 1 }
  0xce   : > { %1898 = vst.msk [vmem:[#allocation2 + $0x40] sm:$0xff] %vm1889_vm8, %v1864_v58  ;;  %v1852_v1 = vpop.permute.xlu0 %1851  ;;  %v2212_v58 = vrot.slane %v2210_v52, 1  ;;  %v2140_v2 = vrot.slane %v2138_v59, 1 }
  0xcf   : > { %1892 = vst.msk [vmem:[#allocation2 + $0x10] sm:$0xff] %vm1889_vm8, %v1852_v1  ;;  %1464 = vrot.lane.b32.xlu1 %v1437_v12, %s3709_s25  ;;  %v2136_v63 = vor.u32 %v2135_v56, %v2131_v49  ;;  %v2217_v1 = vshll.u32 %v3679_v57, 16  ;;  %v2224_v12 = vrot.slane %v2222_v3, 1  ;;  %v3692_v49 = vld [vmem:[%s3752_s20 + $0x74] ss:$0 sps:$4 sm:$0x11]  }
  0xd0   : > { %1452 = vrot.lane.b32.xlu0 %v1365_v16, %s3709_s25  ;;  %v2213_v7 = vsel %vm480_vm1, %v2208_v55, %v2212_v58  ;;  %v2459_v53 = vrot.slane %v3692_v49, 1 }
  0xd1   : > { %v1866_v10 = vpop.permute.xlu1 %1865  ;;  %v2219_v9 = vrot.slane %v2217_v1, 1  ;;  %v2141_v14 = vsel %vm480_vm1, %v2136_v63, %v2140_v2 }
  0xd2   : > { %1899 = vst.msk [vmem:[#allocation2 + $0x48] sm:$0xff] %vm1889_vm8, %v1866_v10  ;;  %v1854_v17 = vpop.permute.xlu0 %1853  ;;  %v3682_v10 = vld [vmem:[%s3752_s20 + $0x74] ss:$0 sps:$4 sm:$0x11]  }
  0xd3   : > { %1893 = vst.msk [vmem:[#allocation2 + $0x18] sm:$0xff] %vm1889_vm8, %v1854_v17  ;;  %1715 = vrot.lane.b32.xlu1 %v1687_v22, %s3706_s22  ;;  %v2220_v17 = vor.u32 %v2219_v9, %v2215_v0  ;;  %v2150_v19 = vshll.u32 %v3682_v10, 16  ;;  %v2148_v22 = vor.u32 %v2147_v18, %v2143_v4 }
  0xd4   : > { %1703 = vrot.lane.b32.xlu0 %v1669_v27, %s3706_s22  ;;  %v3686_v27 = vld [vmem:[%s3752_s20 + $0xb0] ss:$0 sps:$4 sm:$0x11]  }
  0xd5   : > { %v2243_v24 = vpop.permute.xlu1 %2242  ;;  %v2225_v21 = vsel %vm480_vm1, %v2220_v17, %v2224_v12  ;;  %v2152_v23 = vrot.slane %v2150_v19, 1  ;;  %v2474_v33 = vrot.slane %v3686_v27, 1 }
  0xd6   : > { %2277 = vst.msk [vmem:[#allocation2 + $0x40] sm:$0xff] %vm2268_vm9, %v2243_v24  ;;  %v2231_v28 = vpop.permute.xlu0 %2230 }
  0xd7   : > { %2271 = vst.msk [vmem:[#allocation2 + $0x10] sm:$0xff] %vm2268_vm9, %v2231_v28  ;;  %1717 = vrot.lane.b32.xlu1 %v1690_v34, %s3706_s22  ;;  %v3695_v28 = vld [vmem:[%s3752_s20 + $0x9c] sm:$0xff]   ;;  %v2153_v29 = vsel %vm480_vm1, %v2148_v22, %v2152_v23  ;;  %v2475_v38 = vsel %vm860_vm0, %v2473_v31, %v2474_v33 }
  0xd8   : > { %1705 = vrot.lane.b32.xlu0 %v1672_v42, %s3706_s22  ;;  %v3687_v34 = vld [vmem:[%s3752_s20 + $0x60] sm:$0xfe]   ;;  %325 = vst.msk [vmem:[#allocation2 + $0x68] sm:$0xff] %vm311_vm2, %v3695_v28 }
  0xd9   : > { %v2245_v36 = vpop.permute.xlu1 %2244 }
  0xda   : > { %2278 = vst.msk [vmem:[#allocation2 + $0x48] sm:$0xff] %vm2268_vm9, %v2245_v36  ;;  %v2233_v41 = vpop.permute.xlu0 %2232 }
  0xdb   : > { %2272 = vst.msk [vmem:[#allocation2 + $0x18] sm:$0xff] %vm2268_vm9, %v2233_v41  ;;  %1871 = vrot.lane.b32.xlu1 %v3669_v39, %s3710_s26  ;;  %v2455_v39 = vrot.slane %v3687_v34, 1  ;;  %v3689_v41 = vld [vmem:[%s3752_s20 + $0xb4] sm:$0xfe]  }
  0xdc   : > { %1859 = vrot.lane.b32.xlu0 %v3670_v43, %s3710_s26  ;;  %v2476_v46 = vrot.slane %v3689_v41, 1 }
  0xdd   : > { %v2496_v44 = vpop.permute.xlu1 %2495 }
  0xde   : > { %2530 = vst.msk [vmem:[#allocation2 + $0x40] sm:$0xff] %vm2521_vm10, %v2496_v44  ;;  %v2484_v48 = vpop.permute.xlu0 %2483  ;;  %v3690_v44 = vld [vmem:[%s3752_s20 + $0xbc] ss:$0 sps:$4 sm:$0x11]  }
  0xdf   : > { %2524 = vst.msk [vmem:[#allocation2 + $0x10] sm:$0xff] %vm2521_vm10, %v2484_v48  ;;  %1873 = vrot.lane.b32.xlu1 %v3671_v45, %s3710_s26  ;;  %v2457_v45 = vsel %vm860_vm0, %v2455_v39, %v2456_v40  ;;  %v2477_v47 = vrot.slane %v3690_v44, 1  ;;  %v3691_v48 = vld [vmem:[%s3752_s20 + $0x6c] sm:$0xfe]  }
  0xe0   : > { %1861 = vrot.lane.b32.xlu0 %v3672_v51, %s3710_s26  ;;  %v2458_v52 = vrot.slane %v3691_v48, 1 }
  0xe1   : > { %v670_v54 = vpop.permute.xlu1 %669  ;;  %v2478_v51 = vsel %vm860_vm0, %v2476_v46, %v2477_v47 }
  0xe2   : > { %702 = vst.msk [vmem:[#allocation2 + $0x50] sm:$0xff] %vm691_vm3, %v670_v54  ;;  %v658_v62 = vpop.permute.xlu0 %657  ;;  %v2460_v55 = vsel %vm860_vm0, %v2458_v52, %v2459_v53 }
  0xe3   : > { %696 = vst.msk [vmem:[#allocation2 + $0x20] sm:$0xff] %vm691_vm3, %v658_v62  ;;  %2250 = vrot.lane.b32.xlu1 %v2213_v7, %s3711_s27 }
  0xe4   : > { %2238 = vrot.lane.b32.xlu0 %v2141_v14, %s3711_s27 }
  0xe5   : > { %v2498_v8 = vpop.permute.xlu1 %2497  ;;  %v2544_v6 = vld [vmem:[#allocation2 + $0x40] sm:$0xff] }
  0xe6   : > { %2531 = vst.msk [vmem:[#allocation2 + $0x48] sm:$0xff] %vm2521_vm10, %v2498_v8  ;;  %3446 = vmatprep.mubr.msk.bf16.mxu1 %vm2570_vm12, %v2544_v6  ;;  %v2486_v15 = vpop.permute.xlu0 %2485  ;;  %v2538_v16 = vld [vmem:[#allocation2 + $0x10] sm:$0xff] }
  0xe7   : > { %2525 = vst.msk [vmem:[#allocation2 + $0x18] sm:$0xff] %vm2521_vm10, %v2486_v15  ;;  %3434 = vmatprep.mubr.msk.bf16.mxu0 %vm2570_vm12, %v2538_v16  ;;  %2252 = vrot.lane.b32.xlu1 %v2225_v21, %s3711_s27 }
  0xe8   : > { %2240 = vrot.lane.b32.xlu0 %v2153_v29, %s3711_s27 }
  0xe9   : > { %v672_v24 = vpop.permute.xlu1 %671 }
  0xea   : > { %703 = vst.msk [vmem:[#allocation2 + $0x58] sm:$0xff] %vm691_vm3, %v672_v24  ;;  %v660_v30 = vpop.permute.xlu0 %659 }
  0xeb   : > { %697 = vst.msk [vmem:[#allocation2 + $0x28] sm:$0xff] %vm691_vm3, %v660_v30  ;;  %2503 = vrot.lane.b32.xlu1 %v2475_v38, %s3712_s28 }
  0xec   : > { %2491 = vrot.lane.b32.xlu0 %v2457_v45, %s3712_s28 }
  0xed   : > { %v924_v36 = vpop.permute.xlu1 %923  ;;  %v2545_v37 = vld [vmem:[#allocation2 + $0x48] sm:$0xff] }
  0xee   : > { %956 = vst.msk [vmem:[#allocation2 + $0x50] sm:$0xff] %vm945_vm4, %v924_v36  ;;  %3447 = vmatmul.mubr.msk.bf16.vlgmr.msra.gmra.mrb[0].mxu1 %vm2570_vm12, %v2545_v37  ;;  %v912_v42 = vpop.permute.xlu0 %911  ;;  %v2539_v43 = vld [vmem:[#allocation2 + $0x18] sm:$0xff] }
  0xef   : > { %950 = vst.msk [vmem:[#allocation2 + $0x20] sm:$0xff] %vm945_vm4, %v912_v42  ;;  %3435 = vmatmul.mubr.msk.bf16.gmra.mrb[4].mxu0 %vm2570_vm12, %v2539_v43  ;;  %2505 = vrot.lane.b32.xlu1 %v2478_v51, %s3712_s28 }
  0xf0   : > { %2493 = vrot.lane.b32.xlu0 %v2460_v55, %s3712_s28 }
  0xf1   : > { %v926_v50 = vpop.permute.xlu1 %925 }
  0xf2   : > { %957 = vst.msk [vmem:[#allocation2 + $0x58] sm:$0xff] %vm945_vm4, %v926_v50  ;;  %v914_v54 = vpop.permute.xlu0 %913 }
  0xf3   : > { %951 = vst.msk [vmem:[#allocation2 + $0x28] sm:$0xff] %vm945_vm4, %v914_v54 }
  0xf5   : > { %v1080_v56 = vpop.permute.xlu1 %1079 }
  0xf6   : > { %1112 = vst.msk [vmem:[#allocation2 + $0x50] sm:$0xff] %vm1101_vm5, %v1080_v56  ;;  %v1068_v57 = vpop.permute.xlu0 %1067  ;;  %v4324_v56 = vld [vmem:[%s4454_s2] ss:$0 sm:$0xff] }
  0xf7   : > { %1106 = vst.msk [vmem:[#allocation2 + $0x20] sm:$0xff] %vm1101_vm5, %v1068_v57 }
  0xf9   : > { %v1082_v58 = vpop.permute.xlu1 %1081 }
  0xfa   : > { %1113 = vst.msk [vmem:[#allocation2 + $0x58] sm:$0xff] %vm1101_vm5, %v1082_v58  ;;  %v1070_v59 = vpop.permute.xlu0 %1069  ;;  %v4330_v58 = vld [vmem:[%s4455_s3] ss:$0 sm:$0xff] }
  0xfb   : > { %1107 = vst.msk [vmem:[#allocation2 + $0x28] sm:$0xff] %vm1101_vm5, %v1070_v59 }
  0xfd   : > { %v1459_v60 = vpop.permute.xlu1 %1458 }
  0xfe   : > { %1491 = vst.msk [vmem:[#allocation2 + $0x50] sm:$0xff] %vm1480_vm6, %v1459_v60  ;;  %v1447_v61 = vpop.permute.xlu0 %1446 }
  0xff   : > { %1485 = vst.msk [vmem:[#allocation2 + $0x20] sm:$0xff] %vm1480_vm6, %v1447_v61 }
 0x101   : > { %v1461_v62 = vpop.permute.xlu1 %1460 }
 0x102   : > { %1492 = vst.msk [vmem:[#allocation2 + $0x58] sm:$0xff] %vm1480_vm6, %v1461_v62  ;;  %v1449_v63 = vpop.permute.xlu0 %1448 }
 0x103   : > { %1486 = vst.msk [vmem:[#allocation2 + $0x28] sm:$0xff] %vm1480_vm6, %v1449_v63 }
 0x105   : > { %v1712_v0 = vpop.permute.xlu1 %1711 }
 0x106   : > { %1744 = vst.msk [vmem:[#allocation2 + $0x50] sm:$0xff] %vm1733_vm7, %v1712_v0  ;;  %v1700_v1 = vpop.permute.xlu0 %1699 }
 0x107   : > { %1738 = vst.msk [vmem:[#allocation2 + $0x20] sm:$0xff] %vm1733_vm7, %v1700_v1 }
 0x109   : > { %v1714_v2 = vpop.permute.xlu1 %1713 }
 0x10a   : > { %1745 = vst.msk [vmem:[#allocation2 + $0x58] sm:$0xff] %vm1733_vm7, %v1714_v2  ;;  %v1702_v3 = vpop.permute.xlu0 %1701 }
 0x10b   : > { %1739 = vst.msk [vmem:[#allocation2 + $0x28] sm:$0xff] %vm1733_vm7, %v1702_v3 }
 0x10d   : > { %v1868_v4 = vpop.permute.xlu1 %1867 }
 0x10e   : > { %1900 = vst.msk [vmem:[#allocation2 + $0x50] sm:$0xff] %vm1889_vm8, %v1868_v4  ;;  %v1856_v5 = vpop.permute.xlu0 %1855 }
 0x10f   : > { %1894 = vst.msk [vmem:[#allocation2 + $0x20] sm:$0xff] %vm1889_vm8, %v1856_v5 }
 0x111   : > { %v1870_v7 = vpop.permute.xlu1 %1869 }
 0x112   : > { %1901 = vst.msk [vmem:[#allocation2 + $0x58] sm:$0xff] %vm1889_vm8, %v1870_v7  ;;  %v1858_v8 = vpop.permute.xlu0 %1857 }
 0x113   : > { %1895 = vst.msk [vmem:[#allocation2 + $0x28] sm:$0xff] %vm1889_vm8, %v1858_v8 }
 0x115   : > { %v2247_v6 = vpop.permute.xlu1 %2246 }
 0x116   : > { %2279 = vst.msk [vmem:[#allocation2 + $0x50] sm:$0xff] %vm2268_vm9, %v2247_v6  ;;  %v2235_v9 = vpop.permute.xlu0 %2234 }
 0x117   : > { %2273 = vst.msk [vmem:[#allocation2 + $0x20] sm:$0xff] %vm2268_vm9, %v2235_v9 }
 0x119   : > { %v2249_v10 = vpop.permute.xlu1 %2248 }
 0x11a   : > { %2280 = vst.msk [vmem:[#allocation2 + $0x58] sm:$0xff] %vm2268_vm9, %v2249_v10  ;;  %v2237_v11 = vpop.permute.xlu0 %2236 }
 0x11b   : > { %2274 = vst.msk [vmem:[#allocation2 + $0x28] sm:$0xff] %vm2268_vm9, %v2237_v11 }
 0x11d   : > { %v2500_v12 = vpop.permute.xlu1 %2499 }
 0x11e   : > { %2532 = vst.msk [vmem:[#allocation2 + $0x50] sm:$0xff] %vm2521_vm10, %v2500_v12  ;;  %v2488_v13 = vpop.permute.xlu0 %2487 }
 0x11f   : > { %2526 = vst.msk [vmem:[#allocation2 + $0x20] sm:$0xff] %vm2521_vm10, %v2488_v13 }
 0x121   : > { %v674_v14 = vpop.permute.xlu1 %673 }
 0x122   : > { %704 = vst.msk [vmem:[#allocation2 + $0x60] sm:$0xff] %vm691_vm3, %v674_v14  ;;  %v662_v16 = vpop.permute.xlu0 %661 }
 0x123   : > { %698 = vst.msk [vmem:[#allocation2 + $0x30] sm:$0xff] %vm691_vm3, %v662_v16 }
 0x125   : > { %v2546_v15 = vld [vmem:[#allocation2 + $0x50] sm:$0xff]  ;;  %v2502_v18 = vpop.permute.xlu1 %2501 }
 0x126   : > { %3450 = vmatprep.mubr.msk.bf16.mxu1 %vm2570_vm12, %v2546_v15  ;;  %v2540_v17 = vld [vmem:[#allocation2 + $0x20] sm:$0xff]  ;;  %2533 = vst.msk [vmem:[#allocation2 + $0x58] sm:$0xff] %vm2521_vm10, %v2502_v18  ;;  %v2490_v19 = vpop.permute.xlu0 %2489 }
 0x127   : > { %3438 = vmatprep.mubr.msk.bf16.mxu0 %vm2570_vm12, %v2540_v17  ;;  %2527 = vst.msk [vmem:[#allocation2 + $0x28] sm:$0xff] %vm2521_vm10, %v2490_v19 }
 0x129   : > { %v676_v20 = vpop.permute.xlu1 %675 }
 0x12a   : > { %705 = vst.msk [vmem:[#allocation2 + $0x68] sm:$0xff] %vm691_vm3, %v676_v20  ;;  %v664_v21 = vpop.permute.xlu0 %663 }
 0x12b   : > { %699 = vst.msk [vmem:[#allocation2 + $0x38] sm:$0xff] %vm691_vm3, %v664_v21 }
 0x12d   : > { %v2547_v22 = vld [vmem:[#allocation2 + $0x58] sm:$0xff]  ;;  %v928_v23 = vpop.permute.xlu1 %927 }
 0x12e   : > { %3451 = vmatmul.mubr.msk.bf16.gmra.mrb[4].mxu1 %vm2570_vm12, %v2547_v22  ;;  %958 = vst.msk [vmem:[#allocation2 + $0x60] sm:$0xff] %vm945_vm4, %v928_v23  ;;  %v2541_v24 = vld [vmem:[#allocation2 + $0x28] sm:$0xff]  ;;  %v916_v25 = vpop.permute.xlu0 %915 }
 0x12f   : > { %3439 = vmatmul.mubr.msk.bf16.gmra.mrb[8].mxu0 %vm2570_vm12, %v2541_v24  ;;  %952 = vst.msk [vmem:[#allocation2 + $0x30] sm:$0xff] %vm945_vm4, %v916_v25 }
 0x131   : > { %v930_v26 = vpop.permute.xlu1 %929 }
 0x132   : > { %959 = vst.msk [vmem:[#allocation2 + $0x68] sm:$0xff] %vm945_vm4, %v930_v26  ;;  %v918_v27 = vpop.permute.xlu0 %917 }
 0x133   : > { %953 = vst.msk [vmem:[#allocation2 + $0x38] sm:$0xff] %vm945_vm4, %v918_v27 }
 0x135   : > { %v1084_v28 = vpop.permute.xlu1 %1083 }
 0x136   : > { %1114 = vst.msk [vmem:[#allocation2 + $0x60] sm:$0xff] %vm1101_vm5, %v1084_v28  ;;  %v1072_v29 = vpop.permute.xlu0 %1071 }
 0x137   : > { %1108 = vst.msk [vmem:[#allocation2 + $0x30] sm:$0xff] %vm1101_vm5, %v1072_v29 }
 0x139   : > { %v1086_v30 = vpop.permute.xlu1 %1085 }
 0x13a   : > { %1115 = vst.msk [vmem:[#allocation2 + $0x68] sm:$0xff] %vm1101_vm5, %v1086_v30  ;;  %v1074_v31 = vpop.permute.xlu0 %1073 }
 0x13b   : > { %1109 = vst.msk [vmem:[#allocation2 + $0x38] sm:$0xff] %vm1101_vm5, %v1074_v31 }
 0x13d   : > { %v1463_v32 = vpop.permute.xlu1 %1462 }
 0x13e   : > { %1493 = vst.msk [vmem:[#allocation2 + $0x60] sm:$0xff] %vm1480_vm6, %v1463_v32  ;;  %v1451_v33 = vpop.permute.xlu0 %1450 }
 0x13f   : > { %1487 = vst.msk [vmem:[#allocation2 + $0x30] sm:$0xff] %vm1480_vm6, %v1451_v33 }
 0x141   : > { %v1465_v34 = vpop.permute.xlu1 %1464 }
 0x142   : > { %1494 = vst.msk [vmem:[#allocation2 + $0x68] sm:$0xff] %vm1480_vm6, %v1465_v34  ;;  %v1453_v35 = vpop.permute.xlu0 %1452 }
 0x143   : > { %1488 = vst.msk [vmem:[#allocation2 + $0x38] sm:$0xff] %vm1480_vm6, %v1453_v35 }
 0x145   : > { %v1716_v36 = vpop.permute.xlu1 %1715 }
 0x146   : > { %1746 = vst.msk [vmem:[#allocation2 + $0x60] sm:$0xff] %vm1733_vm7, %v1716_v36  ;;  %v1704_v37 = vpop.permute.xlu0 %1703 }
 0x147   : > { %1740 = vst.msk [vmem:[#allocation2 + $0x30] sm:$0xff] %vm1733_vm7, %v1704_v37 }
 0x149   : > { %v1718_v38 = vpop.permute.xlu1 %1717 }
 0x14a   : > { %1747 = vst.msk [vmem:[#allocation2 + $0x68] sm:$0xff] %vm1733_vm7, %v1718_v38  ;;  %v1706_v39 = vpop.permute.xlu0 %1705 }
 0x14b   : > { %1741 = vst.msk [vmem:[#allocation2 + $0x38] sm:$0xff] %vm1733_vm7, %v1706_v39 }
 0x14d   : > { %v1872_v40 = vpop.permute.xlu1 %1871 }
 0x14e   : > { %1902 = vst.msk [vmem:[#allocation2 + $0x60] sm:$0xff] %vm1889_vm8, %v1872_v40  ;;  %v1860_v41 = vpop.permute.xlu0 %1859 }
 0x14f   : > { %1896 = vst.msk [vmem:[#allocation2 + $0x30] sm:$0xff] %vm1889_vm8, %v1860_v41 }
 0x151   : > { %v1874_v42 = vpop.permute.xlu1 %1873 }
 0x152   : > { %1903 = vst.msk [vmem:[#allocation2 + $0x68] sm:$0xff] %vm1889_vm8, %v1874_v42  ;;  %v1862_v43 = vpop.permute.xlu0 %1861 }
 0x153   : > { %1897 = vst.msk [vmem:[#allocation2 + $0x38] sm:$0xff] %vm1889_vm8, %v1862_v43 }
 0x155   : > { %v2251_v44 = vpop.permute.xlu1 %2250 }
 0x156   : > { %2281 = vst.msk [vmem:[#allocation2 + $0x60] sm:$0xff] %vm2268_vm9, %v2251_v44  ;;  %v2239_v45 = vpop.permute.xlu0 %2238 }
 0x157   : > { %2275 = vst.msk [vmem:[#allocation2 + $0x30] sm:$0xff] %vm2268_vm9, %v2239_v45 }
 0x159   : > { %v2253_v46 = vpop.permute.xlu1 %2252 }
 0x15a   : > { %2282 = vst.msk [vmem:[#allocation2 + $0x68] sm:$0xff] %vm2268_vm9, %v2253_v46  ;;  %v2241_v47 = vpop.permute.xlu0 %2240 }
 0x15b   : > { %2276 = vst.msk [vmem:[#allocation2 + $0x38] sm:$0xff] %vm2268_vm9, %v2241_v47 }
 0x15d   : > { %v2504_v48 = vpop.permute.xlu1 %2503 }
 0x15e   : > { %2534 = vst.msk [vmem:[#allocation2 + $0x60] sm:$0xff] %vm2521_vm10, %v2504_v48  ;;  %v2492_v49 = vpop.permute.xlu0 %2491 }
 0x15f   : > { %2528 = vst.msk [vmem:[#allocation2 + $0x30] sm:$0xff] %vm2521_vm10, %v2492_v49 }
 0x161   : > { %v2506_v50 = vpop.permute.xlu1 %2505 }
 0x162   : > { %2535 = vst.msk [vmem:[#allocation2 + $0x68] sm:$0xff] %vm2521_vm10, %v2506_v50  ;;  %v2494_v51 = vpop.permute.xlu0 %2493 }
 0x163   : > { %2529 = vst.msk [vmem:[#allocation2 + $0x38] sm:$0xff] %vm2521_vm10, %v2494_v51 }
 0x165   : > { %v2548_v52 = vld [vmem:[#allocation2 + $0x60] sm:$0xff] }
 0x166   : > { %3454 = vmatprep.mubr.msk.bf16.mxu1 %vm2570_vm12, %v2548_v52  ;;  %v2542_v53 = vld [vmem:[#allocation2 + $0x30] sm:$0xff] }
 0x167   : > { %3442 = vmatprep.mubr.msk.bf16.mxu0 %vm2570_vm12, %v2542_v53 }
 0x169   : > { %v2549_v54 = vld [vmem:[#allocation2 + $0x68] sm:$0xff] }
 0x16a   : > { %3455 = vmatmul.mubr.msk.bf16.gmra.mrb[8].mxu1 %vm2570_vm12, %v2549_v54  ;;  %v2543_v55 = vld [vmem:[#allocation2 + $0x38] sm:$0xff] }
 0x16b   : > { %3443 = vmatmul.mubr.msk.bf16.gmra.mrb[12].mxu0 %vm2570_vm12, %v2543_v55 }
 0x181   : > { %v3432_v57 = vpop.f32.mrb[0].mxu0 }
 0x182   : > { %v2771_v59 = vmul.f32 %v3432_v57, %v4324_v56  ;;  %v2651_v60 = vpop.f32.mrb[1].mxu0 }
 0x183   : > { %v2769_v61 = vmul.f32 %v4324_v56, %v2651_v60  ;;  %v3433_v62 = vpop.f32.mrb[2].mxu0 }
 0x184   : > { %v2806_v63 = vadd.f32 %v4330_v58, %v2771_v59  ;;  %v2772_v0 = vmul.f32 %v3433_v62, %v4324_v56  ;;  %v2654_v1 = vpop.f32.mrb[3].mxu0 }
 0x185   : > { %v2804_v2 = vadd.f32 %v4330_v58, %v2769_v61  ;;  %v2770_v3 = vmul.f32 %v4324_v56, %v2654_v1 }
 0x186   : > { %v2834_v4 = vmax.f32 %v2806_v63, 0.0  ;;  %v2807_v5 = vadd.f32 %v4330_v58, %v2772_v0 }
 0x187   : > { %v2832_v7 = vmax.f32 %v2804_v2, 0.0  ;;  %v2805_v8 = vadd.f32 %v4330_v58, %v2770_v3 }
 0x188   : > { %2864 = vst.msk [vmem:[%s4339_s16 + $0x10] sm:$0xff] %vm2860_vm13, %v2834_v4  ;;  %v2835_v6 = vmax.f32 %v2807_v5, 0.0 }
 0x189   : > { %2861 = vst.msk [vmem:[%s4339_s16] sm:$0xff] %vm2860_vm13, %v2832_v7  ;;  %v2833_v9 = vmax.f32 %v2805_v8, 0.0 }
 0x18a   : > { %2865 = vst.msk [vmem:[%s4339_s16 + $0x18] sm:$0x3f] %vm2862_vm14, %v2835_v6 }
 0x18b   : > { %2863 = vst.msk [vmem:[%s4339_s16 + $0x8] sm:$0x3f] %vm2862_vm14, %v2833_v9 }
 0x1c1   : > { %v3448_v10 = vpop.f32.mrb[0].mxu1 }
 0x1c2   : > { %v2787_v11 = vmul.f32 %v3448_v10, %v4324_v56  ;;  %v2715_v12 = vpop.f32.mrb[1].mxu1  ;;  %v3436_v13 = vpop.f32.mrb[4].mxu0 }
 0x1c3   : > { %v2785_v14 = vmul.f32 %v4324_v56, %v2715_v12  ;;  %v3449_v15 = vpop.f32.mrb[2].mxu1  ;;  %v2775_v16 = vmul.f32 %v3436_v13, %v4324_v56  ;;  %v2667_v18 = vpop.f32.mrb[5].mxu0 }
 0x1c4   : > { %v2822_v17 = vadd.f32 %v4330_v58, %v2787_v11  ;;  %v2788_v19 = vmul.f32 %v3449_v15, %v4324_v56  ;;  %v2718_v20 = vpop.f32.mrb[3].mxu1  ;;  %v2773_v21 = vmul.f32 %v4324_v56, %v2667_v18  ;;  %v3437_v23 = vpop.f32.mrb[6].mxu0 }
 0x1c5   : > { %v2820_v22 = vadd.f32 %v4330_v58, %v2785_v14  ;;  %v2786_v24 = vmul.f32 %v4324_v56, %v2718_v20  ;;  %v2810_v25 = vadd.f32 %v4330_v58, %v2775_v16  ;;  %v2776_v27 = vmul.f32 %v3437_v23, %v4324_v56  ;;  %v2670_v29 = vpop.f32.mrb[7].mxu0 }
 0x1c6   : > { %v2850_v26 = vmax.f32 %v2822_v17, 0.0  ;;  %v2823_v28 = vadd.f32 %v4330_v58, %v2788_v19  ;;  %v2808_v30 = vadd.f32 %v4330_v58, %v2773_v21  ;;  %v2774_v32 = vmul.f32 %v4324_v56, %v2670_v29 }
 0x1c7   : > { %v2848_v31 = vmax.f32 %v2820_v22, 0.0  ;;  %v2821_v33 = vadd.f32 %v4330_v58, %v2786_v24  ;;  %v2838_v34 = vmax.f32 %v2810_v25, 0.0  ;;  %v2811_v35 = vadd.f32 %v4330_v58, %v2776_v27 }
 0x1c8   : > { %2880 = vst.msk [vmem:[%s4339_s16 + $0x90] sm:$0xff] %vm2860_vm13, %v2850_v26  ;;  %v2851_v36 = vmax.f32 %v2823_v28, 0.0  ;;  %v2836_v37 = vmax.f32 %v2808_v30, 0.0  ;;  %v2809_v38 = vadd.f32 %v4330_v58, %v2774_v32 }
 0x1c9   : > { %2878 = vst.msk [vmem:[%s4339_s16 + $0x80] sm:$0xff] %vm2860_vm13, %v2848_v31  ;;  %v2849_v39 = vmax.f32 %v2821_v33, 0.0  ;;  %2868 = vst.msk [vmem:[%s4339_s16 + $0x30] sm:$0xff] %vm2860_vm13, %v2838_v34  ;;  %v2839_v40 = vmax.f32 %v2811_v35, 0.0 }
 0x1ca   : > { %2881 = vst.msk [vmem:[%s4339_s16 + $0x98] sm:$0x3f] %vm2862_vm14, %v2851_v36  ;;  %v2837_v41 = vmax.f32 %v2809_v38, 0.0 }
 0x1cb   : > { %2866 = vst.msk [vmem:[%s4339_s16 + $0x20] sm:$0xff] %vm2860_vm13, %v2836_v37 }
 0x1cc   : > { %2879 = vst.msk [vmem:[%s4339_s16 + $0x88] sm:$0x3f] %vm2862_vm14, %v2849_v39  ;;  %2869 = vst.msk [vmem:[%s4339_s16 + $0x38] sm:$0x3f] %vm2862_vm14, %v2839_v40 }
 0x1cd   : > { %2867 = vst.msk [vmem:[%s4339_s16 + $0x28] sm:$0x3f] %vm2862_vm14, %v2837_v41 }
 0x201   : > { %v3452_v42 = vpop.f32.mrb[4].mxu1 }
 0x202   : > { %v2791_v43 = vmul.f32 %v3452_v42, %v4324_v56  ;;  %v2731_v44 = vpop.f32.mrb[5].mxu1  ;;  %v3440_v45 = vpop.f32.mrb[8].mxu0 }
 0x203   : > { %v2789_v46 = vmul.f32 %v4324_v56, %v2731_v44  ;;  %v3453_v47 = vpop.f32.mrb[6].mxu1  ;;  %v2779_v48 = vmul.f32 %v3440_v45, %v4324_v56  ;;  %v2683_v50 = vpop.f32.mrb[9].mxu0 }
 0x204   : > { %v2826_v49 = vadd.f32 %v4330_v58, %v2791_v43  ;;  %v2792_v51 = vmul.f32 %v3453_v47, %v4324_v56  ;;  %v2734_v52 = vpop.f32.mrb[7].mxu1  ;;  %v2777_v53 = vmul.f32 %v4324_v56, %v2683_v50  ;;  %v3441_v55 = vpop.f32.mrb[10].mxu0 }
 0x205   : > { %v2824_v54 = vadd.f32 %v4330_v58, %v2789_v46  ;;  %v2790_v57 = vmul.f32 %v4324_v56, %v2734_v52  ;;  %v2814_v59 = vadd.f32 %v4330_v58, %v2779_v48  ;;  %v2780_v61 = vmul.f32 %v3441_v55, %v4324_v56  ;;  %v2686_v63 = vpop.f32.mrb[11].mxu0 }
 0x206   : > { %v2854_v60 = vmax.f32 %v2826_v49, 0.0  ;;  %v2827_v62 = vadd.f32 %v4330_v58, %v2792_v51  ;;  %v2812_v0 = vadd.f32 %v4330_v58, %v2777_v53  ;;  %v2778_v2 = vmul.f32 %v4324_v56, %v2686_v63 }
 0x207   : > { %v2852_v1 = vmax.f32 %v2824_v54, 0.0  ;;  %v2825_v3 = vadd.f32 %v4330_v58, %v2790_v57  ;;  %v2842_v4 = vmax.f32 %v2814_v59, 0.0  ;;  %v2815_v5 = vadd.f32 %v4330_v58, %v2780_v61 }
 0x208   : > { %2884 = vst.msk [vmem:[%s4339_s16 + $0xb0] sm:$0xff] %vm2860_vm13, %v2854_v60  ;;  %v2855_v7 = vmax.f32 %v2827_v62, 0.0  ;;  %v2840_v8 = vmax.f32 %v2812_v0, 0.0  ;;  %v2813_v6 = vadd.f32 %v4330_v58, %v2778_v2 }
 0x209   : > { %2882 = vst.msk [vmem:[%s4339_s16 + $0xa0] sm:$0xff] %vm2860_vm13, %v2852_v1  ;;  %v2853_v9 = vmax.f32 %v2825_v3, 0.0  ;;  %2872 = vst.msk [vmem:[%s4339_s16 + $0x50] sm:$0xff] %vm2860_vm13, %v2842_v4  ;;  %v2843_v10 = vmax.f32 %v2815_v5, 0.0 }
 0x20a   : > { %2885 = vst.msk [vmem:[%s4339_s16 + $0xb8] sm:$0x3f] %vm2862_vm14, %v2855_v7  ;;  %v2841_v11 = vmax.f32 %v2813_v6, 0.0 }
 0x20b   : > { %2870 = vst.msk [vmem:[%s4339_s16 + $0x40] sm:$0xff] %vm2860_vm13, %v2840_v8 }
 0x20c   : > { %2883 = vst.msk [vmem:[%s4339_s16 + $0xa8] sm:$0x3f] %vm2862_vm14, %v2853_v9  ;;  %2873 = vst.msk [vmem:[%s4339_s16 + $0x58] sm:$0x3f] %vm2862_vm14, %v2843_v10 }
 0x20d   : > { %2871 = vst.msk [vmem:[%s4339_s16 + $0x48] sm:$0x3f] %vm2862_vm14, %v2841_v11 }
 0x23d   : > { %v3456_v12 = vpop.f32.mrb[8].mxu1 }
 0x23e   : > { %v2795_v13 = vmul.f32 %v3456_v12, %v4324_v56  ;;  %v2747_v14 = vpop.f32.mrb[9].mxu1  ;;  %v3444_v15 = vpop.f32.mrb[12].mxu0 }
 0x23f   : > { %v2793_v16 = vmul.f32 %v4324_v56, %v2747_v14  ;;  %v3457_v17 = vpop.f32.mrb[10].mxu1  ;;  %v2783_v18 = vmul.f32 %v3444_v15, %v4324_v56  ;;  %v2699_v20 = vpop.f32.mrb[13].mxu0 }
 0x240   : > { %v2830_v19 = vadd.f32 %v4330_v58, %v2795_v13  ;;  %v2796_v21 = vmul.f32 %v3457_v17, %v4324_v56  ;;  %v2750_v22 = vpop.f32.mrb[11].mxu1  ;;  %v2781_v23 = vmul.f32 %v4324_v56, %v2699_v20  ;;  %v3445_v25 = vpop.f32.mrb[14].mxu0 }
 0x241   : > { %v2828_v24 = vadd.f32 %v4330_v58, %v2793_v16  ;;  %v2794_v26 = vmul.f32 %v4324_v56, %v2750_v22  ;;  %v2818_v27 = vadd.f32 %v4330_v58, %v2783_v18  ;;  %v2784_v29 = vmul.f32 %v3445_v25, %v4324_v56  ;;  %v2702_v31 = vpop.f32.mrb[15].mxu0 }
 0x242   : > { %v2858_v28 = vmax.f32 %v2830_v19, 0.0  ;;  %v2831_v30 = vadd.f32 %v4330_v58, %v2796_v21  ;;  %v2816_v32 = vadd.f32 %v4330_v58, %v2781_v23  ;;  %v2782_v34 = vmul.f32 %v4324_v56, %v2702_v31 }
 0x243   : > { %v2856_v33 = vmax.f32 %v2828_v24, 0.0  ;;  %v2829_v35 = vadd.f32 %v4330_v58, %v2794_v26  ;;  %v2846_v36 = vmax.f32 %v2818_v27, 0.0  ;;  %v2819_v37 = vadd.f32 %v4330_v58, %v2784_v29 }
 0x244   : > { %2888 = vst.msk [vmem:[%s4339_s16 + $0xd0] sm:$0xff] %vm2860_vm13, %v2858_v28  ;;  %v2859_v38 = vmax.f32 %v2831_v30, 0.0  ;;  %v2844_v39 = vmax.f32 %v2816_v32, 0.0  ;;  %v2817_v40 = vadd.f32 %v4330_v58, %v2782_v34 }
 0x245   : > { %2886 = vst.msk [vmem:[%s4339_s16 + $0xc0] sm:$0xff] %vm2860_vm13, %v2856_v33  ;;  %v2857_v41 = vmax.f32 %v2829_v35, 0.0  ;;  %2876 = vst.msk [vmem:[%s4339_s16 + $0x70] sm:$0xff] %vm2860_vm13, %v2846_v36  ;;  %v2847_v42 = vmax.f32 %v2819_v37, 0.0 }
 0x246   : > { %2889 = vst.msk [vmem:[%s4339_s16 + $0xd8] sm:$0x3f] %vm2862_vm14, %v2859_v38  ;;  %v2845_v56 = vmax.f32 %v2817_v40, 0.0 }
 0x247   : > { %2874 = vst.msk [vmem:[%s4339_s16 + $0x60] sm:$0xff] %vm2860_vm13, %v2844_v39 }
 0x248   : > { %2887 = vst.msk [vmem:[%s4339_s16 + $0xc8] sm:$0x3f] %vm2862_vm14, %v2857_v41  ;;  %2877 = vst.msk [vmem:[%s4339_s16 + $0x78] sm:$0x3f] %vm2862_vm14, %v2847_v42 }
 0x249   : > { %2875 = vst.msk [vmem:[%s4339_s16 + $0x68] sm:$0x3f] %vm2862_vm14, %v2845_v56 }
 0x24a PF: > { %s14_s15 = sadd.s32 1, %s3703_s15  }
 0x24b   : > { %p11_p4 = scmp.ge.s32.totalorder %s14_s15, 4  }
 0x24d   :  { %13 = sbr.rel (!%p11_p4) target bundleno = 1 (0x1), region = 68 }

</bundles_post_ra>
